<compile_context>
chip_gen: v7x
topology: tpu7x:2x2x1
jax: 0.10.0
libtpu: 0.0.40
codegen_flags: <defaults>
</compile_context>

<pallas_src>
import jax
import jax.numpy as jnp
from jax.experimental import pallas as pl
from jax.experimental.pallas import tpu as pltpu

# ---- config (conf.Config) -------------------------------------------------
LATENT_DIM = 32          # kept small for the demo
N_TRACKS = 3
N_MEASURES = 4           # fixed by the architecture (kernel (4,1,1))
MEASURE_RESOLUTION = 16  # fixed by the architecture (4 -> 16 along H)
N_PITCHES = 72           # fixed by the architecture (6 * 12 along W)
BN_EPS = 1e-5


# ---------------------------------------------------------------------------
# The fused generator kernel
# ---------------------------------------------------------------------------
def _generator_kernel(
    x0_ref,                    # (4B, 128) bf16   rows (d, b), block-diag latent
    w0_ref,                    # (128, 256) bf16  VMEM
    w1_ref,                    # (256, 512) bf16  VMEM, cols (kh, c128)
    w2_ref,                    # (128, 256) bf16  VMEM, cols (kw, c64)
    w3_hbm,                    # (256, 192) bf16  ANY: banded, overlap-add folded in
    w4_hbm,                    # (32, 256)  bf16  ANY: cols 4 x (track, c16, 16 pad)
    w5_hbm,                    # (256, 256) bf16  ANY: block-diag over kh groups
    slab_ref,                  # (16, 256)  f32   all BN gammas/betas + track masks
    o_ref,                     # (24*4B, 256) f32 rows (w3, h, d, b), lane-dense
    w3_buf, w4_buf, w5_buf,    # VMEM scratch for the prefetched weights
    dma_sem,                   # DMA semaphores (3,)
):
    # Prefetch late-layer weights (HBM -> VMEM) so their DMA overlaps with the
    # block 0-2 compute instead of serializing in front of the kernel body.
    cp3 = pltpu.make_async_copy(w3_hbm, w3_buf, dma_sem.at[0])
    cp4 = pltpu.make_async_copy(w4_hbm, w4_buf, dma_sem.at[1])
    cp5 = pltpu.make_async_copy(w5_hbm, w5_buf, dma_sem.at[2])
    cp3.start()
    cp4.start()
    cp5.start()

    def bn_relu(y, gamma, beta, count):
        # Training-mode BatchNorm (biased variance, single-pass stats) + ReLU.
        s1 = jnp.sum(y, axis=0, keepdims=True)
        s2 = jnp.sum(y * y, axis=0, keepdims=True)
        inv = 1.0 / count
        mean = s1 * inv
        var = s2 * inv - mean * mean
        scale = gamma * jax.lax.rsqrt(var + BN_EPS)
        shift = beta - mean * scale
        return jnp.maximum(y * scale + shift, 0.0)

    def grouped_bn_relu(y, gamma, beta, gw, ng, count):
        # Same, but the deconv taps are kept in `ng` lane groups of width `gw`
        # (channels live at the same offset in every group): stats are reduced
        # over the groups and the affine is tiled back.  All slices are static.
        s1 = jnp.sum(y, axis=0, keepdims=True)
        s2 = jnp.sum(y * y, axis=0, keepdims=True)
        s1g = s1[:, 0:gw]
        s2g = s2[:, 0:gw]
        for g in range(1, ng):
            s1g = s1g + s1[:, g * gw:(g + 1) * gw]
            s2g = s2g + s2[:, g * gw:(g + 1) * gw]
        inv = 1.0 / count
        mean = s1g * inv
        var = s2g * inv - mean * mean
        scale = gamma * jax.lax.rsqrt(var + BN_EPS)
        shift = beta - mean * scale
        scale_f = jnp.concatenate([scale] * ng, axis=1)
        shift_f = jnp.concatenate([shift] * ng, axis=1)
        return jnp.maximum(y * scale_f + shift_f, 0.0)

    m0 = x0_ref.shape[0]                     # 4 * B, rows ordered (d, b)

    # ---- block 0: (4,1,1)/(4,1,1) deconv as one block-diagonal matmul -------
    y0 = jnp.dot(x0_ref[...], w0_ref[...], preferred_element_type=jnp.float32)
    a0 = bn_relu(y0, slab_ref[0:1, :], slab_ref[1:2, :], float(m0))
    a0 = a0.astype(jnp.bfloat16)                                    # (m0, 256)

    # ---- block 1: H expansion; one fused matmul (taps in columns), then a
    #      single lane-aligned retile of the 4 tap groups onto rows -----------
    y1 = jnp.dot(a0, w1_ref[...], preferred_element_type=jnp.float32)   # (m0, 512)
    a1 = jnp.concatenate([y1[:, 128 * h:128 * (h + 1)] for h in range(4)], axis=0)
    a1 = bn_relu(a1, slab_ref[2:3, 0:128], slab_ref[3:4, 0:128], float(4 * m0))
    a1 = a1.astype(jnp.bfloat16)                                    # (4m0, 128) rows (h,d,b)

    # ---- block 2: W expansion; taps stay in 64-wide column groups -----------
    y2 = jnp.dot(a1, w2_ref[...], preferred_element_type=jnp.float32)   # (4m0, 256)
    a2 = grouped_bn_relu(y2, slab_ref[2:3, 128:192], slab_ref[3:4, 128:192],
                         64, 4, float(16 * m0))
    a2 = a2.astype(jnp.bfloat16)                                    # cols (w, c64)

    # ---- block 3: kernel (1,1,3) stride 1; the overlap-add is baked into a
    #      banded (256,192) weight -> one matmul, then retile w3 taps to rows -
    cp3.wait()
    y3 = jnp.dot(a2, w3_buf[...], preferred_element_type=jnp.float32)   # (4m0, 192)
    a3 = jnp.concatenate([y3[:, 32 * w:32 * (w + 1)] for w in range(6)], axis=0)
    a3 = bn_relu(a3, slab_ref[2:3, 192:224], slab_ref[3:4, 192:224], float(24 * m0))
    a3 = a3.astype(jnp.bfloat16)                                    # (24m0, 32) rows (w3,h,d,b)

    # ---- block 4: 3 tracks fused along channels; the 4 H-taps live in 64-wide
    #      lane groups (zero-padded from 48 to 64 for lane alignment) ---------
    cp4.wait()
    y4 = jnp.dot(a3, w4_buf[...], preferred_element_type=jnp.float32)   # (24m0, 256)
    a4 = grouped_bn_relu(y4, slab_ref[4:5, 0:64], slab_ref[5:6, 0:64],
                         64, 4, float(96 * m0))
    a4 = a4.astype(jnp.bfloat16)

    # ---- block 5: (1,1,12)/(1,1,12) deconv, block-diagonal over the 4 H-tap
    #      groups; per-track BN via 0/1 column masks; lane-dense 256-col store -
    cp5.wait()
    y5 = jnp.dot(a4, w5_buf[...], preferred_element_type=jnp.float32)   # (24m0, 256)
    s1 = jnp.sum(y5, axis=0, keepdims=True)
    s2 = jnp.sum(y5 * y5, axis=0, keepdims=True)
    inv = 1.0 / float(48 * 24 * m0)          # 48 real columns per track per row
    mean_c = jnp.zeros_like(s1)
    rstd_c = jnp.zeros_like(s1)
    for t in range(N_TRACKS):
        msk = slab_ref[8 + t:9 + t, :]                        # (1, 256) 0/1 mask
        mu = jnp.sum(s1 * msk, axis=1, keepdims=True) * inv   # (1, 1)
        e2 = jnp.sum(s2 * msk, axis=1, keepdims=True) * inv
        rs = jax.lax.rsqrt(e2 - mu * mu + BN_EPS)
        mean_c = mean_c + mu * msk
        rstd_c = rstd_c + rs * msk
    scale_c = slab_ref[6:7, :] * rstd_c      # per-column gamma5 (0 on pad columns)
    shift_c = slab_ref[7:8, :] - mean_c * scale_c
    o_ref[...] = jnp.maximum(y5 * scale_c + shift_c, 0.0)


# ---------------------------------------------------------------------------
# Parameter init (torch layout) + packing into the fused kernel layout
# ---------------------------------------------------------------------------
def init_generator_params(key):
    """Draw torch-layout ConvTranspose3d / BatchNorm3d parameters."""
    def conv_t(k, cin, cout, kernel):
        kw_, kb_ = jax.random.split(k)
        fan = cin * kernel[0] * kernel[1] * kernel[2]
        bound = 1.0 / float(fan) ** 0.5
        w = jax.random.uniform(kw_, (cin, cout) + tuple(kernel), jnp.float32,
                               -bound, bound)
        b = jax.random.uniform(kb_, (cout,), jnp.float32, -bound, bound)
        return w, b

    ks = jax.random.split(key, 4 + 2 * N_TRACKS)
    tp = {}
    tp["w0"], tp["b0"] = conv_t(ks[0], LATENT_DIM, 256, (4, 1, 1))
    tp["w1"], tp["b1"] = conv_t(ks[1], 256, 128, (1, 4, 1))
    tp["w2"], tp["b2"] = conv_t(ks[2], 128, 64, (1, 1, 4))
    tp["w3"], tp["b3"] = conv_t(ks[3], 64, 32, (1, 1, 3))
    tp["w4"], tp["b4"], tp["w5"], tp["b5"] = [], [], [], []
    for t in range(N_TRACKS):
        w, b = conv_t(ks[4 + t], 32, 16, (1, 4, 1))
        tp["w4"].append(w)
        tp["b4"].append(b)
        w, b = conv_t(ks[4 + N_TRACKS + t], 16, 1, (1, 1, 12))
        tp["w5"].append(w)
        tp["b5"].append(b)
    # BatchNorm affine params (PyTorch default init: gamma=1, beta=0).
    tp["g0"], tp["be0"] = jnp.ones(256), jnp.zeros(256)
    tp["g1"], tp["be1"] = jnp.ones(128), jnp.zeros(128)
    tp["g2"], tp["be2"] = jnp.ones(64), jnp.zeros(64)
    tp["g3"], tp["be3"] = jnp.ones(32), jnp.zeros(32)
    tp["g4"] = [jnp.ones(16) for _ in range(N_TRACKS)]
    tp["be4"] = [jnp.zeros(16) for _ in range(N_TRACKS)]
    tp["g5"] = [jnp.ones(1) for _ in range(N_TRACKS)]
    tp["be5"] = [jnp.zeros(1) for _ in range(N_TRACKS)]
    return tp


def pack_generator_params(tp):
    """Pack torch-layout params into the fused, MXU/lane-friendly kernel layout.

    Conv biases are dropped on purpose: a per-channel constant added before
    training-mode BatchNorm (batch statistics) is cancelled exactly by the mean
    subtraction.  (Eval-mode BN with running stats would need them back.)
    """
    f32 = jnp.float32

    # block 0: (32,256,4,1,1) -> (128,256), rows (kd, cin) to match the
    # block-diagonal latent built in the wrapper.
    w0 = jnp.transpose(tp["w0"][:, :, :, 0, 0], (2, 0, 1)).reshape(4 * LATENT_DIM, 256)

    # block 1: (256,128,1,4,1) -> (256,512), cols (kh, cout).
    w1f = jnp.transpose(tp["w1"][:, :, 0, :, 0], (0, 2, 1)).reshape(256, 512)

    # block 2: (128,64,1,1,4) -> (128,256), cols (kw, cout).
    w2f = jnp.transpose(tp["w2"][:, :, 0, 0, :], (0, 2, 1)).reshape(128, 256)

    # block 3: kernel (1,1,3) stride 1 -> banded (256,192) matrix that folds the
    # overlap-add: rows (w_in, cin), cols (w_out, cout), band k = w_out - w_in.
    w3 = tp["w3"][:, :, 0, 0, :]                         # (64, 32, 3)
    w3band = jnp.zeros((4 * 64, 6 * 32), f32)
    for w_in in range(4):
        for k in range(3):
            w_out = w_in + k
            w3band = w3band.at[w_in * 64:(w_in + 1) * 64,
                               w_out * 32:(w_out + 1) * 32].set(w3[:, :, k])

    # block 4: 3 tracks fused; cols = 4 groups of 64 = (kh tap | track, c16, 16 pad).
    w4f = jnp.zeros((32, 256), f32)
    for t in range(N_TRACKS):
        wt = tp["w4"][t][:, :, 0, :, 0]                  # (32, 16, 4)
        for h4 in range(4):
            c0 = 64 * h4 + 16 * t
            w4f = w4f.at[:, c0:c0 + 16].set(wt[:, :, h4])

    # block 5: block-diagonal over the 4 kh-tap groups; per-track 16 -> 12 kw
    # columns, zero padded to 64 per group (lane-dense output).
    w5big = jnp.zeros((256, 256), f32)
    for t in range(N_TRACKS):
        wt = tp["w5"][t][:, 0, 0, 0, :]                  # (16, 12)
        for h4 in range(4):
            r0 = 64 * h4 + 16 * t
            c0 = 64 * h4 + 12 * t
            w5big = w5big.at[r0:r0 + 16, c0:c0 + 12].set(wt)

    # One (16,256) f32 slab: every BN gamma/beta plus the per-track 0/1 output
    # column masks -> a single small DMA instead of 13 tiny ones.
    slab = jnp.zeros((16, 256), f32)
    slab = slab.at[0, :].set(tp["g0"])
    slab = slab.at[1, :].set(tp["be0"])
    slab = slab.at[2, 0:128].set(tp["g1"])
    slab = slab.at[3, 0:128].set(tp["be1"])
    slab = slab.at[2, 128:192].set(tp["g2"])
    slab = slab.at[3, 128:192].set(tp["be2"])
    slab = slab.at[2, 192:224].set(tp["g3"])
    slab = slab.at[3, 192:224].set(tp["be3"])
    slab = slab.at[4, 0:48].set(jnp.concatenate(tp["g4"]))
    slab = slab.at[5, 0:48].set(jnp.concatenate(tp["be4"]))
    col = jnp.arange(256)
    within = col % 64
    track = jnp.clip(within // 12, 0, N_TRACKS - 1)
    valid = within < 36
    g5 = jnp.concatenate(tp["g5"])
    b5 = jnp.concatenate(tp["be5"])
    slab = slab.at[6, :].set(jnp.where(valid, g5[track], 0.0))
    slab = slab.at[7, :].set(jnp.where(valid, b5[track], 0.0))
    for t in range(N_TRACKS):
        slab = slab.at[8 + t, :].set(jnp.where(valid & (track == t), 1.0, 0.0))

    bf16 = jnp.bfloat16
    return (w0.astype(bf16), w1f.astype(bf16), w2f.astype(bf16),
            w3band.astype(bf16), w4f.astype(bf16), w5big.astype(bf16), slab)


# ---------------------------------------------------------------------------
# Generator forward: one pallas_call + tiny input/output layout glue in XLA.
# ---------------------------------------------------------------------------
@jax.jit
def generator_forward(params, z):
    w0, w1f, w2f, w3band, w4f, w5big, slab = params
    batch = z.shape[0]
    m0 = N_MEASURES * batch          # rows (d, b); even batch keeps this 8-aligned

    # torch: x.view(-1, LATENT_DIM, 1, 1, 1).  Expanded block-diagonally over the
    # 4 kd taps of convtrans0 so the whole first deconv is one MXU matmul.
    eye = jnp.eye(N_MEASURES, dtype=jnp.float32)
    x0 = (eye[:, None, :, None] * z[None, :, None, :]).reshape(
        m0, N_MEASURES * LATENT_DIM).astype(jnp.bfloat16)

    rows = 24 * m0                   # (w3, h, d, b) = 6 * 4 * 4 * B
    flops = 2 * (m0 * 128 * 256 + m0 * 256 * 512 + 4 * m0 * 128 * 256
                 + 4 * m0 * 256 * 192 + 24 * m0 * 32 * 256 + 24 * m0 * 256 * 256)
    bytes_accessed = (x0.size * 2 + slab.size * 4 + rows * 256 * 4
                      + sum(w.size * 2 for w in (w0, w1f, w2f, w3band, w4f, w5big)))

    vmem = pltpu.MemorySpace.VMEM
    out_flat = pl.pallas_call(
        _generator_kernel,
        out_shape=jax.ShapeDtypeStruct((rows, 256), jnp.float32),
        in_specs=[
            pl.BlockSpec(memory_space=vmem),    # x0
            pl.BlockSpec(memory_space=vmem),    # w0
            pl.BlockSpec(memory_space=vmem),    # w1f
            pl.BlockSpec(memory_space=vmem),    # w2f
            pl.BlockSpec(memory_space=pl.ANY),  # w3band (prefetched in-kernel)
            pl.BlockSpec(memory_space=pl.ANY),  # w4f    (prefetched in-kernel)
            pl.BlockSpec(memory_space=pl.ANY),  # w5big  (prefetched in-kernel)
            pl.BlockSpec(memory_space=vmem),    # slab
        ],
        out_specs=pl.BlockSpec(memory_space=vmem),
        scratch_shapes=[
            pltpu.VMEM((256, 192), jnp.bfloat16),
            pltpu.VMEM((32, 256), jnp.bfloat16),
            pltpu.VMEM((256, 256), jnp.bfloat16),
            pltpu.SemaphoreType.DMA((3,)),
        ],
        cost_estimate=pl.CostEstimate(flops=flops, transcendentals=600,
                                      bytes_accessed=bytes_accessed),
    )(x0, w0, w1f, w2f, w3band, w4f, w5big, slab)

    # Un-permute rows (w3, h, d, b) x cols (4 groups of 64 = (h4 | track, kw, pad))
    # to the torch layout (B, N_TRACKS, D*H, W) = (B, 3, 64, 72).
    o = out_flat.reshape(6, 4, 4, batch, 4, 64)[..., :36]
    o = o.reshape(6, 4, 4, batch, 4, N_TRACKS, 12)
    o = jnp.transpose(o, (3, 5, 2, 1, 4, 0, 6))      # (b, t, d, h, h4, w3, kw)
    return o.reshape(batch, N_TRACKS, N_MEASURES * MEASURE_RESOLUTION, N_PITCHES)


# ---------------------------------------------------------------------------
# Pure-JAX f32 reference of the PyTorch module (correctness oracle)
# ---------------------------------------------------------------------------
def _deconv_expand(x, w, b):
    # ConvTranspose3d with kernel == stride ("pixel expansion").
    n, _, d, h, wd = x.shape
    co = w.shape[1]
    kd, kh, kw = w.shape[2], w.shape[3], w.shape[4]
    y = jnp.einsum("ncdhw,coijk->nodihjwk", x, w)
    y = y.reshape(n, co, d * kd, h * kh, wd * kw)
    return y + b[None, :, None, None, None]


def _deconv_w3(x, w, b):
    # ConvTranspose3d, kernel (1,1,3), stride 1: overlap-add along W.
    n, _, d, h, wd = x.shape
    co = w.shape[1]
    y = jnp.zeros((n, co, d, h, wd + 2), jnp.float32)
    for k in range(3):
        y = y.at[..., k:k + wd].add(
            jnp.einsum("ncdhw,co->nodhw", x, w[:, :, 0, 0, k]))
    return y + b[None, :, None, None, None]


def _bn_relu_ref(x, gamma, beta):
    mean = jnp.mean(x, axis=(0, 2, 3, 4), keepdims=True)
    var = jnp.mean((x - mean) ** 2, axis=(0, 2, 3, 4), keepdims=True)
    y = (x - mean) * jax.lax.rsqrt(var + BN_EPS)
    y = y * gamma[None, :, None, None, None] + beta[None, :, None, None, None]
    return jnp.maximum(y, 0.0)


@jax.jit
def generator_reference(tp, z):
    x = z.reshape(-1, LATENT_DIM, 1, 1, 1)
    x = _bn_relu_ref(_deconv_expand(x, tp["w0"], tp["b0"]), tp["g0"], tp["be0"])
    x = _bn_relu_ref(_deconv_expand(x, tp["w1"], tp["b1"]), tp["g1"], tp["be1"])
    x = _bn_relu_ref(_deconv_expand(x, tp["w2"], tp["b2"]), tp["g2"], tp["be2"])
    x = _bn_relu_ref(_deconv_w3(x, tp["w3"], tp["b3"]), tp["g3"], tp["be3"])
    tracks = []
    for t in range(N_TRACKS):
        xt = _bn_relu_ref(_deconv_expand(x, tp["w4"][t], tp["b4"][t]),
                          tp["g4"][t], tp["be4"][t])
        xt = _bn_relu_ref(_deconv_expand(xt, tp["w5"][t], tp["b5"][t]),
                          tp["g5"][t], tp["be5"][t])
        tracks.append(xt)
    x = jnp.concatenate(tracks, axis=1)          # (B, 3, 4, 16, 72)
    return x.reshape(-1, N_TRACKS, N_MEASURES * MEASURE_RESOLUTION, N_PITCHES)


# ---------------------------------------------------------------------------
if __name__ == "__main__":
    key = jax.random.PRNGKey(0)
    pkey, zkey = jax.random.split(key)

    torch_params = init_generator_params(pkey)
    params = pack_generator_params(torch_params)

    batch = 2                            # even batch keeps 4*B a multiple of 8
    z = jax.random.normal(zkey, (batch, LATENT_DIM), jnp.float32)

    out = jax.block_until_ready(generator_forward(params, z))

    expected = (batch, N_TRACKS, N_MEASURES * MEASURE_RESOLUTION, N_PITCHES)
    assert out.shape == expected, (out.shape, expected)
    assert bool(jnp.all(jnp.isfinite(out)))
    assert bool(jnp.all(out >= 0.0))     # ReLU output

    # Reference check: catches any permutation / weight-packing / BN-count bug.
    # Tolerance covers the kernel's bf16 matmul inputs vs. the f32 reference
    # (and empirically validates the conv-bias-cancellation under training BN).
    ref = jax.block_until_ready(generator_reference(torch_params, z))
    err_max = float(jnp.max(jnp.abs(out - ref)))
    err_rel = float(jnp.sqrt(jnp.sum((out - ref) ** 2) / (jnp.sum(ref ** 2) + 1e-12)))
    assert err_max < 0.35 and err_rel < 0.12, (err_max, err_rel)

    print("KERNEL_OK")
</pallas_src>

<mosaic_0001>
module attributes {stable_mosaic.version = 11 : i64} {
  func.func @_generator_kernel(%arg0: memref<8x128xbf16, #tpu.memory_space<vmem>>, %arg1: memref<128x256xbf16, #tpu.memory_space<vmem>>, %arg2: memref<256x512xbf16, #tpu.memory_space<vmem>>, %arg3: memref<128x256xbf16, #tpu.memory_space<vmem>>, %arg4: memref<256x192xbf16, #tpu.memory_space<any>>, %arg5: memref<32x256xbf16, #tpu.memory_space<any>>, %arg6: memref<256x256xbf16, #tpu.memory_space<any>>, %arg7: memref<16x256xf32, #tpu.memory_space<vmem>>, %arg8: memref<192x256xf32, #tpu.memory_space<vmem>>, %arg9: memref<256x192xbf16, #tpu.memory_space<vmem>>, %arg10: memref<32x256xbf16, #tpu.memory_space<vmem>>, %arg11: memref<256x256xbf16, #tpu.memory_space<vmem>>, %arg12: memref<3x!tpu.dma_semaphore, #tpu.memory_space<semaphore_mem>>) attributes {dimension_semantics = [], scalar_prefetch = 0 : i64, scratch_operands = 4 : i64, tpu.core_type = #tpu.core_type<tc>} {
    %c0_i32 = arith.constant 0 : i32
    %0 = tpu.memref_slice %arg12[%c0_i32] : memref<3x!tpu.dma_semaphore, #tpu.memory_space<semaphore_mem>> -> memref<1x!tpu.dma_semaphore, #tpu.memory_space<semaphore_mem>>
    %1 = tpu.memref_squeeze %0 : memref<1x!tpu.dma_semaphore, #tpu.memory_space<semaphore_mem>> -> memref<!tpu.dma_semaphore, #tpu.memory_space<semaphore_mem>>
    tpu.enqueue_dma source(%arg4 : memref<256x192xbf16, #tpu.memory_space<any>>) target(%arg9 : memref<256x192xbf16, #tpu.memory_space<vmem>>) target_semaphore(%1 : memref<!tpu.dma_semaphore, #tpu.memory_space<semaphore_mem>>)
    %c1_i32 = arith.constant 1 : i32
    %2 = tpu.memref_slice %arg12[%c1_i32] : memref<3x!tpu.dma_semaphore, #tpu.memory_space<semaphore_mem>> -> memref<1x!tpu.dma_semaphore, #tpu.memory_space<semaphore_mem>>
    %3 = tpu.memref_squeeze %2 : memref<1x!tpu.dma_semaphore, #tpu.memory_space<semaphore_mem>> -> memref<!tpu.dma_semaphore, #tpu.memory_space<semaphore_mem>>
    tpu.enqueue_dma source(%arg5 : memref<32x256xbf16, #tpu.memory_space<any>>) target(%arg10 : memref<32x256xbf16, #tpu.memory_space<vmem>>) target_semaphore(%3 : memref<!tpu.dma_semaphore, #tpu.memory_space<semaphore_mem>>)
    %c2_i32 = arith.constant 2 : i32
    %4 = tpu.memref_slice %arg12[%c2_i32] : memref<3x!tpu.dma_semaphore, #tpu.memory_space<semaphore_mem>> -> memref<1x!tpu.dma_semaphore, #tpu.memory_space<semaphore_mem>>
    %5 = tpu.memref_squeeze %4 : memref<1x!tpu.dma_semaphore, #tpu.memory_space<semaphore_mem>> -> memref<!tpu.dma_semaphore, #tpu.memory_space<semaphore_mem>>
    tpu.enqueue_dma source(%arg6 : memref<256x256xbf16, #tpu.memory_space<any>>) target(%arg11 : memref<256x256xbf16, #tpu.memory_space<vmem>>) target_semaphore(%5 : memref<!tpu.dma_semaphore, #tpu.memory_space<semaphore_mem>>)
    %c0 = arith.constant 0 : index
    %c0_0 = arith.constant 0 : index
    %6 = vector.load %arg0[%c0, %c0_0] : memref<8x128xbf16, #tpu.memory_space<vmem>>, vector<8x128xbf16>
    %c0_1 = arith.constant 0 : index
    %c0_2 = arith.constant 0 : index
    %7 = vector.load %arg1[%c0_1, %c0_2] : memref<128x256xbf16, #tpu.memory_space<vmem>>, vector<128x256xbf16>
    %cst = arith.constant dense<0.000000e+00> : vector<8x256xf32>
    %8 = tpu.matmul %6, %7, %cst {dimension_numbers = #tpu.dot_dimension_numbers<[1], [0], [0], [1], [0, 0, 1, 1], [], []>} : vector<8x128xbf16>, vector<128x256xbf16>, vector<8x256xf32> -> vector<8x256xf32>
    %c0_3 = arith.constant 0 : index
    %c0_4 = arith.constant 0 : index
    %9 = vector.load %arg7[%c0_3, %c0_4] : memref<16x256xf32, #tpu.memory_space<vmem>>, vector<1x256xf32>
    %c1 = arith.constant 1 : index
    %c0_5 = arith.constant 0 : index
    %10 = vector.load %arg7[%c1, %c0_5] : memref<16x256xf32, #tpu.memory_space<vmem>>, vector<1x256xf32>
    %cst_6 = arith.constant dense<0.000000e+00> : vector<256xf32>
    %11 = vector.multi_reduction <add>, %8, %cst_6 [0] : vector<8x256xf32> to vector<256xf32>
    %12 = vector.shape_cast %11 : vector<256xf32> to vector<1x256xf32>
    %13 = arith.mulf %8, %8 : vector<8x256xf32>
    %cst_7 = arith.constant dense<0.000000e+00> : vector<256xf32>
    %14 = vector.multi_reduction <add>, %13, %cst_7 [0] : vector<8x256xf32> to vector<256xf32>
    %15 = vector.shape_cast %14 : vector<256xf32> to vector<1x256xf32>
    %cst_8 = arith.constant 1.250000e-01 : f32
    %16 = vector.broadcast %cst_8 : f32 to vector<1x256xf32>
    %17 = arith.mulf %12, %16 : vector<1x256xf32>
    %cst_9 = arith.constant 1.250000e-01 : f32
    %18 = vector.broadcast %cst_9 : f32 to vector<1x256xf32>
    %19 = arith.mulf %15, %18 : vector<1x256xf32>
    %20 = arith.mulf %17, %17 : vector<1x256xf32>
    %21 = arith.subf %19, %20 : vector<1x256xf32>
    %cst_10 = arith.constant 9.99999974E-6 : f32
    %22 = vector.broadcast %cst_10 : f32 to vector<1x256xf32>
    %23 = arith.addf %21, %22 : vector<1x256xf32>
    %24 = math.rsqrt %23 : vector<1x256xf32>
    %25 = arith.mulf %9, %24 : vector<1x256xf32>
    %26 = arith.mulf %17, %25 : vector<1x256xf32>
    %27 = arith.subf %10, %26 : vector<1x256xf32>
    %28 = vector.broadcast %25 : vector<1x256xf32> to vector<8x256xf32>
    %29 = arith.mulf %8, %28 : vector<8x256xf32>
    %30 = vector.broadcast %27 : vector<1x256xf32> to vector<8x256xf32>
    %31 = arith.addf %29, %30 : vector<8x256xf32>
    %cst_11 = arith.constant 0.000000e+00 : f32
    %32 = vector.broadcast %cst_11 : f32 to vector<8x256xf32>
    %33 = arith.maximumf %31, %32 : vector<8x256xf32>
    %34 = arith.truncf %33 : vector<8x256xf32> to vector<8x256xbf16>
    %c0_12 = arith.constant 0 : index
    %c0_13 = arith.constant 0 : index
    %35 = vector.load %arg2[%c0_12, %c0_13] : memref<256x512xbf16, #tpu.memory_space<vmem>>, vector<256x512xbf16>
    %cst_14 = arith.constant dense<0.000000e+00> : vector<8x512xf32>
    %36 = tpu.matmul %34, %35, %cst_14 {dimension_numbers = #tpu.dot_dimension_numbers<[1], [0], [0], [1], [0, 0, 1, 1], [], []>} : vector<8x256xbf16>, vector<256x512xbf16>, vector<8x512xf32> -> vector<8x512xf32>
    %37 = vector.extract_strided_slice %36 {offsets = [0, 0], sizes = [8, 128], strides = [1, 1]} : vector<8x512xf32> to vector<8x128xf32>
    %38 = vector.extract_strided_slice %36 {offsets = [0, 128], sizes = [8, 128], strides = [1, 1]} : vector<8x512xf32> to vector<8x128xf32>
    %39 = vector.extract_strided_slice %36 {offsets = [0, 256], sizes = [8, 128], strides = [1, 1]} : vector<8x512xf32> to vector<8x128xf32>
    %40 = vector.extract_strided_slice %36 {offsets = [0, 384], sizes = [8, 128], strides = [1, 1]} : vector<8x512xf32> to vector<8x128xf32>
    %41 = tpu.concatenate %37, %38, %39, %40 in 0 : vector<8x128xf32>, vector<8x128xf32>, vector<8x128xf32>, vector<8x128xf32> -> vector<32x128xf32>
    %c2 = arith.constant 2 : index
    %c0_15 = arith.constant 0 : index
    %42 = vector.load %arg7[%c2, %c0_15] : memref<16x256xf32, #tpu.memory_space<vmem>>, vector<1x128xf32>
    %c3 = arith.constant 3 : index
    %c0_16 = arith.constant 0 : index
    %43 = vector.load %arg7[%c3, %c0_16] : memref<16x256xf32, #tpu.memory_space<vmem>>, vector<1x128xf32>
    %cst_17 = arith.constant dense<0.000000e+00> : vector<128xf32>
    %44 = vector.multi_reduction <add>, %41, %cst_17 [0] : vector<32x128xf32> to vector<128xf32>
    %45 = vector.shape_cast %44 : vector<128xf32> to vector<1x128xf32>
    %46 = arith.mulf %41, %41 : vector<32x128xf32>
    %cst_18 = arith.constant dense<0.000000e+00> : vector<128xf32>
    %47 = vector.multi_reduction <add>, %46, %cst_18 [0] : vector<32x128xf32> to vector<128xf32>
    %48 = vector.shape_cast %47 : vector<128xf32> to vector<1x128xf32>
    %cst_19 = arith.constant 3.125000e-02 : f32
    %49 = vector.broadcast %cst_19 : f32 to vector<1x128xf32>
    %50 = arith.mulf %45, %49 : vector<1x128xf32>
    %cst_20 = arith.constant 3.125000e-02 : f32
    %51 = vector.broadcast %cst_20 : f32 to vector<1x128xf32>
    %52 = arith.mulf %48, %51 : vector<1x128xf32>
    %53 = arith.mulf %50, %50 : vector<1x128xf32>
    %54 = arith.subf %52, %53 : vector<1x128xf32>
    %cst_21 = arith.constant 9.99999974E-6 : f32
    %55 = vector.broadcast %cst_21 : f32 to vector<1x128xf32>
    %56 = arith.addf %54, %55 : vector<1x128xf32>
    %57 = math.rsqrt %56 : vector<1x128xf32>
    %58 = arith.mulf %42, %57 : vector<1x128xf32>
    %59 = arith.mulf %50, %58 : vector<1x128xf32>
    %60 = arith.subf %43, %59 : vector<1x128xf32>
    %61 = vector.broadcast %58 : vector<1x128xf32> to vector<32x128xf32>
    %62 = arith.mulf %41, %61 : vector<32x128xf32>
    %63 = vector.broadcast %60 : vector<1x128xf32> to vector<32x128xf32>
    %64 = arith.addf %62, %63 : vector<32x128xf32>
    %cst_22 = arith.constant 0.000000e+00 : f32
    %65 = vector.broadcast %cst_22 : f32 to vector<32x128xf32>
    %66 = arith.maximumf %64, %65 : vector<32x128xf32>
    %67 = arith.truncf %66 : vector<32x128xf32> to vector<32x128xbf16>
    %c0_23 = arith.constant 0 : index
    %c0_24 = arith.constant 0 : index
    %68 = vector.load %arg3[%c0_23, %c0_24] : memref<128x256xbf16, #tpu.memory_space<vmem>>, vector<128x256xbf16>
    %cst_25 = arith.constant dense<0.000000e+00> : vector<32x256xf32>
    %69 = tpu.matmul %67, %68, %cst_25 {dimension_numbers = #tpu.dot_dimension_numbers<[1], [0], [0], [1], [0, 0, 1, 1], [], []>} : vector<32x128xbf16>, vector<128x256xbf16>, vector<32x256xf32> -> vector<32x256xf32>
    %c2_26 = arith.constant 2 : index
    %c128 = arith.constant 128 : index
    %70 = vector.load %arg7[%c2_26, %c128] : memref<16x256xf32, #tpu.memory_space<vmem>>, vector<1x64xf32>
    %c3_27 = arith.constant 3 : index
    %c128_28 = arith.constant 128 : index
    %71 = vector.load %arg7[%c3_27, %c128_28] : memref<16x256xf32, #tpu.memory_space<vmem>>, vector<1x64xf32>
    %cst_29 = arith.constant dense<0.000000e+00> : vector<256xf32>
    %72 = vector.multi_reduction <add>, %69, %cst_29 [0] : vector<32x256xf32> to vector<256xf32>
    %73 = vector.shape_cast %72 : vector<256xf32> to vector<1x256xf32>
    %74 = arith.mulf %69, %69 : vector<32x256xf32>
    %cst_30 = arith.constant dense<0.000000e+00> : vector<256xf32>
    %75 = vector.multi_reduction <add>, %74, %cst_30 [0] : vector<32x256xf32> to vector<256xf32>
    %76 = vector.shape_cast %75 : vector<256xf32> to vector<1x256xf32>
    %77 = vector.extract_strided_slice %73 {offsets = [0, 0], sizes = [1, 64], strides = [1, 1]} : vector<1x256xf32> to vector<1x64xf32>
    %78 = vector.extract_strided_slice %76 {offsets = [0, 0], sizes = [1, 64], strides = [1, 1]} : vector<1x256xf32> to vector<1x64xf32>
    %79 = vector.extract_strided_slice %73 {offsets = [0, 64], sizes = [1, 64], strides = [1, 1]} : vector<1x256xf32> to vector<1x64xf32>
    %80 = arith.addf %77, %79 : vector<1x64xf32>
    %81 = vector.extract_strided_slice %76 {offsets = [0, 64], sizes = [1, 64], strides = [1, 1]} : vector<1x256xf32> to vector<1x64xf32>
    %82 = arith.addf %78, %81 : vector<1x64xf32>
    %83 = vector.extract_strided_slice %73 {offsets = [0, 128], sizes = [1, 64], strides = [1, 1]} : vector<1x256xf32> to vector<1x64xf32>
    %84 = arith.addf %80, %83 : vector<1x64xf32>
    %85 = vector.extract_strided_slice %76 {offsets = [0, 128], sizes = [1, 64], strides = [1, 1]} : vector<1x256xf32> to vector<1x64xf32>
    %86 = arith.addf %82, %85 : vector<1x64xf32>
    %87 = vector.extract_strided_slice %73 {offsets = [0, 192], sizes = [1, 64], strides = [1, 1]} : vector<1x256xf32> to vector<1x64xf32>
    %88 = arith.addf %84, %87 : vector<1x64xf32>
    %89 = vector.extract_strided_slice %76 {offsets = [0, 192], sizes = [1, 64], strides = [1, 1]} : vector<1x256xf32> to vector<1x64xf32>
    %90 = arith.addf %86, %89 : vector<1x64xf32>
    %cst_31 = arith.constant 7.812500e-03 : f32
    %91 = vector.broadcast %cst_31 : f32 to vector<1x64xf32>
    %92 = arith.mulf %88, %91 : vector<1x64xf32>
    %cst_32 = arith.constant 7.812500e-03 : f32
    %93 = vector.broadcast %cst_32 : f32 to vector<1x64xf32>
    %94 = arith.mulf %90, %93 : vector<1x64xf32>
    %95 = arith.mulf %92, %92 : vector<1x64xf32>
    %96 = arith.subf %94, %95 : vector<1x64xf32>
    %cst_33 = arith.constant 9.99999974E-6 : f32
    %97 = vector.broadcast %cst_33 : f32 to vector<1x64xf32>
    %98 = arith.addf %96, %97 : vector<1x64xf32>
    %99 = math.rsqrt %98 : vector<1x64xf32>
    %100 = arith.mulf %70, %99 : vector<1x64xf32>
    %101 = arith.mulf %92, %100 : vector<1x64xf32>
    %102 = arith.subf %71, %101 : vector<1x64xf32>
    %103 = tpu.concatenate %100, %100, %100, %100 in 1 : vector<1x64xf32>, vector<1x64xf32>, vector<1x64xf32>, vector<1x64xf32> -> vector<1x256xf32>
    %104 = tpu.concatenate %102, %102, %102, %102 in 1 : vector<1x64xf32>, vector<1x64xf32>, vector<1x64xf32>, vector<1x64xf32> -> vector<1x256xf32>
    %105 = vector.broadcast %103 : vector<1x256xf32> to vector<32x256xf32>
    %106 = arith.mulf %69, %105 : vector<32x256xf32>
    %107 = vector.broadcast %104 : vector<1x256xf32> to vector<32x256xf32>
    %108 = arith.addf %106, %107 : vector<32x256xf32>
    %cst_34 = arith.constant 0.000000e+00 : f32
    %109 = vector.broadcast %cst_34 : f32 to vector<32x256xf32>
    %110 = arith.maximumf %108, %109 : vector<32x256xf32>
    %111 = arith.truncf %110 : vector<32x256xf32> to vector<32x256xbf16>
    %c0_i32_35 = arith.constant 0 : i32
    %112 = tpu.memref_slice %arg12[%c0_i32_35] : memref<3x!tpu.dma_semaphore, #tpu.memory_space<semaphore_mem>> -> memref<1x!tpu.dma_semaphore, #tpu.memory_space<semaphore_mem>>
    %113 = tpu.memref_squeeze %112 : memref<1x!tpu.dma_semaphore, #tpu.memory_space<semaphore_mem>> -> memref<!tpu.dma_semaphore, #tpu.memory_space<semaphore_mem>>
    tpu.wait_dma2 semaphore(%113 : memref<!tpu.dma_semaphore, #tpu.memory_space<semaphore_mem>>) src(%arg4 : memref<256x192xbf16, #tpu.memory_space<any>>) dst(%arg9 : memref<256x192xbf16, #tpu.memory_space<vmem>>)
    %c0_36 = arith.constant 0 : index
    %c0_37 = arith.constant 0 : index
    %114 = vector.load %arg9[%c0_36, %c0_37] : memref<256x192xbf16, #tpu.memory_space<vmem>>, vector<256x192xbf16>
    %cst_38 = arith.constant dense<0.000000e+00> : vector<32x192xf32>
    %115 = tpu.matmul %111, %114, %cst_38 {dimension_numbers = #tpu.dot_dimension_numbers<[1], [0], [0], [1], [0, 0, 1, 1], [], []>} : vector<32x256xbf16>, vector<256x192xbf16>, vector<32x192xf32> -> vector<32x192xf32>
    %116 = vector.extract_strided_slice %115 {offsets = [0, 0], sizes = [32, 32], strides = [1, 1]} : vector<32x192xf32> to vector<32x32xf32>
    %117 = vector.extract_strided_slice %115 {offsets = [0, 32], sizes = [32, 32], strides = [1, 1]} : vector<32x192xf32> to vector<32x32xf32>
    %118 = vector.extract_strided_slice %115 {offsets = [0, 64], sizes = [32, 32], strides = [1, 1]} : vector<32x192xf32> to vector<32x32xf32>
    %119 = vector.extract_strided_slice %115 {offsets = [0, 96], sizes = [32, 32], strides = [1, 1]} : vector<32x192xf32> to vector<32x32xf32>
    %120 = vector.extract_strided_slice %115 {offsets = [0, 128], sizes = [32, 32], strides = [1, 1]} : vector<32x192xf32> to vector<32x32xf32>
    %121 = vector.extract_strided_slice %115 {offsets = [0, 160], sizes = [32, 32], strides = [1, 1]} : vector<32x192xf32> to vector<32x32xf32>
    %122 = tpu.concatenate %116, %117, %118, %119, %120, %121 in 0 : vector<32x32xf32>, vector<32x32xf32>, vector<32x32xf32>, vector<32x32xf32>, vector<32x32xf32>, vector<32x32xf32> -> vector<192x32xf32>
    %c2_39 = arith.constant 2 : index
    %c192 = arith.constant 192 : index
    %123 = vector.load %arg7[%c2_39, %c192] : memref<16x256xf32, #tpu.memory_space<vmem>>, vector<1x32xf32>
    %c3_40 = arith.constant 3 : index
    %c192_41 = arith.constant 192 : index
    %124 = vector.load %arg7[%c3_40, %c192_41] : memref<16x256xf32, #tpu.memory_space<vmem>>, vector<1x32xf32>
    %cst_42 = arith.constant dense<0.000000e+00> : vector<32xf32>
    %125 = vector.multi_reduction <add>, %122, %cst_42 [0] : vector<192x32xf32> to vector<32xf32>
    %126 = vector.shape_cast %125 : vector<32xf32> to vector<1x32xf32>
    %127 = arith.mulf %122, %122 : vector<192x32xf32>
    %cst_43 = arith.constant dense<0.000000e+00> : vector<32xf32>
    %128 = vector.multi_reduction <add>, %127, %cst_43 [0] : vector<192x32xf32> to vector<32xf32>
    %129 = vector.shape_cast %128 : vector<32xf32> to vector<1x32xf32>
    %cst_44 = arith.constant 0.00520833349 : f32
    %130 = vector.broadcast %cst_44 : f32 to vector<1x32xf32>
    %131 = arith.mulf %126, %130 : vector<1x32xf32>
    %cst_45 = arith.constant 0.00520833349 : f32
    %132 = vector.broadcast %cst_45 : f32 to vector<1x32xf32>
    %133 = arith.mulf %129, %132 : vector<1x32xf32>
    %134 = arith.mulf %131, %131 : vector<1x32xf32>
    %135 = arith.subf %133, %134 : vector<1x32xf32>
    %cst_46 = arith.constant 9.99999974E-6 : f32
    %136 = vector.broadcast %cst_46 : f32 to vector<1x32xf32>
    %137 = arith.addf %135, %136 : vector<1x32xf32>
    %138 = math.rsqrt %137 : vector<1x32xf32>
    %139 = arith.mulf %123, %138 : vector<1x32xf32>
    %140 = arith.mulf %131, %139 : vector<1x32xf32>
    %141 = arith.subf %124, %140 : vector<1x32xf32>
    %142 = vector.broadcast %139 : vector<1x32xf32> to vector<192x32xf32>
    %143 = arith.mulf %122, %142 : vector<192x32xf32>
    %144 = vector.broadcast %141 : vector<1x32xf32> to vector<192x32xf32>
    %145 = arith.addf %143, %144 : vector<192x32xf32>
    %cst_47 = arith.constant 0.000000e+00 : f32
    %146 = vector.broadcast %cst_47 : f32 to vector<192x32xf32>
    %147 = arith.maximumf %145, %146 : vector<192x32xf32>
    %148 = arith.truncf %147 : vector<192x32xf32> to vector<192x32xbf16>
    %c1_i32_48 = arith.constant 1 : i32
    %149 = tpu.memref_slice %arg12[%c1_i32_48] : memref<3x!tpu.dma_semaphore, #tpu.memory_space<semaphore_mem>> -> memref<1x!tpu.dma_semaphore, #tpu.memory_space<semaphore_mem>>
    %150 = tpu.memref_squeeze %149 : memref<1x!tpu.dma_semaphore, #tpu.memory_space<semaphore_mem>> -> memref<!tpu.dma_semaphore, #tpu.memory_space<semaphore_mem>>
    tpu.wait_dma2 semaphore(%150 : memref<!tpu.dma_semaphore, #tpu.memory_space<semaphore_mem>>) src(%arg5 : memref<32x256xbf16, #tpu.memory_space<any>>) dst(%arg10 : memref<32x256xbf16, #tpu.memory_space<vmem>>)
    %c0_49 = arith.constant 0 : index
    %c0_50 = arith.constant 0 : index
    %151 = vector.load %arg10[%c0_49, %c0_50] : memref<32x256xbf16, #tpu.memory_space<vmem>>, vector<32x256xbf16>
    %cst_51 = arith.constant dense<0.000000e+00> : vector<192x256xf32>
    %152 = tpu.matmul %148, %151, %cst_51 {dimension_numbers = #tpu.dot_dimension_numbers<[1], [0], [0], [1], [0, 0, 1, 1], [], []>} : vector<192x32xbf16>, vector<32x256xbf16>, vector<192x256xf32> -> vector<192x256xf32>
    %c4 = arith.constant 4 : index
    %c0_52 = arith.constant 0 : index
    %153 = vector.load %arg7[%c4, %c0_52] : memref<16x256xf32, #tpu.memory_space<vmem>>, vector<1x64xf32>
    %c5 = arith.constant 5 : index
    %c0_53 = arith.constant 0 : index
    %154 = vector.load %arg7[%c5, %c0_53] : memref<16x256xf32, #tpu.memory_space<vmem>>, vector<1x64xf32>
    %cst_54 = arith.constant dense<0.000000e+00> : vector<256xf32>
    %155 = vector.multi_reduction <add>, %152, %cst_54 [0] : vector<192x256xf32> to vector<256xf32>
    %156 = vector.shape_cast %155 : vector<256xf32> to vector<1x256xf32>
    %157 = arith.mulf %152, %152 : vector<192x256xf32>
    %cst_55 = arith.constant dense<0.000000e+00> : vector<256xf32>
    %158 = vector.multi_reduction <add>, %157, %cst_55 [0] : vector<192x256xf32> to vector<256xf32>
    %159 = vector.shape_cast %158 : vector<256xf32> to vector<1x256xf32>
    %160 = vector.extract_strided_slice %156 {offsets = [0, 0], sizes = [1, 64], strides = [1, 1]} : vector<1x256xf32> to vector<1x64xf32>
    %161 = vector.extract_strided_slice %159 {offsets = [0, 0], sizes = [1, 64], strides = [1, 1]} : vector<1x256xf32> to vector<1x64xf32>
    %162 = vector.extract_strided_slice %156 {offsets = [0, 64], sizes = [1, 64], strides = [1, 1]} : vector<1x256xf32> to vector<1x64xf32>
    %163 = arith.addf %160, %162 : vector<1x64xf32>
    %164 = vector.extract_strided_slice %159 {offsets = [0, 64], sizes = [1, 64], strides = [1, 1]} : vector<1x256xf32> to vector<1x64xf32>
    %165 = arith.addf %161, %164 : vector<1x64xf32>
    %166 = vector.extract_strided_slice %156 {offsets = [0, 128], sizes = [1, 64], strides = [1, 1]} : vector<1x256xf32> to vector<1x64xf32>
    %167 = arith.addf %163, %166 : vector<1x64xf32>
    %168 = vector.extract_strided_slice %159 {offsets = [0, 128], sizes = [1, 64], strides = [1, 1]} : vector<1x256xf32> to vector<1x64xf32>
    %169 = arith.addf %165, %168 : vector<1x64xf32>
    %170 = vector.extract_strided_slice %156 {offsets = [0, 192], sizes = [1, 64], strides = [1, 1]} : vector<1x256xf32> to vector<1x64xf32>
    %171 = arith.addf %167, %170 : vector<1x64xf32>
    %172 = vector.extract_strided_slice %159 {offsets = [0, 192], sizes = [1, 64], strides = [1, 1]} : vector<1x256xf32> to vector<1x64xf32>
    %173 = arith.addf %169, %172 : vector<1x64xf32>
    %cst_56 = arith.constant 0.00130208337 : f32
    %174 = vector.broadcast %cst_56 : f32 to vector<1x64xf32>
    %175 = arith.mulf %171, %174 : vector<1x64xf32>
    %cst_57 = arith.constant 0.00130208337 : f32
    %176 = vector.broadcast %cst_57 : f32 to vector<1x64xf32>
    %177 = arith.mulf %173, %176 : vector<1x64xf32>
    %178 = arith.mulf %175, %175 : vector<1x64xf32>
    %179 = arith.subf %177, %178 : vector<1x64xf32>
    %cst_58 = arith.constant 9.99999974E-6 : f32
    %180 = vector.broadcast %cst_58 : f32 to vector<1x64xf32>
    %181 = arith.addf %179, %180 : vector<1x64xf32>
    %182 = math.rsqrt %181 : vector<1x64xf32>
    %183 = arith.mulf %153, %182 : vector<1x64xf32>
    %184 = arith.mulf %175, %183 : vector<1x64xf32>
    %185 = arith.subf %154, %184 : vector<1x64xf32>
    %186 = tpu.concatenate %183, %183, %183, %183 in 1 : vector<1x64xf32>, vector<1x64xf32>, vector<1x64xf32>, vector<1x64xf32> -> vector<1x256xf32>
    %187 = tpu.concatenate %185, %185, %185, %185 in 1 : vector<1x64xf32>, vector<1x64xf32>, vector<1x64xf32>, vector<1x64xf32> -> vector<1x256xf32>
    %188 = vector.broadcast %186 : vector<1x256xf32> to vector<192x256xf32>
    %189 = arith.mulf %152, %188 : vector<192x256xf32>
    %190 = vector.broadcast %187 : vector<1x256xf32> to vector<192x256xf32>
    %191 = arith.addf %189, %190 : vector<192x256xf32>
    %cst_59 = arith.constant 0.000000e+00 : f32
    %192 = vector.broadcast %cst_59 : f32 to vector<192x256xf32>
    %193 = arith.maximumf %191, %192 : vector<192x256xf32>
    %194 = arith.truncf %193 : vector<192x256xf32> to vector<192x256xbf16>
    %c2_i32_60 = arith.constant 2 : i32
    %195 = tpu.memref_slice %arg12[%c2_i32_60] : memref<3x!tpu.dma_semaphore, #tpu.memory_space<semaphore_mem>> -> memref<1x!tpu.dma_semaphore, #tpu.memory_space<semaphore_mem>>
    %196 = tpu.memref_squeeze %195 : memref<1x!tpu.dma_semaphore, #tpu.memory_space<semaphore_mem>> -> memref<!tpu.dma_semaphore, #tpu.memory_space<semaphore_mem>>
    tpu.wait_dma2 semaphore(%196 : memref<!tpu.dma_semaphore, #tpu.memory_space<semaphore_mem>>) src(%arg6 : memref<256x256xbf16, #tpu.memory_space<any>>) dst(%arg11 : memref<256x256xbf16, #tpu.memory_space<vmem>>)
    %c0_61 = arith.constant 0 : index
    %c0_62 = arith.constant 0 : index
    %197 = vector.load %arg11[%c0_61, %c0_62] : memref<256x256xbf16, #tpu.memory_space<vmem>>, vector<256x256xbf16>
    %cst_63 = arith.constant dense<0.000000e+00> : vector<192x256xf32>
    %198 = tpu.matmul %194, %197, %cst_63 {dimension_numbers = #tpu.dot_dimension_numbers<[1], [0], [0], [1], [0, 0, 1, 1], [], []>} : vector<192x256xbf16>, vector<256x256xbf16>, vector<192x256xf32> -> vector<192x256xf32>
    %cst_64 = arith.constant dense<0.000000e+00> : vector<256xf32>
    %199 = vector.multi_reduction <add>, %198, %cst_64 [0] : vector<192x256xf32> to vector<256xf32>
    %200 = vector.shape_cast %199 : vector<256xf32> to vector<1x256xf32>
    %201 = arith.mulf %198, %198 : vector<192x256xf32>
    %cst_65 = arith.constant dense<0.000000e+00> : vector<256xf32>
    %202 = vector.multi_reduction <add>, %201, %cst_65 [0] : vector<192x256xf32> to vector<256xf32>
    %203 = vector.shape_cast %202 : vector<256xf32> to vector<1x256xf32>
    %cst_66 = arith.constant 0.000000e+00 : f32
    %204 = vector.broadcast %cst_66 : f32 to vector<1x256xf32>
    %cst_67 = arith.constant 0.000000e+00 : f32
    %205 = vector.broadcast %cst_67 : f32 to vector<1x256xf32>
    %c8 = arith.constant 8 : index
    %c0_68 = arith.constant 0 : index
    %206 = vector.load %arg7[%c8, %c0_68] : memref<16x256xf32, #tpu.memory_space<vmem>>, vector<1x256xf32>
    %207 = arith.mulf %200, %206 : vector<1x256xf32>
    %cst_69 = arith.constant dense<0.000000e+00> : vector<1xf32>
    %208 = vector.multi_reduction <add>, %207, %cst_69 [1] : vector<1x256xf32> to vector<1xf32>
    %209 = vector.shape_cast %208 : vector<1xf32> to vector<1x1xf32>
    %cst_70 = arith.constant 1.08506945E-4 : f32
    %210 = vector.broadcast %cst_70 : f32 to vector<1x1xf32>
    %211 = arith.mulf %209, %210 : vector<1x1xf32>
    %212 = arith.mulf %203, %206 : vector<1x256xf32>
    %cst_71 = arith.constant dense<0.000000e+00> : vector<1xf32>
    %213 = vector.multi_reduction <add>, %212, %cst_71 [1] : vector<1x256xf32> to vector<1xf32>
    %214 = vector.shape_cast %213 : vector<1xf32> to vector<1x1xf32>
    %cst_72 = arith.constant 1.08506945E-4 : f32
    %215 = vector.broadcast %cst_72 : f32 to vector<1x1xf32>
    %216 = arith.mulf %214, %215 : vector<1x1xf32>
    %217 = arith.mulf %211, %211 : vector<1x1xf32>
    %218 = arith.subf %216, %217 : vector<1x1xf32>
    %cst_73 = arith.constant 9.99999974E-6 : f32
    %219 = vector.broadcast %cst_73 : f32 to vector<1x1xf32>
    %220 = arith.addf %218, %219 : vector<1x1xf32>
    %221 = math.rsqrt %220 : vector<1x1xf32>
    %222 = vector.broadcast %211 : vector<1x1xf32> to vector<1x256xf32>
    %223 = arith.mulf %222, %206 : vector<1x256xf32>
    %224 = arith.addf %204, %223 : vector<1x256xf32>
    %225 = vector.broadcast %221 : vector<1x1xf32> to vector<1x256xf32>
    %226 = arith.mulf %225, %206 : vector<1x256xf32>
    %227 = arith.addf %205, %226 : vector<1x256xf32>
    %c9 = arith.constant 9 : index
    %c0_74 = arith.constant 0 : index
    %228 = vector.load %arg7[%c9, %c0_74] : memref<16x256xf32, #tpu.memory_space<vmem>>, vector<1x256xf32>
    %229 = arith.mulf %200, %228 : vector<1x256xf32>
    %cst_75 = arith.constant dense<0.000000e+00> : vector<1xf32>
    %230 = vector.multi_reduction <add>, %229, %cst_75 [1] : vector<1x256xf32> to vector<1xf32>
    %231 = vector.shape_cast %230 : vector<1xf32> to vector<1x1xf32>
    %cst_76 = arith.constant 1.08506945E-4 : f32
    %232 = vector.broadcast %cst_76 : f32 to vector<1x1xf32>
    %233 = arith.mulf %231, %232 : vector<1x1xf32>
    %234 = arith.mulf %203, %228 : vector<1x256xf32>
    %cst_77 = arith.constant dense<0.000000e+00> : vector<1xf32>
    %235 = vector.multi_reduction <add>, %234, %cst_77 [1] : vector<1x256xf32> to vector<1xf32>
    %236 = vector.shape_cast %235 : vector<1xf32> to vector<1x1xf32>
    %cst_78 = arith.constant 1.08506945E-4 : f32
    %237 = vector.broadcast %cst_78 : f32 to vector<1x1xf32>
    %238 = arith.mulf %236, %237 : vector<1x1xf32>
    %239 = arith.mulf %233, %233 : vector<1x1xf32>
    %240 = arith.subf %238, %239 : vector<1x1xf32>
    %cst_79 = arith.constant 9.99999974E-6 : f32
    %241 = vector.broadcast %cst_79 : f32 to vector<1x1xf32>
    %242 = arith.addf %240, %241 : vector<1x1xf32>
    %243 = math.rsqrt %242 : vector<1x1xf32>
    %244 = vector.broadcast %233 : vector<1x1xf32> to vector<1x256xf32>
    %245 = arith.mulf %244, %228 : vector<1x256xf32>
    %246 = arith.addf %224, %245 : vector<1x256xf32>
    %247 = vector.broadcast %243 : vector<1x1xf32> to vector<1x256xf32>
    %248 = arith.mulf %247, %228 : vector<1x256xf32>
    %249 = arith.addf %227, %248 : vector<1x256xf32>
    %c10 = arith.constant 10 : index
    %c0_80 = arith.constant 0 : index
    %250 = vector.load %arg7[%c10, %c0_80] : memref<16x256xf32, #tpu.memory_space<vmem>>, vector<1x256xf32>
    %251 = arith.mulf %200, %250 : vector<1x256xf32>
    %cst_81 = arith.constant dense<0.000000e+00> : vector<1xf32>
    %252 = vector.multi_reduction <add>, %251, %cst_81 [1] : vector<1x256xf32> to vector<1xf32>
    %253 = vector.shape_cast %252 : vector<1xf32> to vector<1x1xf32>
    %cst_82 = arith.constant 1.08506945E-4 : f32
    %254 = vector.broadcast %cst_82 : f32 to vector<1x1xf32>
    %255 = arith.mulf %253, %254 : vector<1x1xf32>
    %256 = arith.mulf %203, %250 : vector<1x256xf32>
    %cst_83 = arith.constant dense<0.000000e+00> : vector<1xf32>
    %257 = vector.multi_reduction <add>, %256, %cst_83 [1] : vector<1x256xf32> to vector<1xf32>
    %258 = vector.shape_cast %257 : vector<1xf32> to vector<1x1xf32>
    %cst_84 = arith.constant 1.08506945E-4 : f32
    %259 = vector.broadcast %cst_84 : f32 to vector<1x1xf32>
    %260 = arith.mulf %258, %259 : vector<1x1xf32>
    %261 = arith.mulf %255, %255 : vector<1x1xf32>
    %262 = arith.subf %260, %261 : vector<1x1xf32>
    %cst_85 = arith.constant 9.99999974E-6 : f32
    %263 = vector.broadcast %cst_85 : f32 to vector<1x1xf32>
    %264 = arith.addf %262, %263 : vector<1x1xf32>
    %265 = math.rsqrt %264 : vector<1x1xf32>
    %266 = vector.broadcast %255 : vector<1x1xf32> to vector<1x256xf32>
    %267 = arith.mulf %266, %250 : vector<1x256xf32>
    %268 = arith.addf %246, %267 : vector<1x256xf32>
    %269 = vector.broadcast %265 : vector<1x1xf32> to vector<1x256xf32>
    %270 = arith.mulf %269, %250 : vector<1x256xf32>
    %271 = arith.addf %249, %270 : vector<1x256xf32>
    %c6 = arith.constant 6 : index
    %c0_86 = arith.constant 0 : index
    %272 = vector.load %arg7[%c6, %c0_86] : memref<16x256xf32, #tpu.memory_space<vmem>>, vector<1x256xf32>
    %273 = arith.mulf %272, %271 : vector<1x256xf32>
    %c7 = arith.constant 7 : index
    %c0_87 = arith.constant 0 : index
    %274 = vector.load %arg7[%c7, %c0_87] : memref<16x256xf32, #tpu.memory_space<vmem>>, vector<1x256xf32>
    %275 = arith.mulf %268, %273 : vector<1x256xf32>
    %276 = arith.subf %274, %275 : vector<1x256xf32>
    %277 = vector.broadcast %273 : vector<1x256xf32> to vector<192x256xf32>
    %278 = arith.mulf %198, %277 : vector<192x256xf32>
    %279 = vector.broadcast %276 : vector<1x256xf32> to vector<192x256xf32>
    %280 = arith.addf %278, %279 : vector<192x256xf32>
    %cst_88 = arith.constant 0.000000e+00 : f32
    %281 = vector.broadcast %cst_88 : f32 to vector<192x256xf32>
    %282 = arith.maximumf %280, %281 : vector<192x256xf32>
    %c0_89 = arith.constant 0 : index
    %c0_90 = arith.constant 0 : index
    %283 = vector.load %arg8[%c0_89, %c0_90] : memref<192x256xf32, #tpu.memory_space<vmem>>, vector<192x256xf32>
    tpu.vector_store %arg8[%c0_89, %c0_90], %282 {strides = array<i32>} : memref<192x256xf32, #tpu.memory_space<vmem>>, vector<192x256xf32>,
    return
  }
}

</mosaic_0001>

<bundles_post_ra>
// kernel: generator_forward.1
= control target key start
LH: loop header
LB: loop body
LE: loop exit
PB: predicated region body
PF: predicated region fallthrough
CT: control target
= control target key end

     0   :  { %13 = vsyncpa [#allocation7], 0  ;;  %s5415_s0 = inlined_call_operand.vmem [shape: bf16[8,128], index: 0, kind: input, shape index: {}]   ;;  %s5416_s1 = inlined_call_operand.hbm [shape: bf16[128,256], index: 1, kind: input, shape index: {}]   ;;  %s5417_s2 = inlined_call_operand.hbm [shape: bf16[256,512], index: 2, kind: input, shape index: {}]   ;;  %s5418_s3 = inlined_call_operand.hbm [shape: bf16[128,256], index: 3, kind: input, shape index: {}]   ;;  %s5419_s4 = inlined_call_operand.vmem [shape: bf16[256,192], index: 4, kind: input, shape index: {}]   ;;  %s5420_s5 = inlined_call_operand.hbm [shape: bf16[32,256], index: 5, kind: input, shape index: {}]   ;;  %s5421_s6 = inlined_call_operand.hbm [shape: bf16[256,256], index: 6, kind: input, shape index: {}]   ;;  %s5422_s7 = inlined_call_operand.hbm [shape: f32[16,256], index: 7, kind: input, shape index: {}]   ;;  %s5423_s8 = inlined_call_operand.vmem [shape: f32[192,256], index: 8, kind: output, shape index: {}]  }
   0x1   :  { %14 = vsyncpa [#allocation9], 0 }
   0x2   :  { %15 = vsyncpa [#allocation12], 0  ;;  %s3640_s27 = smov [#allocation8]   ;;  %s3540_s9 = scalar_lea.hbm %s5417_s2, 8192 }
   0x3   :  { %s35_s28 = sshll.u32 %s3640_s27, 4  ;;  %p3541_p0 = scmp.ne.s32.totalorder %s5417_s2, %s3540_s9  ;;  %s36_s28 = int_to_ptr.vmem [resolvable:$true] %s35_s28 }
   0x4   :  { %p3544_p1 = scmp.lt.u32.totalorder %s3540_s9, %s5417_s2 }
   0x6   :  { %p3546_p2 = pnand %p3544_p1, %p3541_p0 }
   0x8   :  { %3549 = shalt.err (!%p3546_p2)
}
   0x9   :  { %s3550_s14 = scalar_lea.vmem %s36_s28, 8192  ;;  %p3555_p4 = scmp.lt.s32.totalorder %s36_s28, %s36_s28 }
   0xa   :  { %p3551_p3 = scmp.ne.s32.totalorder %s36_s28, %s3550_s14  ;;  %p3556_p5 = scmp.lt.s32.totalorder %s3550_s14, %s3550_s14 }
   0xc   :  { %p3557_p6 = por %p3556_p5, %p3555_p4 }
   0xe   :  { %p3558_p7 = pnand %p3557_p6, %p3551_p3 }
  0x10   :  { %3561 = shalt.err (!%p3558_p7)
}
  0x11   :  { %s3641_s15 = smov 256   ;;  %s3642_s16 = smov 16  }
  0x12   :  { %41 = dma.hbm_to_vmem [thread:$0]  %s5417_s2, 8192, %s36_s28, [#allocation9], %s3641_s15, %s3641_s15, %s3642_s16  }
  0x13   :  { %s3643_s19 = smov [#allocation6]   ;;  %s3562_s23 = scalar_lea.hbm %s5416_s1, 2048 }
  0x14   :  { %s23_s20 = sshll.u32 %s3643_s19, 4  ;;  %p3563_p8 = scmp.ne.s32.totalorder %s5416_s1, %s3562_s23  ;;  %s24_s20 = int_to_ptr.vmem [resolvable:$true] %s23_s20 }
  0x15   :  { %p3566_p9 = scmp.lt.u32.totalorder %s3562_s23, %s5416_s1 }
  0x17   :  { %p3568_p10 = pnand %p3566_p9, %p3563_p8 }
  0x19   :  { %3571 = shalt.err (!%p3568_p10)
}
  0x1a   :  { %s3572_s29 = scalar_lea.vmem %s24_s20, 2048  ;;  %p3577_p12 = scmp.lt.s32.totalorder %s24_s20, %s24_s20 }
  0x1b   :  { %p3573_p11 = scmp.ne.s32.totalorder %s24_s20, %s3572_s29  ;;  %p3578_p13 = scmp.lt.s32.totalorder %s3572_s29, %s3572_s29 }
  0x1d   :  { %p3579_p0 = por %p3578_p13, %p3577_p12 }
  0x1f   :  { %p3580_p1 = pnand %p3579_p0, %p3573_p11 }
  0x21   :  { %3583 = shalt.err (!%p3580_p1)
}
  0x22   :  { %s3644_s2 = smov 128   ;;  %s3645_s28 = smov 8  }
  0x23   :  { %29 = dma.hbm_to_vmem [thread:$0]  %s5416_s1, 2048, %s24_s20, [#allocation7], %s3644_s2, %s3644_s2, %s3645_s28  }
  0x24   :  { %s3646_s10 = smov [#allocation10]   ;;  %s3647_s12 = smov [#allocation11]  }
  0x25   :  { %s47_s11 = sshll.u32 %s3646_s10, 4  ;;  %s59_s13 = sshll.u32 %s3647_s12, 4  ;;  %s48_s11 = int_to_ptr.vmem [resolvable:$true] %s47_s11  ;;  %s3735_s13 = int_to_ptr.vmem [resolvable:$true] %s59_s13 }
  0x26   :  { %s3584_s18 = scalar_lea.hbm %s5418_s3, 2048 }
  0x27   :  { %p3585_p2 = scmp.ne.s32.totalorder %s5418_s3, %s3584_s18  ;;  %p3588_p3 = scmp.lt.u32.totalorder %s3584_s18, %s5418_s3 }
  0x29   :  { %p3590_p4 = pnand %p3588_p3, %p3585_p2 }
  0x2b   :  { %3593 = shalt.err (!%p3590_p4)
}
  0x2c   :  { %s3594_s1 = scalar_lea.vmem %s48_s11, 2048  ;;  %p3599_p6 = scmp.lt.s32.totalorder %s48_s11, %s48_s11 }
  0x2d   :  { %p3595_p5 = scmp.ne.s32.totalorder %s48_s11, %s3594_s1  ;;  %p3600_p7 = scmp.lt.s32.totalorder %s3594_s1, %s3594_s1 }
  0x2f   :  { %p3601_p8 = por %p3600_p7, %p3599_p6 }
  0x31   :  { %p3602_p9 = pnand %p3601_p8, %p3595_p5 }
  0x33   :  { %3605 = shalt.err (!%p3602_p9)
}
  0x34   :  { %53 = dma.hbm_to_vmem [thread:$0]  %s5418_s3, 2048, %s48_s11, [#allocation9], %s3644_s2, %s3644_s2, %s3645_s28  }
  0x35   :  { %s3606_s27 = scalar_lea.hbm %s5422_s7, 512 }
  0x36   :  { %p3607_p10 = scmp.ne.s32.totalorder %s5422_s7, %s3606_s27  ;;  %p3610_p11 = scmp.lt.u32.totalorder %s3606_s27, %s5422_s7 }
  0x38   :  { %p3612_p12 = pnand %p3610_p11, %p3607_p10 }
  0x3a   :  { %3615 = shalt.err (!%p3612_p12)
}
  0x3b   :  { %s3616_s12 = scalar_lea.vmem %s3735_s13, 512  ;;  %p3621_p0 = scmp.lt.s32.totalorder %s3735_s13, %s3735_s13 }
  0x3c   :  { %p3617_p13 = scmp.ne.s32.totalorder %s3735_s13, %s3616_s12  ;;  %p3622_p1 = scmp.lt.s32.totalorder %s3616_s12, %s3616_s12 }
  0x3e   :  { %p3623_p2 = por %p3622_p1, %p3621_p0 }
  0x40   :  { %p3624_p3 = pnand %p3623_p2, %p3617_p13 }
  0x42   :  { %3627 = shalt.err (!%p3624_p3)
}
  0x43   :  { %65 = dma.hbm_to_vmem [thread:$0]  %s5422_s7, 512, %s3735_s13, [#allocation12], %s3641_s15, %s3641_s15, %s3642_s16  }
  0x44   :  { %3628 = dma.done.wait [#allocation7], 2048  }
  0x45   :  { %3629 = vsyncadd [#allocation7], 4294965248 }
  0x46   :  { %3630 = dma.done.wait [#allocation9], 10240  }
  0x47   :  { %3631 = vsyncadd [#allocation9], 4294957056 }
  0x48   :  { %3632 = dma.done.wait [#allocation12], 512  }
  0x49   :  { %3633 = vsyncadd [#allocation12], 4294966784  ;;  %v96_v0 = vld [vmem:[%s5419_s4] sm:$0xf]  ;;  %v98_v1 = vld [vmem:[%s5419_s4 + $0x8] sm:$0xf] }
  0x4a   :  { %v100_v2 = vld [vmem:[%s5419_s4 + $0x4] sm:$0xf]  ;;  %97 = vst [vmem:[#allocation2] sm:$0xf] %v96_v0  ;;  %99 = vst [vmem:[#allocation2 + $0x4] sm:$0xf] %v98_v1 }
  0x4b   :  { %101 = vst [vmem:[#allocation2 + $0x8] sm:$0xf] %v100_v2  ;;  %v102_v3 = vld [vmem:[%s5419_s4 + $0xc] sm:$0xff]   ;;  %v106_v4 = vld [vmem:[%s5419_s4 + $0x18] sm:$0xf]  ;;  %v110_v6 = vld [vmem:[%s5419_s4 + $0x1c] sm:$0xff]  }
  0x4c   :  { %v108_v5 = vld [vmem:[%s5419_s4 + $0x14] sm:$0xf]  ;;  %103 = vst [vmem:[#allocation2 + $0xc] sm:$0xff] %v102_v3   ;;  %107 = vst [vmem:[#allocation2 + $0x14] sm:$0xf] %v106_v4  ;;  %v118_v9 = vld [vmem:[%s5419_s4 + $0x2c] sm:$0xff]  }
  0x4d   :  { %109 = vst [vmem:[#allocation2 + $0x18] sm:$0xf] %v108_v5  ;;  %v114_v7 = vld [vmem:[%s5419_s4 + $0x28] sm:$0xf]  ;;  %v116_v8 = vld [vmem:[%s5419_s4 + $0x24] sm:$0xf] }
  0x4e   :  { %111 = vst [vmem:[#allocation2 + $0x1c] sm:$0xff] %v110_v6   ;;  %115 = vst [vmem:[#allocation2 + $0x24] sm:$0xf] %v114_v7  ;;  %v122_v10 = vld [vmem:[%s5419_s4 + $0x38] sm:$0xf]  ;;  %v126_v12 = vld [vmem:[%s5419_s4 + $0x3c] sm:$0xff]  }
  0x4f   :  { %117 = vst [vmem:[#allocation2 + $0x28] sm:$0xf] %v116_v8  ;;  %v124_v11 = vld [vmem:[%s5419_s4 + $0x34] sm:$0xf]  ;;  %119 = vst [vmem:[#allocation2 + $0x2c] sm:$0xff] %v118_v9   ;;  %v134_v15 = vld [vmem:[%s5419_s4 + $0x4c] sm:$0xff]  }
  0x50   :  { %123 = vst [vmem:[#allocation2 + $0x34] sm:$0xf] %v122_v10  ;;  %125 = vst [vmem:[#allocation2 + $0x38] sm:$0xf] %v124_v11  ;;  %v130_v13 = vld [vmem:[%s5419_s4 + $0x48] sm:$0xf] }
  0x51   :  { %v132_v14 = vld [vmem:[%s5419_s4 + $0x44] sm:$0xf]  ;;  %127 = vst [vmem:[#allocation2 + $0x3c] sm:$0xff] %v126_v12   ;;  %131 = vst [vmem:[#allocation2 + $0x44] sm:$0xf] %v130_v13  ;;  %v142_v18 = vld [vmem:[%s5419_s4 + $0x5c] sm:$0xff]  }
  0x52   :  { %133 = vst [vmem:[#allocation2 + $0x48] sm:$0xf] %v132_v14  ;;  %v138_v16 = vld [vmem:[%s5419_s4 + $0x58] sm:$0xf]  ;;  %v140_v17 = vld [vmem:[%s5419_s4 + $0x54] sm:$0xf] }
  0x53   :  { %135 = vst [vmem:[#allocation2 + $0x4c] sm:$0xff] %v134_v15   ;;  %139 = vst [vmem:[#allocation2 + $0x54] sm:$0xf] %v138_v16  ;;  %v146_v19 = vld [vmem:[%s5419_s4 + $0x68] sm:$0xf]  ;;  %v150_v21 = vld [vmem:[%s5419_s4 + $0x6c] sm:$0xff]  }
  0x54   :  { %141 = vst [vmem:[#allocation2 + $0x58] sm:$0xf] %v140_v17  ;;  %v148_v20 = vld [vmem:[%s5419_s4 + $0x64] sm:$0xf]  ;;  %143 = vst [vmem:[#allocation2 + $0x5c] sm:$0xff] %v142_v18   ;;  %v158_v24 = vld [vmem:[%s5419_s4 + $0x7c] sm:$0xff]  }
  0x55   :  { %147 = vst [vmem:[#allocation2 + $0x64] sm:$0xf] %v146_v19  ;;  %149 = vst [vmem:[#allocation2 + $0x68] sm:$0xf] %v148_v20  ;;  %v154_v22 = vld [vmem:[%s5419_s4 + $0x78] sm:$0xf] }
  0x56   :  { %v156_v23 = vld [vmem:[%s5419_s4 + $0x74] sm:$0xf]  ;;  %151 = vst [vmem:[#allocation2 + $0x6c] sm:$0xff] %v150_v21   ;;  %155 = vst [vmem:[#allocation2 + $0x74] sm:$0xf] %v154_v22  ;;  %v166_v27 = vld [vmem:[%s5419_s4 + $0x8c] sm:$0xff]  }
  0x57   :  { %157 = vst [vmem:[#allocation2 + $0x78] sm:$0xf] %v156_v23  ;;  %v162_v25 = vld [vmem:[%s5419_s4 + $0x88] sm:$0xf]  ;;  %v164_v26 = vld [vmem:[%s5419_s4 + $0x84] sm:$0xf] }
  0x58   :  { %159 = vst [vmem:[#allocation2 + $0x7c] sm:$0xff] %v158_v24   ;;  %163 = vst [vmem:[#allocation2 + $0x84] sm:$0xf] %v162_v25  ;;  %v170_v28 = vld [vmem:[%s5419_s4 + $0x98] sm:$0xf]  ;;  %v174_v30 = vld [vmem:[%s5419_s4 + $0x9c] sm:$0xff]  }
  0x59   :  { %165 = vst [vmem:[#allocation2 + $0x88] sm:$0xf] %v164_v26  ;;  %v172_v29 = vld [vmem:[%s5419_s4 + $0x94] sm:$0xf]  ;;  %167 = vst [vmem:[#allocation2 + $0x8c] sm:$0xff] %v166_v27   ;;  %v182_v33 = vld [vmem:[%s5419_s4 + $0xac] sm:$0xff]  }
  0x5a   :  { %171 = vst [vmem:[#allocation2 + $0x94] sm:$0xf] %v170_v28  ;;  %173 = vst [vmem:[#allocation2 + $0x98] sm:$0xf] %v172_v29  ;;  %v178_v31 = vld [vmem:[%s5419_s4 + $0xa8] sm:$0xf] }
  0x5b   :  { %v180_v32 = vld [vmem:[%s5419_s4 + $0xa4] sm:$0xf]  ;;  %175 = vst [vmem:[#allocation2 + $0x9c] sm:$0xff] %v174_v30   ;;  %179 = vst [vmem:[#allocation2 + $0xa4] sm:$0xf] %v178_v31  ;;  %v190_v36 = vld [vmem:[%s5419_s4 + $0xbc] sm:$0xff]  }
  0x5c   :  { %181 = vst [vmem:[#allocation2 + $0xa8] sm:$0xf] %v180_v32  ;;  %v186_v34 = vld [vmem:[%s5419_s4 + $0xb8] sm:$0xf]  ;;  %v188_v35 = vld [vmem:[%s5419_s4 + $0xb4] sm:$0xf] }
  0x5d   :  { %183 = vst [vmem:[#allocation2 + $0xac] sm:$0xff] %v182_v33   ;;  %187 = vst [vmem:[#allocation2 + $0xb4] sm:$0xf] %v186_v34  ;;  %v194_v37 = vld [vmem:[%s5419_s4 + $0xc8] sm:$0xf]  ;;  %v198_v39 = vld [vmem:[%s5419_s4 + $0xcc] sm:$0xff]  }
  0x5e   :  { %189 = vst [vmem:[#allocation2 + $0xb8] sm:$0xf] %v188_v35  ;;  %v196_v38 = vld [vmem:[%s5419_s4 + $0xc4] sm:$0xf]  ;;  %191 = vst [vmem:[#allocation2 + $0xbc] sm:$0xff] %v190_v36   ;;  %v206_v42 = vld [vmem:[%s5419_s4 + $0xdc] sm:$0xff]  }
  0x5f   :  { %195 = vst [vmem:[#allocation2 + $0xc4] sm:$0xf] %v194_v37  ;;  %197 = vst [vmem:[#allocation2 + $0xc8] sm:$0xf] %v196_v38  ;;  %v202_v40 = vld [vmem:[%s5419_s4 + $0xd8] sm:$0xf] }
  0x60   :  { %v204_v41 = vld [vmem:[%s5419_s4 + $0xd4] sm:$0xf]  ;;  %199 = vst [vmem:[#allocation2 + $0xcc] sm:$0xff] %v198_v39   ;;  %203 = vst [vmem:[#allocation2 + $0xd4] sm:$0xf] %v202_v40  ;;  %v214_v45 = vld [vmem:[%s5419_s4 + $0xec] sm:$0xff]  }
  0x61   :  { %205 = vst [vmem:[#allocation2 + $0xd8] sm:$0xf] %v204_v41  ;;  %v210_v43 = vld [vmem:[%s5419_s4 + $0xe8] sm:$0xf]  ;;  %v212_v44 = vld [vmem:[%s5419_s4 + $0xe4] sm:$0xf] }
  0x62   :  { %207 = vst [vmem:[#allocation2 + $0xdc] sm:$0xff] %v206_v42   ;;  %211 = vst [vmem:[#allocation2 + $0xe4] sm:$0xf] %v210_v43  ;;  %v218_v46 = vld [vmem:[%s5419_s4 + $0xf8] sm:$0xf] }
  0x63   :  { %213 = vst [vmem:[#allocation2 + $0xe8] sm:$0xf] %v212_v44  ;;  %v220_v47 = vld [vmem:[%s5419_s4 + $0xf4] sm:$0xf]  ;;  %215 = vst [vmem:[#allocation2 + $0xec] sm:$0xff] %v214_v45  }
  0x64   :  { %219 = vst [vmem:[#allocation2 + $0xf4] sm:$0xf] %v218_v46  ;;  %221 = vst [vmem:[#allocation2 + $0xf8] sm:$0xf] %v220_v47  ;;  %v222_v48 = vld [vmem:[%s5419_s4 + $0xfc] sm:$0xf] }
  0x65   :  { %223 = vst [vmem:[#allocation2 + $0xfc] sm:$0xf] %v222_v48 }
  0x66   :  { %382 = vsyncadd [#allocation5], 4096  ;;  %s388_s17 = sld [smem:[#allocation0]]   ;;  %s3648_s18 = smov [#allocation3]   ;;  %v3649_v49 = vmov 0   ;;  %vm1446_vm0 = vcmask 523264  }
  0x67   :  { %s396_s19 = sshll.u32 %s3648_s18, 4  ;;  %400 = sst [smem:[#allocation15]] %s3641_s15  ;;  %583 = vmatprep.mubr.bf16.mxu0 %v3649_v49  ;;  %1344 = vmatprep.mubr.bf16.mxu1 %v3649_v49  ;;  %s397_s19 = int_to_ptr.vmem [resolvable:$true] %s396_s19 }
  0x68   :  { %402 = sst [smem:[#allocation15 + $0x1]] %s3641_s15  ;;  %s3650_s21 = smov 2  }
  0x69   :  { %404 = sst [smem:[#allocation15 + $0x2]] %s3650_s21  ;;  %s3651_s7 = smov 64  }
  0x6a   :  { %406 = sst [smem:[#allocation15 + $0x3]] %s3651_s7  ;;  %s3652_s13 = smov 4  }
  0x6b   :  { %408 = sst [smem:[#allocation15 + $0x4]] %s3644_s2  ;;  %s3653_s22 = smov [#allocation5 + $0x1]  }
  0x6c   :  { %s3242_s4 = sshll.u32 %s388_s17, 26  ;;  %410 = sst [smem:[#allocation15 + $0x5]] %s3650_s21 }
  0x6d   :  { %s3243_s16 = sadd.s32 134217728, %s3242_s4  ;;  %412 = sst [smem:[#allocation15 + $0x6]] %s3644_s2 }
  0x6e   :  { %414 = sst [smem:[#allocation15 + $0x7]] %s3651_s7  ;;  %s3654_s23 = smov [#allocation14]  }
  0x6f   :  { %416 = sst [smem:[#allocation15 + $0x8]] %s3652_s13  ;;  %s3655_s24 = smov [#allocation4]  }
  0x70   :  { %418 = dma.general %s5420_s5, 512, %s397_s19, %s3653_s22, %s3654_s23, [#allocation15], %s3243_s16, 0  }
  0x71   :  { %435 = sst [smem:[#allocation17]] %s3641_s15  ;;  %s431_s25 = sshll.u32 %s3655_s24, 4  ;;  %s432_s25 = int_to_ptr.vmem [resolvable:$true] %s431_s25 }
  0x72   :  { %437 = sst [smem:[#allocation17 + $0x1]] %s3641_s15  ;;  %s3656_s26 = smov [#allocation5 + $0x2]  }
  0x73   :  { %439 = sst [smem:[#allocation17 + $0x2]] %s3650_s21  ;;  %s3657_s5 = smov [#allocation16]  }
  0x74   :  { %441 = sst [smem:[#allocation17 + $0x3]] %s3651_s7 }
  0x75   :  { %443 = sst [smem:[#allocation17 + $0x4]] %s3644_s2 }
  0x76   :  { %445 = sst [smem:[#allocation17 + $0x5]] %s3650_s21 }
  0x77   :  { %447 = sst [smem:[#allocation17 + $0x6]] %s3644_s2 }
  0x78   :  { %449 = sst [smem:[#allocation17 + $0x7]] %s3651_s7 }
  0x79   :  { %451 = sst [smem:[#allocation17 + $0x8]] %s3652_s13 }
  0x7a   :  { %453 = dma.general %s5421_s6, 4096, %s432_s25, %s3656_s26, %s3657_s5, [#allocation17], %s3243_s16, 0  }
  0x7b   :  { %v3378_v50 = vld [vmem:[#allocation6 + $0x4] ss:$8 sps:$4 sm:$0xff]   ;;  %v3380_v51 = vld [vmem:[#allocation6] ss:$8 sps:$4 sm:$0xff]   ;;  %v3381_v52 = vld [vmem:[#allocation6 + $0x14] ss:$8 sps:$4 sm:$0xff]  }
  0x7c   :  { %551 = vmatprep.subr.bf16.mxu0 %v3378_v50  ;;  %v3383_v53 = vld [vmem:[#allocation6 + $0x10] ss:$8 sps:$4 sm:$0xff]   ;;  %v3384_v54 = vld [vmem:[#allocation6 + $0x24] ss:$8 sps:$4 sm:$0xff]   ;;  %v3386_v55 = vld [vmem:[#allocation6 + $0x20] ss:$8 sps:$4 sm:$0xff]  }
  0x7d   :  { %552 = vmatpush1.bf16.msra.mxu0 %v3380_v51  ;;  %v3387_v56 = vld [vmem:[#allocation6 + $0x34] ss:$8 sps:$4 sm:$0xff]   ;;  %v3389_v57 = vld [vmem:[#allocation6 + $0x30] ss:$8 sps:$4 sm:$0xff]   ;;  %v3390_v58 = vld [vmem:[#allocation6 + $0x44] ss:$8 sps:$4 sm:$0xff]  }
  0x7e   :  { %553 = vmatprep.subr.bf16.mxu0 %v3381_v52  ;;  %v3392_v59 = vld [vmem:[#allocation6 + $0x40] ss:$8 sps:$4 sm:$0xff]   ;;  %v3393_v60 = vld [vmem:[#allocation6 + $0x54] ss:$8 sps:$4 sm:$0xff]   ;;  %v3395_v61 = vld [vmem:[#allocation6 + $0x50] ss:$8 sps:$4 sm:$0xff]  }
  0x7f   :  { %v3396_v62 = vld [vmem:[#allocation6 + $0x64] ss:$8 sps:$4 sm:$0xff]   ;;  %v3398_v63 = vld [vmem:[#allocation6 + $0x60] ss:$8 sps:$4 sm:$0xff]   ;;  %v3399_v0 = vld [vmem:[#allocation6 + $0x74] ss:$8 sps:$4 sm:$0xff]  }
  0x80   :  { %v3401_v1 = vld [vmem:[#allocation6 + $0x70] ss:$8 sps:$4 sm:$0xff]   ;;  %v3404_v2 = vld [vmem:[#allocation8 + $0x4] ss:$16 sps:$4 sm:$0xff]   ;;  %v454_v3 = vld [vmem:[%s5415_s0] sm:$0xf] }
  0x81   :  { %554 = vmatpush1.bf16.msra.mxu0 %v3383_v53  ;;  %v3402_v4 = vld [vmem:[#allocation8] ss:$16 sps:$4 sm:$0xff]   ;;  %v3407_v5 = vld [vmem:[#allocation8 + $0x24] ss:$16 sps:$4 sm:$0xff]   ;;  %v3452_v35 = vld [vmem:[#allocation8 + $0xc] ss:$16 sps:$4 sm:$0xff]  }
  0x82   :  { %555 = vmatprep.subr.bf16.mxu0 %v3384_v54  ;;  %v3405_v6 = vld [vmem:[#allocation8 + $0x20] ss:$16 sps:$4 sm:$0xff]   ;;  %v3410_v7 = vld [vmem:[#allocation8 + $0x44] ss:$16 sps:$4 sm:$0xff]  }
  0x83   :  { %v3408_v8 = vld [vmem:[#allocation8 + $0x40] ss:$16 sps:$4 sm:$0xff]   ;;  %v3413_v9 = vld [vmem:[#allocation8 + $0x64] ss:$16 sps:$4 sm:$0xff]  }
  0x84   :  { %v3411_v10 = vld [vmem:[#allocation8 + $0x60] ss:$16 sps:$4 sm:$0xff]   ;;  %v3416_v11 = vld [vmem:[#allocation8 + $0x84] ss:$16 sps:$4 sm:$0xff]  }
  0x85   :  { %556 = vmatpush1.bf16.msra.mxu0 %v3386_v55  ;;  %v3414_v12 = vld [vmem:[#allocation8 + $0x80] ss:$16 sps:$4 sm:$0xff]   ;;  %v3419_v13 = vld [vmem:[#allocation8 + $0xa4] ss:$16 sps:$4 sm:$0xff]  }
  0x86   :  { %557 = vmatprep.subr.bf16.mxu0 %v3387_v56  ;;  %v3417_v14 = vld [vmem:[#allocation8 + $0xa0] ss:$16 sps:$4 sm:$0xff]   ;;  %v3422_v15 = vld [vmem:[#allocation8 + $0xc4] ss:$16 sps:$4 sm:$0xff]  }
  0x87   :  { %v3420_v16 = vld [vmem:[#allocation8 + $0xc0] ss:$16 sps:$4 sm:$0xff]   ;;  %v3425_v17 = vld [vmem:[#allocation8 + $0xe4] ss:$16 sps:$4 sm:$0xff]  }
  0x88   :  { %v3423_v18 = vld [vmem:[#allocation8 + $0xe0] ss:$16 sps:$4 sm:$0xff]   ;;  %v3428_v19 = vld [vmem:[#allocation8 + $0x104] ss:$16 sps:$4 sm:$0xff]  }
  0x89   :  { %558 = vmatpush1.bf16.msra.mxu0 %v3389_v57  ;;  %v3426_v20 = vld [vmem:[#allocation8 + $0x100] ss:$16 sps:$4 sm:$0xff]   ;;  %v3431_v21 = vld [vmem:[#allocation8 + $0x124] ss:$16 sps:$4 sm:$0xff]  }
  0x8a   :  { %559 = vmatprep.subr.bf16.mxu0 %v3390_v58  ;;  %v3429_v22 = vld [vmem:[#allocation8 + $0x120] ss:$16 sps:$4 sm:$0xff]   ;;  %v3434_v23 = vld [vmem:[#allocation8 + $0x144] ss:$16 sps:$4 sm:$0xff]  }
  0x8b   :  { %v3432_v24 = vld [vmem:[#allocation8 + $0x140] ss:$16 sps:$4 sm:$0xff]   ;;  %v3437_v25 = vld [vmem:[#allocation8 + $0x164] ss:$16 sps:$4 sm:$0xff]  }
  0x8c   :  { %v3435_v26 = vld [vmem:[#allocation8 + $0x160] ss:$16 sps:$4 sm:$0xff]   ;;  %v3440_v27 = vld [vmem:[#allocation8 + $0x184] ss:$16 sps:$4 sm:$0xff]  }
  0x8d   :  { %560 = vmatpush1.bf16.msra.mxu0 %v3392_v59  ;;  %v3438_v28 = vld [vmem:[#allocation8 + $0x180] ss:$16 sps:$4 sm:$0xff]   ;;  %v3443_v29 = vld [vmem:[#allocation8 + $0x1a4] ss:$16 sps:$4 sm:$0xff]  }
  0x8e   :  { %561 = vmatprep.subr.bf16.mxu0 %v3393_v60  ;;  %v3441_v30 = vld [vmem:[#allocation8 + $0x1a0] ss:$16 sps:$4 sm:$0xff]   ;;  %v3446_v31 = vld [vmem:[#allocation8 + $0x1c4] ss:$16 sps:$4 sm:$0xff]  }
  0x8f   :  { %v3444_v32 = vld [vmem:[#allocation8 + $0x1c0] ss:$16 sps:$4 sm:$0xff]   ;;  %v3449_v33 = vld [vmem:[#allocation8 + $0x1e4] ss:$16 sps:$4 sm:$0xff]  }
  0x90   :  { %v3447_v34 = vld [vmem:[#allocation8 + $0x1e0] ss:$16 sps:$4 sm:$0xff]  }
  0x91   :  { %562 = vmatpush1.bf16.msra.mxu0 %v3395_v61 }
  0x92   :  { %563 = vmatprep.subr.bf16.mxu0 %v3396_v62 }
  0x95   :  { %564 = vmatpush1.bf16.msra.mxu0 %v3398_v63 }
  0x96   :  { %565 = vmatprep.subr.bf16.mxu0 %v3399_v0 }
  0x99   :  { %566 = vmatpush1.bf16.msra.mxu0 %v3401_v1 }
  0x9a   :  { %1087 = vmatprep.subr.bf16.mxu0 %v3404_v2 }
  0x9c   :  { %584 = vmatmul.mubr.bf16.vlgmr.msra.gmra.mrb[0].mxu0 %v454_v3 }
  0x9d   :  { %1088 = vmatpush1.bf16.msra.mxu0 %v3402_v4 }
  0x9e   :  { %1089 = vmatprep.subr.bf16.mxu0 %v3407_v5 }
  0xa1   :  { %1090 = vmatpush1.bf16.msra.mxu0 %v3405_v6 }
  0xa2   :  { %1091 = vmatprep.subr.bf16.mxu0 %v3410_v7 }
  0xa5   :  { %1092 = vmatpush1.bf16.msra.mxu0 %v3408_v8 }
  0xa6   :  { %1093 = vmatprep.subr.bf16.mxu0 %v3413_v9 }
  0xa9   :  { %1094 = vmatpush1.bf16.msra.mxu0 %v3411_v10 }
  0xaa   :  { %1095 = vmatprep.subr.bf16.mxu0 %v3416_v11 }
  0xad   :  { %1096 = vmatpush1.bf16.msra.mxu0 %v3414_v12 }
  0xae   :  { %1097 = vmatprep.subr.bf16.mxu0 %v3419_v13  ;;  %v3658_v13 = vmov 1966171168  }
  0xb1   :  { %1098 = vmatpush1.bf16.msra.mxu0 %v3417_v14  ;;  %v637_v14 = vunpack.c.l.s4 %v3658_v13  ;;  %v3497_v13 = vld [vmem:[#allocation8 + $0x1ec] ss:$16 sps:$4 sm:$0xff]  }
  0xb2   :  { %1099 = vmatprep.subr.bf16.mxu0 %v3422_v15  ;;  %v639_v15 = vlaneseq }
  0xb5   :  { %1100 = vmatpush1.bf16.msra.mxu0 %v3420_v16  ;;  %v638_v16 = vunpack.c.0.s8 %v637_v14  ;;  %v3495_v14 = vld [vmem:[#allocation8 + $0x1e8] ss:$16 sps:$4 sm:$0xff]  }
  0xb6   :  { %1101 = vmatprep.subr.bf16.mxu0 %v3425_v17  ;;  %v640_v17 = vshrl.u32 %v639_v15, 7  ;;  %v3498_v15 = vld [vmem:[#allocation10 + $0x4] ss:$8 sps:$4 sm:$0xff]  }
  0xb7   :  { %1312 = vmatprep.subr.bf16.mxu1 %v3498_v15 }
  0xb9   :  { %1102 = vmatpush1.bf16.msra.mxu0 %v3423_v18 }
  0xba   :  { %1103 = vmatprep.subr.bf16.mxu0 %v3428_v19  ;;  %v3941_v19 = vsub.s32 %v638_v16, %v640_v17  ;;  %v3500_v16 = vld [vmem:[#allocation10] ss:$8 sps:$4 sm:$0xff]  }
  0xbb   :  { %1313 = vmatpush1.bf16.msra.mxu1 %v3500_v16 }
  0xbc   :  { %5456 = vst [vmem:[#allocation24_spill] sm:$0xff] %v3941_v19 }
  0xbd   :  { %1104 = vmatpush1.bf16.msra.mxu0 %v3426_v20 }
  0xbe   :  { %1105 = vmatprep.subr.bf16.mxu0 %v3431_v21 }
  0xc1   :  { %1106 = vmatpush1.bf16.msra.mxu0 %v3429_v22 }
  0xc2   :  { %1107 = vmatprep.subr.bf16.mxu0 %v3434_v23  ;;  %v592_v23 = vld [vmem:[#allocation11] ss:$8 sm:$0x3] }
  0xc5   :  { %1108 = vmatpush1.bf16.msra.mxu0 %v3432_v24 }
  0xc6   :  { %1109 = vmatprep.subr.bf16.mxu0 %v3437_v25  ;;  %v3945_v25 = vsub.s32 0, %v640_v17 }
  0xc9   :  { %1110 = vmatpush1.bf16.msra.mxu0 %v3435_v26  ;;  %v3947_v26 = vsub.s32 1, %v640_v17  ;;  %v3501_v17 = vld [vmem:[#allocation10 + $0x14] ss:$8 sps:$4 sm:$0xff]  }
  0xca   :  { %1111 = vmatprep.subr.bf16.mxu0 %v3440_v27  ;;  %1314 = vmatprep.subr.bf16.mxu1 %v3501_v17 }
  0xcb   :  { %5457 = vst [vmem:[#allocation25_spill] sm:$0xff] %v3947_v26 }
  0xcd   :  { %1112 = vmatpush1.bf16.msra.mxu0 %v3438_v28 }
  0xce   :  { %1113 = vmatprep.subr.bf16.mxu0 %v3443_v29 }
  0xd1   :  { %1114 = vmatpush1.bf16.msra.mxu0 %v3441_v30 }
  0xd2   :  { %1115 = vmatprep.subr.bf16.mxu0 %v3446_v31 }
  0xd5   :  { %1116 = vmatpush1.bf16.msra.mxu0 %v3444_v32 }
  0xd6   :  { %1117 = vmatprep.subr.bf16.mxu0 %v3449_v33 }
  0xd9   :  { %1118 = vmatpush1.bf16.msra.mxu0 %v3447_v34 }
  0xda   :  { %1128 = vmatprep.subr.bf16.mxu0 %v3452_v35 }
 0x16f   :  { %v585_v36 = vpop.f32.mrb[0].mxu0 }
 0x170   :  { %v595_v37 = vrot.slane %v585_v36, 4  ;;  %v607_v38 = vmul.f32 %v585_v36, %v585_v36  ;;  %v587_v39 = vpop.f32.mrb[1].mxu0 }
 0x171   :  { %v601_v40 = vrot.slane %v587_v39, 4  ;;  %v608_v41 = vmul.f32 %v587_v39, %v587_v39  ;;  %v589_v42 = vpop.f32.mrb[2].mxu0 }
 0x172   :  { %v596_v43 = vadd.f32 %v595_v37, %v585_v36  ;;  %v609_v44 = vrot.slane %v607_v38, 4  ;;  %v590_v45 = vpop.f32.mrb[3].mxu0  ;;  %v594_v37 = vld [vmem:[#allocation11 + $0x1] ss:$8 sm:$0x3] }
 0x173   :  { %v602_v46 = vadd.f32 %v601_v40, %v587_v39  ;;  %v615_v47 = vrot.slane %v608_v41, 4 }
 0x174   :  { %v597_v48 = vrot.slane %v596_v43, 2  ;;  %v610_v50 = vadd.f32 %v609_v44, %v607_v38 }
 0x175   :  { %v603_v51 = vrot.slane %v602_v46, 2  ;;  %v616_v52 = vadd.f32 %v615_v47, %v608_v41 }
 0x176   :  { %v598_v53 = vadd.f32 %v597_v48, %v596_v43  ;;  %v611_v54 = vrot.slane %v610_v50, 2  ;;  %v3450_v48 = vld [vmem:[#allocation8 + $0x8] ss:$16 sps:$4 sm:$0xff]  }
 0x177   :  { %v604_v55 = vadd.f32 %v603_v51, %v602_v46  ;;  %v617_v56 = vrot.slane %v616_v52, 2  ;;  %v3458_v51 = vld [vmem:[#allocation8 + $0x4c] ss:$16 sps:$4 sm:$0xff]  }
 0x178   :  { %v599_v57 = vrot.slane %v598_v53, 1  ;;  %v612_v58 = vadd.f32 %v611_v54, %v610_v50  ;;  %v3459_v54 = vld [vmem:[#allocation8 + $0x68] ss:$16 sps:$4 sm:$0xff]  }
 0x179   :  { %v605_v59 = vrot.slane %v604_v55, 1  ;;  %v618_v60 = vadd.f32 %v617_v56, %v616_v52  ;;  %v3456_v52 = vld [vmem:[#allocation8 + $0x48] ss:$16 sps:$4 sm:$0xff]  }
 0x17a   :  { %v600_v61 = vadd.f32 %v599_v57, %v598_v53  ;;  %v613_v62 = vrot.slane %v612_v58, 1  ;;  %v3461_v53 = vld [vmem:[#allocation8 + $0x6c] ss:$16 sps:$4 sm:$0xff]   ;;  %v3462_v56 = vld [vmem:[#allocation8 + $0x88] ss:$16 sps:$4 sm:$0xff]  }
 0x17b   :  { %v606_v63 = vadd.f32 %v605_v59, %v604_v55  ;;  %v619_v0 = vrot.slane %v618_v60, 1  ;;  %v3464_v55 = vld [vmem:[#allocation8 + $0x8c] ss:$16 sps:$4 sm:$0xff]  }
 0x17c   :  { %v614_v1 = vadd.f32 %v613_v62, %v612_v58  ;;  %v621_v2 = vmul.f32 0.125, %v600_v61  ;;  %v3467_v57 = vld [vmem:[#allocation8 + $0xac] ss:$16 sps:$4 sm:$0xff]   ;;  %v3465_v58 = vld [vmem:[#allocation8 + $0xa8] ss:$16 sps:$4 sm:$0xff]  }
 0x17d   :  { %v620_v3 = vadd.f32 %v619_v0, %v618_v60  ;;  %v622_v4 = vmul.f32 0.125, %v606_v63  ;;  %v3470_v59 = vld [vmem:[#allocation8 + $0xcc] ss:$16 sps:$4 sm:$0xff]   ;;  %v3468_v60 = vld [vmem:[#allocation8 + $0xc8] ss:$16 sps:$4 sm:$0xff]  }
 0x17e   :  { %v623_v5 = vmul.f32 0.125, %v614_v1  ;;  %v625_v6 = vmul.f32 %v621_v2, %v621_v2  ;;  %v3473_v61 = vld [vmem:[#allocation8 + $0xec] ss:$16 sps:$4 sm:$0xff]   ;;  %v3471_v62 = vld [vmem:[#allocation8 + $0xe8] ss:$16 sps:$4 sm:$0xff]  }
 0x17f   :  { %v624_v7 = vmul.f32 0.125, %v620_v3  ;;  %v626_v8 = vmul.f32 %v622_v4, %v622_v4  ;;  %v3476_v63 = vld [vmem:[#allocation8 + $0x10c] ss:$16 sps:$4 sm:$0xff]   ;;  %v3474_v0 = vld [vmem:[#allocation8 + $0x108] ss:$16 sps:$4 sm:$0xff]  }
 0x180   :  { %v627_v9 = vsub.f32 %v623_v5, %v625_v6  ;;  %v3479_v1 = vld [vmem:[#allocation8 + $0x12c] ss:$16 sps:$4 sm:$0xff]   ;;  %v3483_v6 = vld [vmem:[#allocation8 + $0x168] ss:$16 sps:$4 sm:$0xff]  }
 0x181   :  { %v628_v10 = vsub.f32 %v624_v7, %v626_v8  ;;  %v3482_v3 = vld [vmem:[#allocation8 + $0x14c] ss:$16 sps:$4 sm:$0xff]   ;;  %v3486_v8 = vld [vmem:[#allocation8 + $0x188] ss:$16 sps:$4 sm:$0xff]  }
 0x182   :  { %v629_v11 = vadd.f32 1e-05, %v627_v9  ;;  %v3485_v5 = vld [vmem:[#allocation8 + $0x16c] ss:$16 sps:$4 sm:$0xff]  }
 0x183   :  { %v630_v12 = vadd.f32 1e-05, %v628_v10  ;;  %v3488_v7 = vld [vmem:[#allocation8 + $0x18c] ss:$16 sps:$4 sm:$0xff]   ;;  %v3489_v10 = vld [vmem:[#allocation8 + $0x1a8] ss:$16 sps:$4 sm:$0xff]  }
 0x184   :  { %3522 = vrsqrt.f32 %v629_v11  ;;  %v3491_v9 = vld [vmem:[#allocation8 + $0x1ac] ss:$16 sps:$4 sm:$0xff]  }
 0x185   :  { %3524 = vrsqrt.f32 %v630_v12  ;;  %v3494_v11 = vld [vmem:[#allocation8 + $0x1cc] ss:$16 sps:$4 sm:$0xff]   ;;  %v3492_v12 = vld [vmem:[#allocation8 + $0x1c8] ss:$16 sps:$4 sm:$0xff]  }
 0x18e   :  { %v3523_v18 = vpop.eup %3522 }
 0x18f   :  { %v3525_v20 = vpop.eup %3524 }
 0x190   :  { %v635_v21 = vcombine.low %v3523_v18, %v3525_v20  ;;  %v3503_v18 = vld [vmem:[#allocation10 + $0x10] ss:$8 sps:$4 sm:$0xff]   ;;  %v3504_v20 = vld [vmem:[#allocation10 + $0x24] ss:$8 sps:$4 sm:$0xff]  }
 0x191   :  { %1315 = vmatpush1.bf16.msra.mxu1 %v3503_v18 }
 0x192   :  { %v642_v22 = vrot.slane %v635_v21, %v3941_v19  ;;  %v3506_v21 = vld [vmem:[#allocation10 + $0x20] ss:$8 sps:$4 sm:$0xff]   ;;  %1316 = vmatprep.subr.bf16.mxu1 %v3504_v20 }
 0x194   :  { %v649_v24 = vrot.slane %v642_v22, %v3941_v19  ;;  %v3507_v22 = vld [vmem:[#allocation10 + $0x34] ss:$8 sps:$4 sm:$0xff]  }
 0x195   :  { %1317 = vmatpush1.bf16.msra.mxu1 %v3506_v21 }
 0x196   :  { %v651_v27 = vmul.f32 %v649_v24, %v592_v23  ;;  %v3509_v23 = vld [vmem:[#allocation10 + $0x30] ss:$8 sps:$4 sm:$0xff]   ;;  %1318 = vmatprep.subr.bf16.mxu1 %v3507_v22  ;;  %v3510_v24 = vld [vmem:[#allocation10 + $0x44] ss:$8 sps:$4 sm:$0xff]  }
 0x198   :  { %v656_v28 = vrot.slane %v651_v27, %v3945_v25  ;;  %v660_v29 = vrot.slane %v651_v27, %v3947_v26  ;;  %v3512_v27 = vld [vmem:[#allocation10 + $0x40] ss:$8 sps:$4 sm:$0xff]  }
 0x199   :  { %1319 = vmatpush1.bf16.msra.mxu1 %v3509_v23 }
 0x19a   :  { %v663_v30 = vmul.f32 %v656_v28, %v621_v2  ;;  %v664_v31 = vmul.f32 %v660_v29, %v622_v4  ;;  %v685_v32 = vmul.f32 %v660_v29, %v587_v39  ;;  %v684_v33 = vmul.f32 %v656_v28, %v585_v36  ;;  %v3455_v36 = vld [vmem:[#allocation8 + $0x2c] ss:$16 sps:$4 sm:$0xff]   ;;  %v3453_v39 = vld [vmem:[#allocation8 + $0x28] ss:$16 sps:$4 sm:$0xff]   ;;  %1320 = vmatprep.subr.bf16.mxu1 %v3510_v24 }
 0x19b   :  { %v3477_v2 = vld [vmem:[#allocation8 + $0x128] ss:$16 sps:$4 sm:$0xff]   ;;  %v3513_v28 = vld [vmem:[#allocation10 + $0x54] ss:$8 sps:$4 sm:$0xff]  }
 0x19c   :  { %v667_v34 = vcombine.low %v663_v30, %v664_v31  ;;  %v3480_v4 = vld [vmem:[#allocation8 + $0x148] ss:$16 sps:$4 sm:$0xff]   ;;  %v3516_v30 = vld [vmem:[#allocation10 + $0x64] ss:$8 sps:$4 sm:$0xff]  }
 0x19d   :  { %1321 = vmatpush1.bf16.msra.mxu1 %v3512_v27  ;;  %v3515_v29 = vld [vmem:[#allocation10 + $0x50] ss:$8 sps:$4 sm:$0xff]   ;;  %v3518_v31 = vld [vmem:[#allocation10 + $0x60] ss:$8 sps:$4 sm:$0xff]  }
 0x19e   :  { %v674_v35 = vrot.slane %v667_v34, %v3941_v19  ;;  %1322 = vmatprep.subr.bf16.mxu1 %v3513_v28 }
 0x1a0   :  { %v681_v38 = vrot.slane %v674_v35, %v3941_v19 }
 0x1a1   :  { %1323 = vmatpush1.bf16.msra.mxu1 %v3515_v29 }
 0x1a2   :  { %v683_v40 = vsub.f32 %v594_v37, %v681_v38  ;;  %1324 = vmatprep.subr.bf16.mxu1 %v3516_v30 }
 0x1a4   :  { %v694_v41 = vrot.slane %v683_v40, %v3947_v26  ;;  %v690_v42 = vrot.slane %v683_v40, %v3945_v25 }
 0x1a5   :  { %1325 = vmatpush1.bf16.msra.mxu1 %v3518_v31 }
 0x1a6   :  { %v698_v43 = vadd.f32 %v694_v41, %v685_v32  ;;  %v697_v44 = vadd.f32 %v690_v42, %v684_v33  ;;  %v3519_v32 = vld [vmem:[#allocation10 + $0x74] ss:$8 sps:$4 sm:$0xff]   ;;  %v3521_v33 = vld [vmem:[#allocation10 + $0x70] ss:$8 sps:$4 sm:$0xff]  }
 0x1a7   :  { %1326 = vmatprep.subr.bf16.mxu1 %v3519_v32 }
 0x1a8   :  { %v700_v45 = vmax.f32 %v698_v43, 0.0  ;;  %v699_v46 = vmax.f32 %v697_v44, 0.0 }
 0x1a9   :  { %1327 = vmatpush1.bf16.msra.mxu1 %v3521_v33 }
 0x1aa   :  { %v702_v47 = vpack.c.bf16 %v700_v45, %v700_v45  ;;  %v3955_v50 = vpack.c.bf16 %v699_v46, %v699_v46 }
 0x1ac   :  { %1119 = vmatprep.mubr.bf16.mxu0 %v702_v47 }
 0x1ad   :  { %1120 = vmatmul.mubr.bf16.vlgmr.msra.gmra.mrb[4].mxu0 %v3955_v50 }
 0x1ae   :  { %1129 = vmatpush1.bf16.msra.mxu0 %v3450_v48  ;;  %1160 = vmatprep.mubr.bf16.mxu0 %v702_v47 }
 0x1af   :  { %1130 = vmatprep.subr.bf16.mxu0 %v3455_v36 }
 0x1b2   :  { %1131 = vmatpush1.bf16.msra.mxu0 %v3453_v39 }
 0x1b3   :  { %1132 = vmatprep.subr.bf16.mxu0 %v3458_v51 }
 0x1b6   :  { %1133 = vmatpush1.bf16.msra.mxu0 %v3456_v52 }
 0x1b7   :  { %1134 = vmatprep.subr.bf16.mxu0 %v3461_v53 }
 0x1ba   :  { %1135 = vmatpush1.bf16.msra.mxu0 %v3459_v54 }
 0x1bb   :  { %1136 = vmatprep.subr.bf16.mxu0 %v3464_v55 }
 0x1be   :  { %1137 = vmatpush1.bf16.msra.mxu0 %v3462_v56 }
 0x1bf   :  { %1138 = vmatprep.subr.bf16.mxu0 %v3467_v57 }
 0x1c2   :  { %1139 = vmatpush1.bf16.msra.mxu0 %v3465_v58 }
 0x1c3   :  { %1140 = vmatprep.subr.bf16.mxu0 %v3470_v59 }
 0x1c6   :  { %1141 = vmatpush1.bf16.msra.mxu0 %v3468_v60 }
 0x1c7   :  { %1142 = vmatprep.subr.bf16.mxu0 %v3473_v61 }
 0x1ca   :  { %1143 = vmatpush1.bf16.msra.mxu0 %v3471_v62 }
 0x1cb   :  { %1144 = vmatprep.subr.bf16.mxu0 %v3476_v63 }
 0x1ce   :  { %1145 = vmatpush1.bf16.msra.mxu0 %v3474_v0 }
 0x1cf   :  { %1146 = vmatprep.subr.bf16.mxu0 %v3479_v1 }
 0x1d2   :  { %1147 = vmatpush1.bf16.msra.mxu0 %v3477_v2 }
 0x1d3   :  { %1148 = vmatprep.subr.bf16.mxu0 %v3482_v3 }
 0x1d6   :  { %1149 = vmatpush1.bf16.msra.mxu0 %v3480_v4 }
 0x1d7   :  { %1150 = vmatprep.subr.bf16.mxu0 %v3485_v5 }
 0x1da   :  { %1151 = vmatpush1.bf16.msra.mxu0 %v3483_v6  ;;  %v1169_v6 = vld [vmem:[#allocation11 + $0x2] ss:$0 sm:$0xff] }
 0x1db   :  { %1152 = vmatprep.subr.bf16.mxu0 %v3488_v7 }
 0x1de   :  { %1153 = vmatpush1.bf16.msra.mxu0 %v3486_v8 }
 0x1df   :  { %1154 = vmatprep.subr.bf16.mxu0 %v3491_v9  ;;  %v1170_v9 = vld [vmem:[#allocation11 + $0x3] ss:$0 sm:$0xff] }
 0x1e2   :  { %1155 = vmatpush1.bf16.msra.mxu0 %v3489_v10 }
 0x1e3   :  { %1156 = vmatprep.subr.bf16.mxu0 %v3494_v11 }
 0x1e6   :  { %1157 = vmatpush1.bf16.msra.mxu0 %v3492_v12 }
 0x1e7   :  { %1158 = vmatprep.subr.bf16.mxu0 %v3497_v13 }
 0x1ea   :  { %1159 = vmatpush1.bf16.msra.mxu0 %v3495_v14 }
 0x1ed   :  { %1161 = vmatmul.mubr.bf16.vlgmr.msra.gmra.mrb[8].mxu0 %v3955_v50 }
 0x280   :  { %v1121_v34 = vpop.f32.mrb[4].mxu0 }
 0x281   :  { %v1180_v35 = vmul.f32 %v1121_v34, %v1121_v34  ;;  %v1123_v37 = vpop.f32.mrb[5].mxu0 }
 0x282   :  { %v1171_v38 = vadd.f32 %v1123_v37, %v1121_v34  ;;  %v1181_v40 = vmul.f32 %v1123_v37, %v1123_v37  ;;  %v1125_v41 = vpop.f32.mrb[6].mxu0 }
 0x283   :  { %v1126_v42 = vpop.f32.mrb[7].mxu0 }
 0x284   :  { %v1184_v43 = vadd.f32 %v1181_v40, %v1180_v35 }
 0x2c0   :  { %v1162_v44 = vpop.f32.mrb[8].mxu0 }
 0x2c1   :  { %v1172_v45 = vadd.f32 %v1171_v38, %v1162_v44  ;;  %v1182_v46 = vmul.f32 %v1162_v44, %v1162_v44  ;;  %v1164_v47 = vpop.f32.mrb[9].mxu0 }
 0x2c2   :  { %v1183_v48 = vmul.f32 %v1164_v47, %v1164_v47  ;;  %v1166_v50 = vpop.f32.mrb[10].mxu0 }
 0x2c3   :  { %v1185_v36 = vadd.f32 %v1184_v43, %v1182_v46  ;;  %v1173_v39 = vadd.f32 %v1172_v45, %v1164_v47  ;;  %v1167_v51 = vpop.f32.mrb[11].mxu0 }
 0x2c5   :  { %v1174_v52 = vrot.slane %v1173_v39, 4  ;;  %v1186_v53 = vadd.f32 %v1185_v36, %v1183_v48 }
 0x2c7   :  { %v1175_v54 = vadd.f32 %v1174_v52, %v1173_v39  ;;  %v1187_v55 = vrot.slane %v1186_v53, 4 }
 0x2c9   :  { %v1176_v56 = vrot.slane %v1175_v54, 2  ;;  %v1188_v57 = vadd.f32 %v1187_v55, %v1186_v53 }
 0x2cb   :  { %v1177_v58 = vadd.f32 %v1176_v56, %v1175_v54  ;;  %v1189_v59 = vrot.slane %v1188_v57, 2 }
 0x2cd   :  { %v1178_v60 = vrot.slane %v1177_v58, 1  ;;  %v1190_v61 = vadd.f32 %v1189_v59, %v1188_v57 }
 0x2cf   :  { %v1179_v62 = vadd.f32 %v1178_v60, %v1177_v58  ;;  %v1191_v63 = vrot.slane %v1190_v61, 1 }
 0x2d1   :  { %v1192_v0 = vadd.f32 %v1191_v63, %v1190_v61  ;;  %v1193_v1 = vmul.f32 0.03125, %v1179_v62 }
 0x2d3   :  { %v1194_v2 = vmul.f32 0.03125, %v1192_v0  ;;  %v1195_v3 = vmul.f32 %v1193_v1, %v1193_v1 }
 0x2d5   :  { %v1196_v4 = vsub.f32 %v1194_v2, %v1195_v3 }
 0x2d7   :  { %v1197_v5 = vadd.f32 1e-05, %v1196_v4 }
 0x2d9   :  { %3526 = vrsqrt.f32 %v1197_v5 }
 0x2e3   :  { %v3527_v7 = vpop.eup %3526 }
 0x2e4   :  { %v1199_v8 = vmul.f32 %v3527_v7, %v1169_v6 }
 0x2e6   :  { %v1200_v10 = vmul.f32 %v1199_v8, %v1193_v1  ;;  %v1205_v11 = vmul.f32 %v1199_v8, %v1164_v47  ;;  %v1202_v12 = vmul.f32 %v1199_v8, %v1121_v34  ;;  %v1203_v13 = vmul.f32 %v1199_v8, %v1123_v37 }
 0x2e7   :  { %v1204_v14 = vmul.f32 %v1199_v8, %v1162_v44 }
 0x2e8   :  { %v1201_v15 = vsub.f32 %v1170_v9, %v1200_v10 }
 0x2ea   :  { %v1209_v16 = vadd.f32 %v1205_v11, %v1201_v15  ;;  %v1206_v17 = vadd.f32 %v1202_v12, %v1201_v15  ;;  %v1207_v18 = vadd.f32 %v1203_v13, %v1201_v15  ;;  %v1208_v20 = vadd.f32 %v1204_v14, %v1201_v15 }
 0x2ec   :  { %v1210_v21 = vmax.f32 %v1206_v17, 0.0  ;;  %v1211_v22 = vmax.f32 %v1207_v18, 0.0  ;;  %v1212_v23 = vmax.f32 %v1208_v20, 0.0  ;;  %v1213_v24 = vmax.f32 %v1209_v16, 0.0 }
 0x2ee   :  { %v1214_v27 = vpack.c.bf16 %v1211_v22, %v1210_v21  ;;  %v1215_v28 = vpack.c.bf16 %v1213_v24, %v1212_v23 }
 0x2f0   :  { %1345 = vmatmul.mubr.bf16.vlgmr.msra.gmra.mrb[0].mxu1 %v1214_v27 }
 0x2f1   :  { %1354 = vmatprep.mubr.bf16.mxu1 %v3649_v49 }
 0x2f8   :  { %1355 = vmatmul.mubr.bf16.gmra.mrb[4].mxu1 %v1215_v28 }
 0x3c3   :  { %v3960_v29 = vpop.f32.mrb[0].mxu1 }
 0x3c4   :  { %v3962_v30 = vpop.f32.mrb[1].mxu1  ;;  %v1385_v32 = vmul.f32 %v3960_v29, %v3960_v29 }
 0x3c5   :  { %v3964_v31 = vpop.f32.mrb[2].mxu1  ;;  %v1386_v37 = vmul.f32 %v3962_v30, %v3962_v30 }
 0x3c6   :  { %v1367_v33 = vadd.f32 %v3964_v31, %v3960_v29  ;;  %v1387_v34 = vmul.f32 %v3964_v31, %v3964_v31  ;;  %v3972_v35 = vpop.f32.mrb[3].mxu1 }
 0x3c7   :  { %v1376_v38 = vadd.f32 %v3972_v35, %v3962_v30  ;;  %v1388_v40 = vmul.f32 %v3972_v35, %v3972_v35 }
 0x3c8   :  { %v1393_v41 = vadd.f32 %v1387_v34, %v1385_v32 }
 0x3c9   :  { %v1402_v42 = vadd.f32 %v1388_v40, %v1386_v37 }
 0x3cb   :  { %v3980_v43 = vpop.f32.mrb[4].mxu1 }
 0x3cc   :  { %v1368_v44 = vadd.f32 %v1367_v33, %v3980_v43  ;;  %v1389_v45 = vmul.f32 %v3980_v43, %v3980_v43  ;;  %v3985_v46 = vpop.f32.mrb[5].mxu1 }
 0x3cd   :  { %v1377_v47 = vadd.f32 %v1376_v38, %v3985_v46  ;;  %v1390_v48 = vmul.f32 %v3985_v46, %v3985_v46  ;;  %v3990_v50 = vpop.f32.mrb[6].mxu1 }
 0x3ce   :  { %v1394_v36 = vadd.f32 %v1393_v41, %v1389_v45  ;;  %v1369_v39 = vadd.f32 %v1368_v44, %v3990_v50  ;;  %v1391_v51 = vmul.f32 %v3990_v50, %v3990_v50  ;;  %v3995_v52 = vpop.f32.mrb[7].mxu1 }
 0x3cf   :  { %v1403_v53 = vadd.f32 %v1402_v42, %v1390_v48  ;;  %v1378_v54 = vadd.f32 %v1377_v47, %v3995_v52  ;;  %v1392_v55 = vmul.f32 %v3995_v52, %v3995_v52  ;;  %v1365_v42 = vld [vmem:[#allocation11 + $0xa] ss:$0 sm:$0xff]  ;;  %v1366_v47 = vld [vmem:[#allocation11 + $0xb] ss:$0 sm:$0xff] }
 0x3d0   :  { %v1370_v56 = vrot.slane %v1369_v39, 4  ;;  %v1395_v57 = vadd.f32 %v1394_v36, %v1391_v51 }
 0x3d1   :  { %v1379_v58 = vrot.slane %v1378_v54, 4  ;;  %v1404_v59 = vadd.f32 %v1403_v53, %v1392_v55 }
 0x3d2   :  { %v1396_v60 = vrot.slane %v1395_v57, 4  ;;  %v1371_v61 = vadd.f32 %v1370_v56, %v1369_v39 }
 0x3d3   :  { %v1380_v62 = vadd.f32 %v1379_v58, %v1378_v54  ;;  %v1405_v63 = vrot.slane %v1404_v59, 4 }
 0x3d4   :  { %v1397_v0 = vadd.f32 %v1396_v60, %v1395_v57  ;;  %v1372_v1 = vrot.slane %v1371_v61, 2 }
 0x3d5   :  { %v1406_v2 = vadd.f32 %v1405_v63, %v1404_v59  ;;  %v1381_v3 = vrot.slane %v1380_v62, 2 }
 0x3d6   :  { %v1373_v4 = vadd.f32 %v1372_v1, %v1371_v61  ;;  %v1398_v5 = vrot.slane %v1397_v0, 2 }
 0x3d7   :  { %v1407_v6 = vrot.slane %v1406_v2, 2  ;;  %v1382_v7 = vadd.f32 %v1381_v3, %v1380_v62 }
 0x3d8   :  { %v1374_v8 = vrot.slane %v1373_v4, 1  ;;  %v1399_v9 = vadd.f32 %v1398_v5, %v1397_v0 }
 0x3d9   :  { %v1383_v10 = vrot.slane %v1382_v7, 1  ;;  %v1408_v11 = vadd.f32 %v1407_v6, %v1406_v2 }
 0x3da   :  { %v1375_v12 = vadd.f32 %v1374_v8, %v1373_v4  ;;  %v1400_v13 = vrot.slane %v1399_v9, 1 }
 0x3db   :  { %v1384_v14 = vadd.f32 %v1383_v10, %v1382_v7  ;;  %v1409_v15 = vrot.slane %v1408_v11, 1 }
 0x3dc   :  { %1412 = vrot.lane.b32.xlu0 %v1375_v12, %s3651_s7  ;;  %v1401_v16 = vadd.f32 %v1400_v13, %v1399_v9 }
 0x3dd   :  { %1424 = vrot.lane.b32.xlu1 %v1384_v14, %s3651_s7  ;;  %v1410_v17 = vadd.f32 %v1409_v15, %v1408_v11 }
 0x3e0   :  { %1417 = vrot.lane.b32.xlu0 %v1401_v16, %s3651_s7 }
 0x3e1   :  { %1429 = vrot.lane.b32.xlu1 %v1410_v17, %s3651_s7 }
 0x44e   :  { %v1413_v18 = vpop.permute.xlu0 %1412 }
 0x44f   :  { %v1415_v20 = vadd.f32 %v1413_v18, %v1375_v12  ;;  %v1425_v21 = vpop.permute.xlu1 %1424 }
 0x451   :  { %v1421_v22 = vadd.f32 %v1415_v20, %v1384_v14 }
 0x452   :  { %v1418_v23 = vpop.permute.xlu0 %1417 }
 0x453   :  { %v1427_v24 = vadd.f32 %v1425_v21, %v1421_v22  ;;  %v1420_v27 = vadd.f32 %v1418_v23, %v1401_v16  ;;  %v1430_v33 = vpop.permute.xlu1 %1429 }
 0x455   :  { %v1433_v28 = vmul.f32 0.0078125, %v1427_v24  ;;  %v1422_v32 = vadd.f32 %v1420_v27, %v1410_v17 }
 0x457   :  { %v1432_v34 = vadd.f32 %v1430_v33, %v1422_v32  ;;  %v1435_v37 = vmul.f32 %v1433_v28, %v1433_v28 }
 0x459   :  { %v1434_v38 = vmul.f32 0.0078125, %v1432_v34 }
 0x45b   :  { %v1436_v40 = vsub.f32 %v1434_v38, %v1435_v37 }
 0x45d   :  { %v1437_v41 = vadd.f32 1e-05, %v1436_v40 }
 0x45f   :  { %3528 = vrsqrt.f32 %v1437_v41 }
 0x469   :  { %v3529_v44 = vpop.eup %3528 }
 0x46a   :  { %v1439_v45 = vmul.f32 %v3529_v44, %v1365_v42 }
 0x46c   :  { %1443 = vrot.lane.b32.xlu0 %v1439_v45, %s3651_s7  ;;  %v1440_v48 = vmul.f32 %v1439_v45, %v1433_v28 }
 0x46e   :  { %v1441_v36 = vsub.f32 %v1366_v47, %v1440_v48 }
 0x470   :  { %1449 = vrot.lane.b32.xlu1 %v1441_v36, %s3651_s7 }
 0x4de   :  { %v1444_v39 = vpop.permute.xlu0 %1443 }
 0x4df   :  { %v1447_v51 = vsel %vm1446_vm0, %v1439_v45, %v1444_v39 }
 0x4e0   :  { %v1456_v53 = vrot.slane %v1447_v51, %v3945_v25 }
 0x4e2   :  { %v1450_v54 = vpop.permute.xlu1 %1449  ;;  %v1457_v55 = vmul.f32 %v1456_v53, %v3960_v29  ;;  %v1458_v57 = vmul.f32 %v1456_v53, %v3962_v30  ;;  %v1459_v58 = vmul.f32 %v1456_v53, %v3964_v31  ;;  %v1460_v59 = vmul.f32 %v1456_v53, %v3972_v35 }
 0x4e3   :  { %v1452_v56 = vsel %vm1446_vm0, %v1441_v36, %v1450_v54  ;;  %v1461_v61 = vmul.f32 %v1456_v53, %v3980_v43  ;;  %v1462_v62 = vmul.f32 %v1456_v53, %v3985_v46  ;;  %v1463_v63 = vmul.f32 %v1456_v53, %v3990_v50 }
 0x4e4   :  { %v1468_v60 = vrot.slane %v1452_v56, %v3945_v25  ;;  %v1464_v0 = vmul.f32 %v1456_v53, %v3995_v52 }
 0x4e6   :  { %v1469_v1 = vadd.f32 %v1468_v60, %v1457_v55  ;;  %v1470_v29 = vadd.f32 %v1468_v60, %v1458_v57  ;;  %v1471_v2 = vadd.f32 %v1468_v60, %v1459_v58  ;;  %v1472_v3 = vadd.f32 %v1468_v60, %v1460_v59 }
 0x4e7   :  { %v1473_v4 = vadd.f32 %v1468_v60, %v1461_v61  ;;  %v1474_v30 = vadd.f32 %v1468_v60, %v1462_v62  ;;  %v1475_v5 = vadd.f32 %v1468_v60, %v1463_v63  ;;  %v1476_v31 = vadd.f32 %v1468_v60, %v1464_v0 }
 0x4e8   :  { %v1477_v6 = vmax.f32 %v1469_v1, 0.0  ;;  %v1478_v35 = vmax.f32 %v1470_v29, 0.0  ;;  %v1479_v7 = vmax.f32 %v1471_v2, 0.0  ;;  %v1480_v8 = vmax.f32 %v1472_v3, 0.0 }
 0x4e9   :  { %v1481_v9 = vmax.f32 %v1473_v4, 0.0  ;;  %v1482_v43 = vmax.f32 %v1474_v30, 0.0  ;;  %v1483_v10 = vmax.f32 %v1475_v5, 0.0  ;;  %v1484_v46 = vmax.f32 %v1476_v31, 0.0 }
 0x4ea   :  { %v4018_v11 = vpack.c.bf16 %v1479_v7, %v1477_v6  ;;  %v1486_v50 = vpack.c.bf16 %v1480_v8, %v1478_v35 }
 0x4eb   :  { %v4020_v52 = vpack.c.bf16 %v1483_v10, %v1481_v9  ;;  %v4022_v12 = vpack.c.bf16 %v1484_v46, %v1482_v43 }
 0x4ec   :  { %3634 = dma.done.wait [#allocation5], 4096 }
 0x4ed   :  { %3635 = vsyncadd [#allocation5], 4294963200  ;;  %1557 = vmatprep.mubr.bf16.mxu0 %v1486_v50  ;;  %v1494_v13 = vld [vmem:[#allocation2 + $0x8] sm:$0xff]  ;;  %v1493_v14 = vld [vmem:[#allocation2] sm:$0xff]  ;;  %vm1636_vm1 = vcmask 261120   ;;  %s3659_s0 = smov 96  }
 0x4ee   :  { %v1496_v15 = vld [vmem:[#allocation2 + $0x18] sm:$0xff]  ;;  %1525 = vmatprep.subr.bf16.mxu0 %v1494_v13  ;;  %v1495_v16 = vld [vmem:[#allocation2 + $0x10] sm:$0xff]  ;;  %v1498_v17 = vld [vmem:[#allocation2 + $0x28] sm:$0xff]  ;;  %s3660_s2 = smov 32  }
 0x4ef   :  { %1526 = vmatpush1.bf16.msra.mxu0 %v1493_v14  ;;  %v1497_v18 = vld [vmem:[#allocation2 + $0x20] sm:$0xff]  ;;  %v1500_v20 = vld [vmem:[#allocation2 + $0x38] sm:$0xff]  ;;  %v1499_v21 = vld [vmem:[#allocation2 + $0x30] sm:$0xff] }
 0x4f0   :  { %1527 = vmatprep.subr.bf16.mxu0 %v1496_v15  ;;  %v1502_v22 = vld [vmem:[#allocation2 + $0x48] sm:$0xff]  ;;  %v1501_v23 = vld [vmem:[#allocation2 + $0x40] sm:$0xff]  ;;  %v1504_v24 = vld [vmem:[#allocation2 + $0x58] sm:$0xff] }
 0x4f1   :  { %v1503_v27 = vld [vmem:[#allocation2 + $0x50] sm:$0xff]  ;;  %v1506_v28 = vld [vmem:[#allocation2 + $0x68] sm:$0xff]  ;;  %v1505_v32 = vld [vmem:[#allocation2 + $0x60] sm:$0xff] }
 0x4f2   :  { %v1508_v33 = vld [vmem:[#allocation2 + $0x78] sm:$0xff]  ;;  %v1507_v34 = vld [vmem:[#allocation2 + $0x70] sm:$0xff]  ;;  %v1510_v37 = vld [vmem:[#allocation2 + $0x88] sm:$0xff] }
 0x4f3   :  { %1528 = vmatpush1.bf16.msra.mxu0 %v1495_v16  ;;  %v1509_v38 = vld [vmem:[#allocation2 + $0x80] sm:$0xff]  ;;  %v1512_v40 = vld [vmem:[#allocation2 + $0x98] sm:$0xff]  ;;  %v1511_v41 = vld [vmem:[#allocation2 + $0x90] sm:$0xff] }
 0x4f4   :  { %1529 = vmatprep.subr.bf16.mxu0 %v1498_v17  ;;  %v1514_v42 = vld [vmem:[#allocation2 + $0xa8] sm:$0xff]  ;;  %v1513_v44 = vld [vmem:[#allocation2 + $0xa0] sm:$0xff]  ;;  %v1516_v45 = vld [vmem:[#allocation2 + $0xb8] sm:$0xff] }
 0x4f5   :  { %v1515_v47 = vld [vmem:[#allocation2 + $0xb0] sm:$0xff]  ;;  %v1518_v48 = vld [vmem:[#allocation2 + $0xc8] sm:$0xff]  ;;  %v1517_v36 = vld [vmem:[#allocation2 + $0xc0] sm:$0xff] }
 0x4f6   :  { %v1520_v39 = vld [vmem:[#allocation2 + $0xd8] sm:$0xff]  ;;  %v1519_v51 = vld [vmem:[#allocation2 + $0xd0] sm:$0xff]  ;;  %v1522_v53 = vld [vmem:[#allocation2 + $0xe8] sm:$0xff] }
 0x4f7   :  { %1530 = vmatpush1.bf16.msra.mxu0 %v1497_v18  ;;  %v1521_v54 = vld [vmem:[#allocation2 + $0xe0] sm:$0xff]  ;;  %v1524_v55 = vld [vmem:[#allocation2 + $0xf8] sm:$0xff]  ;;  %v1523_v56 = vld [vmem:[#allocation2 + $0xf0] sm:$0xff] }
 0x4f8   :  { %1531 = vmatprep.subr.bf16.mxu0 %v1500_v20 }
 0x4fb   :  { %1532 = vmatpush1.bf16.msra.mxu0 %v1499_v21 }
 0x4fc   :  { %1533 = vmatprep.subr.bf16.mxu0 %v1502_v22 }
 0x4ff   :  { %1534 = vmatpush1.bf16.msra.mxu0 %v1501_v23 }
 0x500   :  { %1535 = vmatprep.subr.bf16.mxu0 %v1504_v24 }
 0x503   :  { %1536 = vmatpush1.bf16.msra.mxu0 %v1503_v27 }
 0x504   :  { %1537 = vmatprep.subr.bf16.mxu0 %v1506_v28 }
 0x507   :  { %1538 = vmatpush1.bf16.msra.mxu0 %v1505_v32 }
 0x508   :  { %1539 = vmatprep.subr.bf16.mxu0 %v1508_v33 }
 0x50b   :  { %1540 = vmatpush1.bf16.msra.mxu0 %v1507_v34 }
 0x50c   :  { %1541 = vmatprep.subr.bf16.mxu0 %v1510_v37 }
 0x50f   :  { %1542 = vmatpush1.bf16.msra.mxu0 %v1509_v38 }
 0x510   :  { %1543 = vmatprep.subr.bf16.mxu0 %v1512_v40 }
 0x513   :  { %1544 = vmatpush1.bf16.msra.mxu0 %v1511_v41 }
 0x514   :  { %1545 = vmatprep.subr.bf16.mxu0 %v1514_v42 }
 0x517   :  { %1546 = vmatpush1.bf16.msra.mxu0 %v1513_v44 }
 0x518   :  { %1547 = vmatprep.subr.bf16.mxu0 %v1516_v45 }
 0x51b   :  { %1548 = vmatpush1.bf16.msra.mxu0 %v1515_v47 }
 0x51c   :  { %1549 = vmatprep.subr.bf16.mxu0 %v1518_v48 }
 0x51f   :  { %1550 = vmatpush1.bf16.msra.mxu0 %v1517_v36 }
 0x520   :  { %1551 = vmatprep.subr.bf16.mxu0 %v1520_v39 }
 0x523   :  { %1552 = vmatpush1.bf16.msra.mxu0 %v1519_v51 }
 0x524   :  { %1553 = vmatprep.subr.bf16.mxu0 %v1522_v53 }
 0x527   :  { %1554 = vmatpush1.bf16.msra.mxu0 %v1521_v54 }
 0x528   :  { %1555 = vmatprep.subr.bf16.mxu0 %v1524_v55 }
 0x52b   :  { %1556 = vmatpush1.bf16.msra.mxu0 %v1523_v56 }
 0x52e   :  { %1558 = vmatmul.mubr.bf16.vlgmr.msra.gmra.mrb[12].mxu0 %v4018_v11 }
 0x52f   :  { %1567 = vmatprep.mubr.bf16.mxu0 %v4022_v12 }
 0x536   :  { %1568 = vmatmul.mubr.bf16.gmra.mrb[16].mxu0 %v4020_v52 }
 0x601   :  { %v4027_v57 = vpop.f32.mrb[12].mxu0 }
 0x602   :  { %v1690_v58 = vmul.f32 %v4027_v57, %v4027_v57  ;;  %1582 = vrot.lane.b32.xlu0 %v4027_v57, %s3659_s0  ;;  %v4033_v59 = vpop.f32.mrb[13].mxu0  ;;  %v1637_v63 = vsel %vm1636_vm1, %v4027_v57, 0.0 }
 0x603   :  { %v4035_v60 = vpop.f32.mrb[14].mxu0 }
 0x604   :  { %v1691_v61 = vmul.f32 %v4035_v60, %v4035_v60  ;;  %v4039_v62 = vpop.f32.mrb[15].mxu0  ;;  %v1638_v0 = vsel %vm1636_vm1, %v4035_v60, 0.0  ;;  %v1714_v29 = vsel %vm1636_vm1, %v1690_v58, 0.0 }
 0x605   :  { %v1639_v1 = vadd.f32 %v1638_v0, %v1637_v63 }
 0x606   :  { %1584 = vrot.lane.b32.xlu0 %v4035_v60, %s3659_s0  ;;  %v1715_v2 = vsel %vm1636_vm1, %v1691_v61, 0.0 }
 0x607   :  { %v1716_v3 = vadd.f32 %v1715_v2, %v1714_v29 }
 0x609   :  { %v4049_v4 = vpop.f32.mrb[16].mxu0 }
 0x60a   :  { %v1692_v30 = vmul.f32 %v4049_v4, %v4049_v4  ;;  %1594 = vrot.lane.b32.xlu0 %v4027_v57, %s3651_s7  ;;  %1586 = vrot.lane.b32.xlu1 %v4049_v4, %s3659_s0  ;;  %v4057_v5 = vpop.f32.mrb[17].mxu0  ;;  %v1640_v31 = vsel %vm1636_vm1, %v4049_v4, 0.0 }
 0x60b   :  { %v4061_v6 = vpop.f32.mrb[18].mxu0  ;;  %v1641_v35 = vadd.f32 %v1640_v31, %v1639_v1 }
 0x60c   :  { %v4063_v7 = vpop.f32.mrb[19].mxu0  ;;  %v1642_v8 = vsel %vm1636_vm1, %v4061_v6, 0.0  ;;  %v1693_v9 = vmul.f32 %v4061_v6, %v4061_v6  ;;  %v1717_v43 = vsel %vm1636_vm1, %v1692_v30, 0.0 }
 0x60d   :  { %v1643_v10 = vadd.f32 %v1642_v8, %v1641_v35  ;;  %v1718_v46 = vadd.f32 %v1717_v43, %v1716_v3 }
 0x60e   :  { %1598 = vrot.lane.b32.xlu0 %v4049_v4, %s3651_s7  ;;  %1588 = vrot.lane.b32.xlu1 %v4061_v6, %s3659_s0  ;;  %v1719_v11 = vsel %vm1636_vm1, %v1693_v9, 0.0 }
 0x60f   :  { %v1720_v50 = vadd.f32 %v1719_v11, %v1718_v46 }
 0x612   :  { %1606 = vrot.lane.b32.xlu0 %v4027_v57, %s3660_s2  ;;  %1596 = vrot.lane.b32.xlu1 %v4035_v60, %s3651_s7 }
 0x616   :  { %1610 = vrot.lane.b32.xlu0 %v4049_v4, %s3660_s2  ;;  %1600 = vrot.lane.b32.xlu1 %v4061_v6, %s3651_s7 }
 0x61a   :  { %1622 = vrot.lane.b32.xlu0 %v4033_v59, %s3659_s0  ;;  %1608 = vrot.lane.b32.xlu1 %v4035_v60, %s3660_s2 }
 0x61e   :  { %1626 = vrot.lane.b32.xlu0 %v4057_v5, %s3659_s0  ;;  %1612 = vrot.lane.b32.xlu1 %v4061_v6, %s3660_s2 }
 0x622   :  { %1624 = vrot.lane.b32.xlu1 %v4039_v62, %s3659_s0 }
 0x626   :  { %1628 = vrot.lane.b32.xlu1 %v4063_v7, %s3659_s0 }
 0x674   :  { %v4091_v52 = vpop.permute.xlu0 %1582 }
 0x675   :  { %v1694_v12 = vmul.f32 %v4091_v52, %v4091_v52  ;;  %v1644_v14 = vsel %vm1636_vm1, %v4091_v52, 0.0 }
 0x676   :  { %v1645_v18 = vadd.f32 %v1644_v14, %v1643_v10 }
 0x677   :  { %v1721_v16 = vsel %vm1636_vm1, %v1694_v12, 0.0 }
 0x678   :  { %v4095_v13 = vpop.permute.xlu0 %1584  ;;  %v1722_v27 = vadd.f32 %v1721_v16, %v1720_v50 }
 0x679   :  { %v1695_v15 = vmul.f32 %v4095_v13, %v4095_v13  ;;  %v1646_v17 = vsel %vm1636_vm1, %v4095_v13, 0.0 }
 0x67a   :  { %v1647_v28 = vadd.f32 %v1646_v17, %v1645_v18 }
 0x67b   :  { %v1723_v22 = vsel %vm1636_vm1, %v1695_v15, 0.0 }
 0x67c   :  { %v4104_v20 = vpop.permute.xlu0 %1594  ;;  %v4106_v21 = vpop.permute.xlu1 %1586  ;;  %v1724_v33 = vadd.f32 %v1723_v22, %v1722_v27 }
 0x67d   :  { %v1648_v23 = vsel %vm1636_vm1, %v4106_v21, 0.0  ;;  %v1696_v24 = vmul.f32 %v4106_v21, %v4106_v21  ;;  %v1698_v40 = vmul.f32 %v4104_v20, %v4104_v20  ;;  %v1652_v47 = vsel %vm1636_vm1, %v4104_v20, 0.0 }
 0x67e   :  { %v1649_v34 = vadd.f32 %v1648_v23, %v1647_v28 }
 0x67f   :  { %v1725_v32 = vsel %vm1636_vm1, %v1696_v24, 0.0  ;;  %v1729_v54 = vsel %vm1636_vm1, %v1698_v40, 0.0 }
 0x680   :  { %v4114_v37 = vpop.permute.xlu0 %1598  ;;  %v4116_v38 = vpop.permute.xlu1 %1588  ;;  %v1726_v44 = vadd.f32 %v1725_v32, %v1724_v33 }
 0x681   :  { %v1650_v41 = vsel %vm1636_vm1, %v4116_v38, 0.0  ;;  %v1697_v42 = vmul.f32 %v4116_v38, %v4116_v38  ;;  %v1700_v55 = vmul.f32 %v4114_v37, %v4114_v37  ;;  %v1656_v0 = vsel %vm1636_vm1, %v4114_v37, 0.0 }
 0x682   :  { %v1651_v45 = vadd.f32 %v1650_v41, %v1649_v34  ;;  %v1706_v34 = vmul.f32 %v4033_v59, %v4033_v59 }
 0x683   :  { %v1727_v48 = vsel %vm1636_vm1, %v1697_v42, 0.0  ;;  %v1733_v30 = vsel %vm1636_vm1, %v1700_v55, 0.0 }
 0x684   :  { %v1728_v36 = vadd.f32 %v1727_v48, %v1726_v44  ;;  %v4127_v39 = vpop.permute.xlu0 %1606  ;;  %v4129_v51 = vpop.permute.xlu1 %1596  ;;  %v1653_v53 = vadd.f32 %v1652_v47, %v1651_v45  ;;  %v1668_v47 = vsel %vm1636_vm1, %v4033_v59, 0.0  ;;  %v1707_v48 = vmul.f32 %v4039_v62, %v4039_v62 }
 0x685   :  { %v1654_v56 = vsel %vm1636_vm1, %v4129_v51, 0.0  ;;  %v1699_v58 = vmul.f32 %v4129_v51, %v4129_v51  ;;  %v1702_v31 = vmul.f32 %v4127_v39, %v4127_v39  ;;  %v1660_v46 = vsel %vm1636_vm1, %v4127_v39, 0.0 }
 0x686   :  { %v1655_v61 = vadd.f32 %v1654_v56, %v1653_v53  ;;  %v1730_v63 = vadd.f32 %v1729_v54, %v1728_v36  ;;  %v1745_v56 = vsel %vm1636_vm1, %v1706_v34, 0.0 }
 0x687   :  { %v1731_v1 = vsel %vm1636_vm1, %v1699_v58, 0.0  ;;  %v1737_v15 = vsel %vm1636_vm1, %v1702_v31, 0.0  ;;  %v1670_v58 = vsel %vm1636_vm1, %v4039_v62, 0.0 }
 0x688   :  { %v1732_v29 = vadd.f32 %v1731_v1, %v1730_v63  ;;  %v4141_v2 = vpop.permute.xlu1 %1600  ;;  %v1657_v3 = vadd.f32 %v1656_v0, %v1655_v61  ;;  %v4150_v9 = vpop.permute.xlu0 %1610  ;;  %v1708_v61 = vmul.f32 %v4057_v5, %v4057_v5 }
 0x689   :  { %v1658_v35 = vsel %vm1636_vm1, %v4141_v2, 0.0  ;;  %v1701_v8 = vmul.f32 %v4141_v2, %v4141_v2  ;;  %v1704_v16 = vmul.f32 %v4150_v9, %v4150_v9  ;;  %v1664_v24 = vsel %vm1636_vm1, %v4150_v9, 0.0 }
 0x68a   :  { %v1659_v43 = vadd.f32 %v1658_v35, %v1657_v3  ;;  %v1734_v10 = vadd.f32 %v1733_v30, %v1732_v29  ;;  %v1747_v29 = vsel %vm1636_vm1, %v1707_v48, 0.0  ;;  %v1672_v3 = vsel %vm1636_vm1, %v4057_v5, 0.0 }
 0x68b   :  { %v1735_v11 = vsel %vm1636_vm1, %v1701_v8, 0.0  ;;  %v1741_v40 = vsel %vm1636_vm1, %v1704_v16, 0.0  ;;  %v1709_v30 = vmul.f32 %v4063_v7, %v4063_v7  ;;  %v1749_v8 = vsel %vm1636_vm1, %v1708_v61, 0.0 }
 0x68c   :  { %v1736_v50 = vadd.f32 %v1735_v11, %v1734_v10  ;;  %v4155_v12 = vpop.permute.xlu1 %1608  ;;  %v1661_v14 = vadd.f32 %v1660_v46, %v1659_v43  ;;  %v4181_v53 = vpop.permute.xlu0 %1622  ;;  %v1674_v43 = vsel %vm1636_vm1, %v4063_v7, 0.0 }
 0x68d   :  { %v1662_v17 = vsel %vm1636_vm1, %v4155_v12, 0.0  ;;  %v1703_v18 = vmul.f32 %v4155_v12, %v4155_v12  ;;  %v1710_v10 = vmul.f32 %v4181_v53, %v4181_v53 }
 0x68e   :  { %v1663_v22 = vadd.f32 %v1662_v17, %v1661_v14  ;;  %v1738_v23 = vadd.f32 %v1737_v15, %v1736_v50  ;;  %v1751_v14 = vsel %vm1636_vm1, %v1709_v30, 0.0  ;;  %v1676_v15 = vsel %vm1636_vm1, %v4181_v53, 0.0 }
 0x68f   :  { %v1739_v27 = vsel %vm1636_vm1, %v1703_v18, 0.0 }
 0x690   :  { %v1740_v28 = vadd.f32 %v1739_v27, %v1738_v23  ;;  %v4167_v32 = vpop.permute.xlu1 %1612  ;;  %v1665_v33 = vadd.f32 %v1664_v24, %v1663_v22  ;;  %v4200_v46 = vpop.permute.xlu0 %1626  ;;  %v1753_v23 = vsel %vm1636_vm1, %v1710_v10, 0.0 }
 0x691   :  { %v1666_v41 = vsel %vm1636_vm1, %v4167_v32, 0.0  ;;  %v1705_v42 = vmul.f32 %v4167_v32, %v4167_v32  ;;  %v1712_v24 = vmul.f32 %v4200_v46, %v4200_v46  ;;  %v1680_v34 = vsel %vm1636_vm1, %v4200_v46, 0.0 }
 0x692   :  { %v1667_v44 = vadd.f32 %v1666_v41, %v1665_v33  ;;  %v1742_v45 = vadd.f32 %v1741_v40, %v1740_v28 }
 0x693   :  { %v1743_v36 = vsel %vm1636_vm1, %v1705_v42, 0.0 }
 0x694   :  { %v1669_v54 = vadd.f32 %v1668_v47, %v1667_v44  ;;  %v1744_v55 = vadd.f32 %v1743_v36, %v1742_v45  ;;  %v4188_v1 = vpop.permute.xlu1 %1624  ;;  %v1757_v45 = vsel %vm1636_vm1, %v1712_v24, 0.0 }
 0x695   :  { %v1711_v16 = vmul.f32 %v4188_v1, %v4188_v1  ;;  %v1678_v27 = vsel %vm1636_vm1, %v4188_v1, 0.0 }
 0x696   :  { %v1671_v63 = vadd.f32 %v1670_v58, %v1669_v54  ;;  %v1746_v0 = vadd.f32 %v1745_v56, %v1744_v55 }
 0x697   :  { %v1755_v40 = vsel %vm1636_vm1, %v1711_v16, 0.0 }
 0x698   :  { %v1748_v31 = vadd.f32 %v1747_v29, %v1746_v0  ;;  %v1673_v35 = vadd.f32 %v1672_v3, %v1671_v63  ;;  %v4207_v22 = vpop.permute.xlu1 %1628 }
 0x699   :  { %v1713_v41 = vmul.f32 %v4207_v22, %v4207_v22  ;;  %v1682_v47 = vsel %vm1636_vm1, %v4207_v22, 0.0 }
 0x69a   :  { %v1675_v11 = vadd.f32 %v1674_v43, %v1673_v35  ;;  %v1750_v50 = vadd.f32 %v1749_v8, %v1748_v31 }
 0x69b   :  { %v1759_v54 = vsel %vm1636_vm1, %v1713_v41, 0.0 }
 0x69c   :  { %v1677_v17 = vadd.f32 %v1676_v15, %v1675_v11  ;;  %v1752_v18 = vadd.f32 %v1751_v14, %v1750_v50 }
 0x69e   :  { %v1679_v28 = vadd.f32 %v1678_v27, %v1677_v17  ;;  %v1754_v33 = vadd.f32 %v1753_v23, %v1752_v18  ;;  %v1634_v17 = vld [vmem:[#allocation11 + $0xa] ss:$0 sm:$0xff] }
 0x6a0   :  { %v1756_v42 = vadd.f32 %v1755_v40, %v1754_v33  ;;  %v1681_v44 = vadd.f32 %v1680_v34, %v1679_v28  ;;  %v1635_v33 = vld [vmem:[#allocation11 + $0xb] ss:$0 sm:$0xff] }
 0x6a2   :  { %v1683_v48 = vadd.f32 %v1682_v47, %v1681_v44  ;;  %v1758_v36 = vadd.f32 %v1757_v45, %v1756_v42 }
 0x6a4   :  { %v1684_v55 = vrot.slane %v1683_v48, 4  ;;  %v1760_v56 = vadd.f32 %v1759_v54, %v1758_v36 }
 0x6a6   :  { %v1685_v58 = vadd.f32 %v1684_v55, %v1683_v48  ;;  %v1761_v61 = vrot.slane %v1760_v56, 4 }
 0x6a8   :  { %v1686_v63 = vrot.slane %v1685_v58, 2  ;;  %v1762_v0 = vadd.f32 %v1761_v61, %v1760_v56 }
 0x6aa   :  { %v1687_v29 = vadd.f32 %v1686_v63, %v1685_v58  ;;  %v1763_v3 = vrot.slane %v1762_v0, 2 }
 0x6ac   :  { %v1688_v30 = vrot.slane %v1687_v29, 1  ;;  %v1764_v31 = vadd.f32 %v1763_v3, %v1762_v0 }
 0x6ae   :  { %v1689_v35 = vadd.f32 %v1688_v30, %v1687_v29  ;;  %v1765_v8 = vrot.slane %v1764_v31, 1 }
 0x6b0   :  { %v1766_v43 = vadd.f32 %v1765_v8, %v1764_v31  ;;  %v1767_v10 = vmul.f32 0.0052083335, %v1689_v35 }
 0x6b2   :  { %v1768_v11 = vmul.f32 0.0052083335, %v1766_v43  ;;  %v1769_v50 = vmul.f32 %v1767_v10, %v1767_v10 }
 0x6b4   :  { %v1770_v14 = vsub.f32 %v1768_v11, %v1769_v50 }
 0x6b6   :  { %v1771_v15 = vadd.f32 1e-05, %v1770_v14 }
 0x6b8   :  { %3530 = vrsqrt.f32 %v1771_v15 }
 0x6c2   :  { %v3531_v16 = vpop.eup %3530 }
 0x6c3   :  { %1774 = vrot.lane.b32.xlu0 %v3531_v16, %s3651_s7 }
 0x735   :  { %v1775_v18 = vpop.permute.xlu0 %1774 }
 0x736   :  { %v1777_v23 = vmul.f32 %v1775_v18, %v1634_v17 }
 0x738   :  { %1779 = vrot.lane.b32.xlu1 %v1777_v23, %s3651_s7  ;;  %v1791_v24 = vrot.slane %v1777_v23, %v3945_v25 }
 0x73c   :  { %1793 = vrot.lane.b32.xlu1 %v1791_v24, %s3651_s7 }
 0x7aa   :  { %v1780_v27 = vpop.permute.xlu1 %1779 }
 0x7ab   :  { %v1782_v28 = vmul.f32 %v1780_v27, %v1767_v10 }
 0x7ad   :  { %1784 = vrot.lane.b32.xlu0 %v1782_v28, %s3651_s7 }
 0x7ae   :  { %v1794_v42 = vpop.permute.xlu1 %1793 }
 0x7af   :  { %v1796_v44 = vmul.f32 %v1794_v42, %v4027_v57  ;;  %v1797_v45 = vmul.f32 %v1794_v42, %v4035_v60  ;;  %v1798_v47 = vmul.f32 %v1794_v42, %v4049_v4  ;;  %v1799_v48 = vmul.f32 %v1794_v42, %v4061_v6 }
 0x7b0   :  { %v1800_v36 = vmul.f32 %v1794_v42, %v4091_v52  ;;  %v1801_v54 = vmul.f32 %v1794_v42, %v4095_v13  ;;  %v1802_v55 = vmul.f32 %v1794_v42, %v4106_v21  ;;  %v1803_v56 = vmul.f32 %v1794_v42, %v4116_v38 }
 0x7b1   :  { %v1804_v58 = vmul.f32 %v1794_v42, %v4104_v20  ;;  %v1805_v61 = vmul.f32 %v1794_v42, %v4129_v51  ;;  %v1806_v57 = vmul.f32 %v1794_v42, %v4114_v37  ;;  %v1807_v60 = vmul.f32 %v1794_v42, %v4141_v2 }
 0x7b2   :  { %v1808_v4 = vmul.f32 %v1794_v42, %v4127_v39  ;;  %v1809_v6 = vmul.f32 %v1794_v42, %v4155_v12  ;;  %v1810_v52 = vmul.f32 %v1794_v42, %v4150_v9  ;;  %v1811_v13 = vmul.f32 %v1794_v42, %v4167_v32 }
 0x7b3   :  { %v1812_v21 = vmul.f32 %v1794_v42, %v4033_v59  ;;  %v1813_v38 = vmul.f32 %v1794_v42, %v4039_v62  ;;  %v1814_v20 = vmul.f32 %v1794_v42, %v4057_v5  ;;  %v1815_v51 = vmul.f32 %v1794_v42, %v4063_v7 }
 0x7b4   :  { %v1816_v37 = vmul.f32 %v1794_v42, %v4181_v53  ;;  %v1817_v2 = vmul.f32 %v1794_v42, %v4188_v1  ;;  %v1818_v39 = vmul.f32 %v1794_v42, %v4200_v46  ;;  %v1819_v12 = vmul.f32 %v1794_v42, %v4207_v22 }
 0x81f   :  { %v1785_v34 = vpop.permute.xlu0 %1784 }
 0x820   :  { %v1787_v40 = vsub.f32 %v1635_v33, %v1785_v34 }
 0x822   :  { %v1823_v41 = vrot.slane %v1787_v40, %v3945_v25 }
 0x824   :  { %1825 = vrot.lane.b32.xlu0 %v1823_v41, %s3651_s7 }
 0x896   :  { %v1826_v63 = vpop.permute.xlu0 %1825 }
 0x897   :  { %v1828_v9 = vadd.f32 %v1826_v63, %v1796_v44  ;;  %v1829_v0 = vadd.f32 %v1826_v63, %v1797_v45  ;;  %v1830_v32 = vadd.f32 %v1826_v63, %v1798_v47  ;;  %v1831_v29 = vadd.f32 %v1826_v63, %v1799_v48 }
 0x898   :  { %v1832_v59 = vadd.f32 %v1826_v63, %v1800_v36  ;;  %v1833_v3 = vadd.f32 %v1826_v63, %v1801_v54  ;;  %v1834_v62 = vadd.f32 %v1826_v63, %v1802_v55  ;;  %v1835_v30 = vadd.f32 %v1826_v63, %v1803_v56 }
 0x899   :  { %v1836_v5 = vadd.f32 %v1826_v63, %v1804_v58  ;;  %v1837_v31 = vadd.f32 %v1826_v63, %v1805_v61  ;;  %v1838_v7 = vadd.f32 %v1826_v63, %v1806_v57  ;;  %v1839_v35 = vadd.f32 %v1826_v63, %v1807_v60 }
 0x89a   :  { %v1840_v53 = vadd.f32 %v1826_v63, %v1808_v4  ;;  %v1841_v8 = vadd.f32 %v1826_v63, %v1809_v6  ;;  %v1842_v1 = vadd.f32 %v1826_v63, %v1810_v52  ;;  %v1843_v43 = vadd.f32 %v1826_v63, %v1811_v13 }
 0x89b   :  { %v1844_v46 = vadd.f32 %v1826_v63, %v1812_v21  ;;  %v1845_v10 = vadd.f32 %v1826_v63, %v1813_v38  ;;  %v1846_v22 = vadd.f32 %v1826_v63, %v1814_v20  ;;  %v1847_v11 = vadd.f32 %v1826_v63, %v1815_v51 }
 0x89c   :  { %v1848_v50 = vadd.f32 %v1826_v63, %v1816_v37  ;;  %v1849_v14 = vadd.f32 %v1826_v63, %v1817_v2  ;;  %v1850_v15 = vadd.f32 %v1826_v63, %v1818_v39  ;;  %v1851_v16 = vadd.f32 %v1826_v63, %v1819_v12 }
 0x89d   :  { %v1852_v17 = vmax.f32 %v1828_v9, 0.0  ;;  %v1853_v18 = vmax.f32 %v1829_v0, 0.0  ;;  %v1854_v23 = vmax.f32 %v1830_v32, 0.0  ;;  %v1855_v24 = vmax.f32 %v1831_v29, 0.0 }
 0x89e   :  { %v1856_v27 = vmax.f32 %v1832_v59, 0.0  ;;  %v1857_v28 = vmax.f32 %v1833_v3, 0.0  ;;  %v1858_v33 = vmax.f32 %v1834_v62, 0.0  ;;  %v1859_v34 = vmax.f32 %v1835_v30, 0.0 }
 0x89f   :  { %v1860_v40 = vmax.f32 %v1836_v5, 0.0  ;;  %v1861_v41 = vmax.f32 %v1837_v31, 0.0  ;;  %v1862_v42 = vmax.f32 %v1838_v7, 0.0  ;;  %v1863_v44 = vmax.f32 %v1839_v35, 0.0 }
 0x8a0   :  { %v1864_v45 = vmax.f32 %v1840_v53, 0.0  ;;  %v1865_v47 = vmax.f32 %v1841_v8, 0.0  ;;  %v1866_v48 = vmax.f32 %v1842_v1, 0.0  ;;  %v1867_v36 = vmax.f32 %v1843_v43, 0.0 }
 0x8a1   :  { %v1868_v54 = vmax.f32 %v1844_v46, 0.0  ;;  %v1869_v55 = vmax.f32 %v1845_v10, 0.0  ;;  %v1870_v56 = vmax.f32 %v1846_v22, 0.0  ;;  %v1871_v58 = vmax.f32 %v1847_v11, 0.0 }
 0x8a2   :  { %v1872_v61 = vmax.f32 %v1848_v50, 0.0  ;;  %v1873_v57 = vmax.f32 %v1849_v14, 0.0  ;;  %v1874_v60 = vmax.f32 %v1850_v15, 0.0  ;;  %v1875_v4 = vmax.f32 %v1851_v16, 0.0 }
 0x8a3   :  { %v1876_v6 = vpack.c.bf16 %v1853_v18, %v1852_v17  ;;  %v1877_v52 = vpack.c.bf16 %v1855_v24, %v1854_v23  ;;  %v1878_v13 = vpack.c.bf16 %v1857_v28, %v1856_v27  ;;  %v1879_v21 = vpack.c.bf16 %v1859_v34, %v1858_v33 }
 0x8a4   :  { %v1880_v38 = vpack.c.bf16 %v1861_v41, %v1860_v40  ;;  %v1881_v20 = vpack.c.bf16 %v1863_v44, %v1862_v42  ;;  %v1882_v51 = vpack.c.bf16 %v1865_v47, %v1864_v45  ;;  %v1883_v37 = vpack.c.bf16 %v1867_v36, %v1866_v48 }
 0x8a5   :  { %v1884_v2 = vpack.c.bf16 %v1869_v55, %v1868_v54  ;;  %v1885_v39 = vpack.c.bf16 %v1871_v58, %v1870_v56  ;;  %v1886_v12 = vpack.c.bf16 %v1873_v57, %v1872_v61  ;;  %v1887_v63 = vpack.c.bf16 %v1875_v4, %v1874_v60 }
 0x8a6   :  { %3636 = dma.done.wait [#allocation5 + $0x1], 512 }
 0x8a7   :  { %3637 = vsyncadd [#allocation5 + $0x1], 4294966784  ;;  %1964 = vmatprep.mubr.bf16.mxu1 %v3649_v49  ;;  %v1893_v9 = vld [vmem:[#allocation3 + $0x8] sm:$0xff]  ;;  %v1892_v0 = vld [vmem:[#allocation3] sm:$0xff] }
 0x8a8   :  { %v1895_v32 = vld [vmem:[#allocation3 + $0x18] sm:$0xff]  ;;  %1932 = vmatprep.subr.bf16.mxu1 %v1893_v9  ;;  %v1894_v29 = vld [vmem:[#allocation3 + $0x10] sm:$0xff] }
 0x8a9   :  { %1933 = vmatpush1.bf16.msra.mxu1 %v1892_v0 }
 0x8aa   :  { %1934 = vmatprep.subr.bf16.mxu1 %v1895_v32 }
 0x8ad   :  { %1935 = vmatpush1.bf16.msra.mxu1 %v1894_v29 }
 0x8b0   :  { %3342 = vmatmul.mubr.msk.bf16.vlgmr.msra.gmra.mrb[8].mxu1 %vm1636_vm1, %v1876_v6 }
 0x8b1   :  { %1974 = vmatprep.mubr.bf16.mxu1 %v3649_v49 }
 0x8b8   :  { %3343 = vmatmul.mubr.msk.bf16.gmra.mrb[12].mxu1 %vm1636_vm1, %v1877_v52 }
 0x8b9   :  { %1984 = vmatprep.mubr.bf16.mxu1 %v3649_v49 }
 0x8c0   :  { %3344 = vmatmul.mubr.msk.bf16.gmra.mrb[16].mxu1 %vm1636_vm1, %v1878_v13 }
 0x8c1   :  { %1994 = vmatprep.mubr.bf16.mxu1 %v3649_v49 }
 0x8c8   :  { %3345 = vmatmul.mubr.msk.bf16.gmra.mrb[20].mxu1 %vm1636_vm1, %v1879_v21 }
 0x8c9   :  { %2004 = vmatprep.mubr.bf16.mxu1 %v3649_v49 }
 0x8d0   :  { %3346 = vmatmul.mubr.msk.bf16.gmra.mrb[24].mxu1 %vm1636_vm1, %v1880_v38 }
 0x8d1   :  { %2014 = vmatprep.mubr.bf16.mxu1 %v3649_v49 }
 0x8d8   :  { %3347 = vmatmul.mubr.msk.bf16.gmra.mrb[28].mxu1 %vm1636_vm1, %v1881_v20 }
 0x8d9   :  { %2024 = vmatprep.mubr.bf16.mxu1 %v3649_v49 }
 0x8e0   :  { %3348 = vmatmul.mubr.msk.bf16.gmra.mrb[32].mxu1 %vm1636_vm1, %v1882_v51 }
 0x8e1   :  { %2034 = vmatprep.mubr.bf16.mxu1 %v3649_v49 }
 0x8e8   :  { %3349 = vmatmul.mubr.msk.bf16.gmra.mrb[36].mxu1 %vm1636_vm1, %v1883_v37 }
 0x8e9   :  { %2044 = vmatprep.mubr.bf16.mxu1 %v3649_v49 }
 0x8f0   :  { %3350 = vmatmul.mubr.msk.bf16.gmra.mrb[40].mxu1 %vm1636_vm1, %v1884_v2 }
 0x8f1   :  { %2054 = vmatprep.mubr.bf16.mxu1 %v3649_v49 }
 0x8f8   :  { %3351 = vmatmul.mubr.msk.bf16.gmra.mrb[44].mxu1 %vm1636_vm1, %v1885_v39 }
 0x8f9   :  { %2064 = vmatprep.mubr.bf16.mxu1 %v3649_v49 }
 0x900   :  { %3352 = vmatmul.mubr.msk.bf16.gmra.mrb[48].mxu1 %vm1636_vm1, %v1886_v12 }
 0x901   :  { %2074 = vmatprep.mubr.bf16.mxu1 %v3649_v49 }
 0x908   :  { %3353 = vmatmul.mubr.msk.bf16.gmra.mrb[52].mxu1 %vm1636_vm1, %v1887_v63 }
 0x983   :  { %v4278_v59 = vpop.f32.mrb[8].mxu1 }
 0x984   :  { %v4280_v3 = vpop.f32.mrb[9].mxu1  ;;  %v2145_v30 = vmul.f32 %v4278_v59, %v4278_v59 }
 0x985   :  { %v4282_v62 = vpop.f32.mrb[10].mxu1  ;;  %v2146_v49 = vmul.f32 %v4280_v3, %v4280_v3 }
 0x986   :  { %v2087_v5 = vadd.f32 %v4282_v62, %v4278_v59  ;;  %v2147_v31 = vmul.f32 %v4282_v62, %v4282_v62  ;;  %v4290_v7 = vpop.f32.mrb[11].mxu1 }
 0x987   :  { %v2116_v35 = vadd.f32 %v4290_v7, %v4280_v3  ;;  %v2148_v53 = vmul.f32 %v4290_v7, %v4290_v7 }
 0x988   :  { %v2193_v8 = vadd.f32 %v2147_v31, %v2145_v30 }
 0x989   :  { %v2222_v1 = vadd.f32 %v2148_v53, %v2146_v49 }
 0x98b   :  { %v4298_v43 = vpop.f32.mrb[12].mxu1 }
 0x98c   :  { %v2088_v46 = vadd.f32 %v2087_v5, %v4298_v43  ;;  %v2149_v10 = vmul.f32 %v4298_v43, %v4298_v43  ;;  %v4303_v22 = vpop.f32.mrb[13].mxu1 }
 0x98d   :  { %v2117_v11 = vadd.f32 %v2116_v35, %v4303_v22  ;;  %v2150_v50 = vmul.f32 %v4303_v22, %v4303_v22  ;;  %v4308_v14 = vpop.f32.mrb[14].mxu1 }
 0x98e   :  { %v2194_v15 = vadd.f32 %v2193_v8, %v2149_v10  ;;  %v2089_v16 = vadd.f32 %v2088_v46, %v4308_v14  ;;  %v2151_v17 = vmul.f32 %v4308_v14, %v4308_v14  ;;  %v4313_v18 = vpop.f32.mrb[15].mxu1 }
 0x98f   :  { %v2223_v23 = vadd.f32 %v2222_v1, %v2150_v50  ;;  %v2118_v24 = vadd.f32 %v2117_v11, %v4313_v18  ;;  %v2152_v27 = vmul.f32 %v4313_v18, %v4313_v18 }
 0x990   :  { %v2195_v28 = vadd.f32 %v2194_v15, %v2151_v17 }
 0x991   :  { %v2224_v33 = vadd.f32 %v2223_v23, %v2152_v27 }
 0x993   :  { %v4318_v34 = vpop.f32.mrb[16].mxu1 }
 0x994   :  { %v2090_v40 = vadd.f32 %v2089_v16, %v4318_v34  ;;  %v2153_v41 = vmul.f32 %v4318_v34, %v4318_v34  ;;  %v4323_v42 = vpop.f32.mrb[17].mxu1 }
 0x995   :  { %v2119_v44 = vadd.f32 %v2118_v24, %v4323_v42  ;;  %v2154_v45 = vmul.f32 %v4323_v42, %v4323_v42  ;;  %v4328_v47 = vpop.f32.mrb[18].mxu1 }
 0x996   :  { %v2196_v48 = vadd.f32 %v2195_v28, %v2153_v41  ;;  %v2091_v36 = vadd.f32 %v2090_v40, %v4328_v47  ;;  %v2155_v54 = vmul.f32 %v4328_v47, %v4328_v47  ;;  %v4333_v55 = vpop.f32.mrb[19].mxu1 }
 0x997   :  { %v2225_v56 = vadd.f32 %v2224_v33, %v2154_v45  ;;  %v2120_v58 = vadd.f32 %v2119_v44, %v4333_v55  ;;  %v2156_v61 = vmul.f32 %v4333_v55, %v4333_v55 }
 0x998   :  { %v2197_v57 = vadd.f32 %v2196_v48, %v2155_v54 }
 0x999   :  { %v2226_v60 = vadd.f32 %v2225_v56, %v2156_v61 }
 0x99b   :  { %v4338_v4 = vpop.f32.mrb[20].mxu1 }
 0x99c   :  { %v2092_v6 = vadd.f32 %v2091_v36, %v4338_v4  ;;  %v2157_v52 = vmul.f32 %v4338_v4, %v4338_v4  ;;  %v4343_v13 = vpop.f32.mrb[21].mxu1 }
 0x99d   :  { %v2121_v21 = vadd.f32 %v2120_v58, %v4343_v13  ;;  %v2158_v38 = vmul.f32 %v4343_v13, %v4343_v13  ;;  %v4348_v20 = vpop.f32.mrb[22].mxu1 }
 0x99e   :  { %v2198_v51 = vadd.f32 %v2197_v57, %v2157_v52  ;;  %v2093_v37 = vadd.f32 %v2092_v6, %v4348_v20  ;;  %v2159_v2 = vmul.f32 %v4348_v20, %v4348_v20  ;;  %v4353_v39 = vpop.f32.mrb[23].mxu1 }
 0x99f   :  { %v2227_v12 = vadd.f32 %v2226_v60, %v2158_v38  ;;  %v2122_v63 = vadd.f32 %v2121_v21, %v4353_v39  ;;  %v2160_v9 = vmul.f32 %v4353_v39, %v4353_v39 }
 0x9a0   :  { %v2199_v0 = vadd.f32 %v2198_v51, %v2159_v2 }
 0x9a1   :  { %v2228_v32 = vadd.f32 %v2227_v12, %v2160_v9 }
 0x9a3   :  { %v4358_v29 = vpop.f32.mrb[24].mxu1 }
 0x9a4   :  { %v2094_v30 = vadd.f32 %v2093_v37, %v4358_v29  ;;  %v2161_v5 = vmul.f32 %v4358_v29, %v4358_v29  ;;  %v4363_v31 = vpop.f32.mrb[25].mxu1 }
 0x9a5   :  { %v2123_v49 = vadd.f32 %v2122_v63, %v4363_v31  ;;  %v2162_v35 = vmul.f32 %v4363_v31, %v4363_v31  ;;  %v4368_v53 = vpop.f32.mrb[26].mxu1 }
 0x9a6   :  { %v2200_v8 = vadd.f32 %v2199_v0, %v2161_v5  ;;  %v2095_v1 = vadd.f32 %v2094_v30, %v4368_v53  ;;  %v2163_v46 = vmul.f32 %v4368_v53, %v4368_v53  ;;  %v4373_v10 = vpop.f32.mrb[27].mxu1 }
 0x9a7   :  { %v2229_v11 = vadd.f32 %v2228_v32, %v2162_v35  ;;  %v2124_v50 = vadd.f32 %v2123_v49, %v4373_v10  ;;  %v2164_v15 = vmul.f32 %v4373_v10, %v4373_v10 }
 0x9a8   :  { %v2201_v16 = vadd.f32 %v2200_v8, %v2163_v46 }
 0x9a9   :  { %v2230_v17 = vadd.f32 %v2229_v11, %v2164_v15 }
 0x9ab   :  { %v4378_v23 = vpop.f32.mrb[28].mxu1 }
 0x9ac   :  { %v2096_v24 = vadd.f32 %v2095_v1, %v4378_v23  ;;  %v2165_v27 = vmul.f32 %v4378_v23, %v4378_v23  ;;  %v4383_v28 = vpop.f32.mrb[29].mxu1 }
 0x9ad   :  { %v2125_v33 = vadd.f32 %v2124_v50, %v4383_v28  ;;  %v2166_v40 = vmul.f32 %v4383_v28, %v4383_v28  ;;  %v4388_v41 = vpop.f32.mrb[30].mxu1 }
 0x9ae   :  { %v2202_v44 = vadd.f32 %v2201_v16, %v2165_v27  ;;  %v2097_v45 = vadd.f32 %v2096_v24, %v4388_v41  ;;  %v2167_v48 = vmul.f32 %v4388_v41, %v4388_v41  ;;  %v4393_v36 = vpop.f32.mrb[31].mxu1 }
 0x9af   :  { %v2231_v54 = vadd.f32 %v2230_v17, %v2166_v40  ;;  %v2126_v56 = vadd.f32 %v2125_v33, %v4393_v36  ;;  %v2168_v58 = vmul.f32 %v4393_v36, %v4393_v36 }
 0x9b0   :  { %v2203_v61 = vadd.f32 %v2202_v44, %v2167_v48 }
 0x9b1   :  { %v2232_v57 = vadd.f32 %v2231_v54, %v2168_v58 }
 0x9b3   :  { %v4398_v60 = vpop.f32.mrb[32].mxu1 }
 0x9b4   :  { %v2098_v6 = vadd.f32 %v2097_v45, %v4398_v60  ;;  %v2169_v52 = vmul.f32 %v4398_v60, %v4398_v60  ;;  %v4403_v21 = vpop.f32.mrb[33].mxu1 }
 0x9b5   :  { %v2127_v38 = vadd.f32 %v2126_v56, %v4403_v21  ;;  %v2170_v51 = vmul.f32 %v4403_v21, %v4403_v21  ;;  %v4408_v37 = vpop.f32.mrb[34].mxu1 }
 0x9b6   :  { %v2204_v2 = vadd.f32 %v2203_v61, %v2169_v52  ;;  %v2099_v12 = vadd.f32 %v2098_v6, %v4408_v37  ;;  %v2171_v63 = vmul.f32 %v4408_v37, %v4408_v37  ;;  %v4413_v9 = vpop.f32.mrb[35].mxu1 }
 0x9b7   :  { %v2233_v0 = vadd.f32 %v2232_v57, %v2170_v51  ;;  %v2128_v32 = vadd.f32 %v2127_v38, %v4413_v9  ;;  %v2172_v30 = vmul.f32 %v4413_v9, %v4413_v9 }
 0x9b8   :  { %v2205_v5 = vadd.f32 %v2204_v2, %v2171_v63 }
 0x9b9   :  { %v2234_v49 = vadd.f32 %v2233_v0, %v2172_v30 }
 0x9bb   :  { %v4418_v35 = vpop.f32.mrb[36].mxu1 }
 0x9bc   :  { %v2100_v8 = vadd.f32 %v2099_v12, %v4418_v35  ;;  %v2173_v1 = vmul.f32 %v4418_v35, %v4418_v35  ;;  %v4423_v46 = vpop.f32.mrb[37].mxu1 }
 0x9bd   :  { %v2129_v11 = vadd.f32 %v2128_v32, %v4423_v46  ;;  %v2174_v50 = vmul.f32 %v4423_v46, %v4423_v46  ;;  %v4428_v15 = vpop.f32.mrb[38].mxu1 }
 0x9be   :  { %v2206_v16 = vadd.f32 %v2205_v5, %v2173_v1  ;;  %v2101_v17 = vadd.f32 %v2100_v8, %v4428_v15  ;;  %v2175_v24 = vmul.f32 %v4428_v15, %v4428_v15  ;;  %v4433_v27 = vpop.f32.mrb[39].mxu1 }
 0x9bf   :  { %v2235_v33 = vadd.f32 %v2234_v49, %v2174_v50  ;;  %v2130_v40 = vadd.f32 %v2129_v11, %v4433_v27  ;;  %v2176_v44 = vmul.f32 %v4433_v27, %v4433_v27 }
 0x9c0   :  { %v2207_v45 = vadd.f32 %v2206_v16, %v2175_v24 }
 0x9c1   :  { %v2236_v48 = vadd.f32 %v2235_v33, %v2176_v44 }
 0x9c3   :  { %v4438_v54 = vpop.f32.mrb[40].mxu1 }
 0x9c4   :  { %v2102_v56 = vadd.f32 %v2101_v17, %v4438_v54  ;;  %v2177_v58 = vmul.f32 %v4438_v54, %v4438_v54  ;;  %v4443_v61 = vpop.f32.mrb[41].mxu1 }
 0x9c5   :  { %v2131_v57 = vadd.f32 %v2130_v40, %v4443_v61  ;;  %v2178_v6 = vmul.f32 %v4443_v61, %v4443_v61  ;;  %v4448_v52 = vpop.f32.mrb[42].mxu1 }
 0x9c6   :  { %v2208_v38 = vadd.f32 %v2207_v45, %v2177_v58  ;;  %v2103_v51 = vadd.f32 %v2102_v56, %v4448_v52  ;;  %v2179_v2 = vmul.f32 %v4448_v52, %v4448_v52  ;;  %v4453_v12 = vpop.f32.mrb[43].mxu1 }
 0x9c7   :  { %v2237_v63 = vadd.f32 %v2236_v48, %v2178_v6  ;;  %v2132_v0 = vadd.f32 %v2131_v57, %v4453_v12  ;;  %v2180_v32 = vmul.f32 %v4453_v12, %v4453_v12 }
 0x9c8   :  { %v2209_v30 = vadd.f32 %v2208_v38, %v2179_v2 }
 0x9c9   :  { %v2238_v5 = vadd.f32 %v2237_v63, %v2180_v32 }
 0x9cb   :  { %v4458_v49 = vpop.f32.mrb[44].mxu1 }
 0x9cc   :  { %5458 = vst [vmem:[#allocation26_spill] sm:$0xff] %v4458_v49  ;;  %v2104_v8 = vadd.f32 %v2103_v51, %v4458_v49  ;;  %v2181_v1 = vmul.f32 %v4458_v49, %v4458_v49  ;;  %v4463_v11 = vpop.f32.mrb[45].mxu1 }
 0x9cd   :  { %5459 = vst [vmem:[#allocation27_spill] sm:$0xff] %v4463_v11  ;;  %v2133_v50 = vadd.f32 %v2132_v0, %v4463_v11  ;;  %v2182_v16 = vmul.f32 %v4463_v11, %v4463_v11  ;;  %v4468_v17 = vpop.f32.mrb[46].mxu1 }
 0x9ce   :  { %5460 = vst [vmem:[#allocation28_spill] sm:$0xff] %v4468_v17  ;;  %v2210_v24 = vadd.f32 %v2209_v30, %v2181_v1  ;;  %v2105_v33 = vadd.f32 %v2104_v8, %v4468_v17  ;;  %v2183_v40 = vmul.f32 %v4468_v17, %v4468_v17  ;;  %v4473_v44 = vpop.f32.mrb[47].mxu1 }
 0x9cf   :  { %5461 = vst [vmem:[#allocation29_spill] sm:$0xff] %v4473_v44  ;;  %v2239_v45 = vadd.f32 %v2238_v5, %v2182_v16  ;;  %v2134_v48 = vadd.f32 %v2133_v50, %v4473_v44  ;;  %v2184_v56 = vmul.f32 %v4473_v44, %v4473_v44 }
 0x9d0   :  { %v2211_v58 = vadd.f32 %v2210_v24, %v2183_v40 }
 0x9d1   :  { %v2240_v57 = vadd.f32 %v2239_v45, %v2184_v56 }
 0x9d3   :  { %v4478_v6 = vpop.f32.mrb[48].mxu1 }
 0x9d4   :  { %5462 = vst [vmem:[#allocation30_spill] sm:$0xff] %v4478_v6  ;;  %v2106_v38 = vadd.f32 %v2105_v33, %v4478_v6  ;;  %v2185_v51 = vmul.f32 %v4478_v6, %v4478_v6  ;;  %v4483_v2 = vpop.f32.mrb[49].mxu1 }
 0x9d5   :  { %5463 = vst [vmem:[#allocation31_spill] sm:$0xff] %v4483_v2  ;;  %v2135_v63 = vadd.f32 %v2134_v48, %v4483_v2  ;;  %v2186_v0 = vmul.f32 %v4483_v2, %v4483_v2  ;;  %v4488_v32 = vpop.f32.mrb[50].mxu1 }
 0x9d6   :  { %5464 = vst [vmem:[#allocation32_spill] sm:$0xff] %v4488_v32  ;;  %v2212_v30 = vadd.f32 %v2211_v58, %v2185_v51  ;;  %v2107_v5 = vadd.f32 %v2106_v38, %v4488_v32  ;;  %v2187_v8 = vmul.f32 %v4488_v32, %v4488_v32  ;;  %v4493_v1 = vpop.f32.mrb[51].mxu1 }
 0x9d7   :  { %5465 = vst [vmem:[#allocation33_spill] sm:$0xff] %v4493_v1  ;;  %v2241_v50 = vadd.f32 %v2240_v57, %v2186_v0  ;;  %v2136_v16 = vadd.f32 %v2135_v63, %v4493_v1  ;;  %v2188_v24 = vmul.f32 %v4493_v1, %v4493_v1 }
 0x9d8   :  { %v2213_v33 = vadd.f32 %v2212_v30, %v2187_v8 }
 0x9d9   :  { %v2242_v40 = vadd.f32 %v2241_v50, %v2188_v24 }
 0x9db   :  { %v4498_v45 = vpop.f32.mrb[52].mxu1 }
 0x9dc   :  { %5466 = vst [vmem:[#allocation34_spill] sm:$0xff] %v4498_v45  ;;  %v2108_v48 = vadd.f32 %v2107_v5, %v4498_v45  ;;  %v2189_v56 = vmul.f32 %v4498_v45, %v4498_v45  ;;  %v4503_v58 = vpop.f32.mrb[53].mxu1 }
 0x9dd   :  { %5467 = vst [vmem:[#allocation35_spill] sm:$0xff] %v4503_v58  ;;  %v2137_v38 = vadd.f32 %v2136_v16, %v4503_v58  ;;  %v2190_v57 = vmul.f32 %v4503_v58, %v4503_v58  ;;  %v4508_v51 = vpop.f32.mrb[54].mxu1 }
 0x9de   :  { %5468 = vst [vmem:[#allocation36_spill] sm:$0xff] %v4508_v51  ;;  %v2214_v63 = vadd.f32 %v2213_v33, %v2189_v56  ;;  %v2109_v0 = vadd.f32 %v2108_v48, %v4508_v51  ;;  %v2191_v30 = vmul.f32 %v4508_v51, %v4508_v51  ;;  %v4513_v8 = vpop.f32.mrb[55].mxu1 }
 0x9df   :  { %5469 = vst [vmem:[#allocation37_spill] sm:$0xff] %v4513_v8  ;;  %v2243_v5 = vadd.f32 %v2242_v40, %v2190_v57  ;;  %v2138_v50 = vadd.f32 %v2137_v38, %v4513_v8  ;;  %v2192_v24 = vmul.f32 %v4513_v8, %v4513_v8 }
 0x9e0   :  { %v2110_v16 = vrot.slane %v2109_v0, 4  ;;  %v2215_v19 = vadd.f32 %v2214_v63, %v2191_v30 }
 0x9e1   :  { %v2139_v26 = vrot.slane %v2138_v50, 4  ;;  %v2244_v58 = vadd.f32 %v2243_v5, %v2192_v24 }
 0x9e2   :  { %v2111_v45 = vadd.f32 %v2110_v16, %v2109_v0  ;;  %v2216_v1 = vrot.slane %v2215_v19, 4 }
 0x9e3   :  { %v2140_v33 = vadd.f32 %v2139_v26, %v2138_v50  ;;  %v2245_v56 = vrot.slane %v2244_v58, 4 }
 0x9e4   :  { %v2112_v48 = vrot.slane %v2111_v45, 2  ;;  %v2217_v32 = vadd.f32 %v2216_v1, %v2215_v19 }
 0x9e5   :  { %v2141_v2 = vrot.slane %v2140_v33, 2  ;;  %v2246_v51 = vadd.f32 %v2245_v56, %v2244_v58 }
 0x9e6   :  { %v2113_v6 = vadd.f32 %v2112_v48, %v2111_v45  ;;  %v2218_v44 = vrot.slane %v2217_v32, 2 }
 0x9e7   :  { %v2142_v40 = vadd.f32 %v2141_v2, %v2140_v33  ;;  %v2247_v57 = vrot.slane %v2246_v51, 2 }
 0x9e8   :  { %v2114_v38 = vrot.slane %v2113_v6, 1  ;;  %v2219_v17 = vadd.f32 %v2218_v44, %v2217_v32 }
 0x9e9   :  { %v2143_v11 = vrot.slane %v2142_v40, 1  ;;  %v2248_v8 = vadd.f32 %v2247_v57, %v2246_v51 }
 0x9ea   :  { %v2115_v49 = vadd.f32 %v2114_v38, %v2113_v6  ;;  %v2220_v63 = vrot.slane %v2219_v17, 1 }
 0x9eb   :  { %v2144_v30 = vadd.f32 %v2143_v11, %v2142_v40  ;;  %v2249_v5 = vrot.slane %v2248_v8, 1  ;;  %v2086_v40 = vld [vmem:[#allocation11 + $0x5] ss:$0 sm:$0xff] }
 0x9ec   :  { %2252 = vrot.lane.b32.xlu0 %v2115_v49, %s3651_s7  ;;  %v2221_v26 = vadd.f32 %v2220_v63, %v2219_v17 }
 0x9ed   :  { %2264 = vrot.lane.b32.xlu1 %v2144_v30, %s3651_s7  ;;  %v2250_v19 = vadd.f32 %v2249_v5, %v2248_v8  ;;  %v2085_v8 = vld [vmem:[#allocation11 + $0x4] ss:$0 sm:$0xff] }
 0x9f0   :  { %2257 = vrot.lane.b32.xlu0 %v2221_v26, %s3651_s7 }
 0x9f1   :  { %2269 = vrot.lane.b32.xlu1 %v2250_v19, %s3651_s7 }
 0xa5e   :  { %v2253_v2 = vpop.permute.xlu0 %2252 }
 0xa5f   :  { %v2255_v1 = vadd.f32 %v2253_v2, %v2115_v49  ;;  %v2265_v45 = vpop.permute.xlu1 %2264 }
 0xa61   :  { %v2261_v44 = vadd.f32 %v2255_v1, %v2144_v30 }
 0xa62   :  { %v2258_v32 = vpop.permute.xlu0 %2257 }
 0xa63   :  { %v2267_v58 = vadd.f32 %v2265_v45, %v2261_v44  ;;  %v2260_v6 = vadd.f32 %v2258_v32, %v2221_v26  ;;  %v2270_v0 = vpop.permute.xlu1 %2269 }
 0xa65   :  { %v2273_v51 = vmul.f32 0.0013020834, %v2267_v58  ;;  %v2262_v11 = vadd.f32 %v2260_v6, %v2250_v19 }
 0xa67   :  { %v2272_v50 = vadd.f32 %v2270_v0, %v2262_v11  ;;  %v2275_v24 = vmul.f32 %v2273_v51, %v2273_v51 }
 0xa69   :  { %v2274_v16 = vmul.f32 0.0013020834, %v2272_v50 }
 0xa6b   :  { %v2276_v33 = vsub.f32 %v2274_v16, %v2275_v24  ;;  %v5474_v16 = vld [vmem:[#allocation30_spill] sm:$0xff] }
 0xa6d   :  { %v2277_v17 = vadd.f32 1e-05, %v2276_v33  ;;  %v5475_v33 = vld [vmem:[#allocation31_spill] sm:$0xff] }
 0xa6f   :  { %3532 = vrsqrt.f32 %v2277_v17  ;;  %v5476_v17 = vld [vmem:[#allocation32_spill] sm:$0xff] }
 0xa79   :  { %v3533_v56 = vpop.eup %3532 }
 0xa7a   :  { %v2279_v48 = vmul.f32 %v3533_v56, %v2085_v8  ;;  %v5477_v8 = vld [vmem:[#allocation33_spill] sm:$0xff]  ;;  %v5478_v56 = vld [vmem:[#allocation34_spill] sm:$0xff] }
 0xa7c   :  { %2283 = vrot.lane.b32.xlu0 %v2279_v48, %s3651_s7  ;;  %v2280_v49 = vmul.f32 %v2279_v48, %v2273_v51 }
 0xa7e   :  { %v2281_v57 = vsub.f32 %v2086_v40, %v2280_v49  ;;  %v5479_v40 = vld [vmem:[#allocation35_spill] sm:$0xff] }
 0xa80   :  { %2288 = vrot.lane.b32.xlu1 %v2281_v57, %s3651_s7 }
 0xaee   :  { %v2284_v38 = vpop.permute.xlu0 %2283 }
 0xaef   :  { %v2286_v63 = vsel %vm1446_vm0, %v2279_v48, %v2284_v38  ;;  %v5480_v38 = vld [vmem:[#allocation36_spill] sm:$0xff] }
 0xaf0   :  { %v2295_v30 = vrot.slane %v2286_v63, %v3945_v25 }
 0xaf2   :  { %v2296_v5 = vmul.f32 %v2295_v30, %v4278_v59  ;;  %v2297_v26 = vmul.f32 %v2295_v30, %v4280_v3  ;;  %v2298_v19 = vmul.f32 %v2295_v30, %v4282_v62  ;;  %v2299_v2 = vmul.f32 %v2295_v30, %v4290_v7  ;;  %v2289_v51 = vpop.permute.xlu1 %2288 }
 0xaf3   :  { %v2300_v1 = vmul.f32 %v2295_v30, %v4298_v43  ;;  %v2301_v45 = vmul.f32 %v2295_v30, %v4303_v22  ;;  %v2302_v44 = vmul.f32 %v2295_v30, %v4308_v14  ;;  %v2303_v32 = vmul.f32 %v2295_v30, %v4313_v18 }
 0xaf4   :  { %v2304_v58 = vmul.f32 %v2295_v30, %v4318_v34  ;;  %v2305_v6 = vmul.f32 %v2295_v30, %v4323_v42  ;;  %v2306_v59 = vmul.f32 %v2295_v30, %v4328_v47  ;;  %v2307_v3 = vmul.f32 %v2295_v30, %v4333_v55 }
 0xaf5   :  { %v2308_v62 = vmul.f32 %v2295_v30, %v4338_v4  ;;  %v2309_v7 = vmul.f32 %v2295_v30, %v4343_v13  ;;  %v2310_v43 = vmul.f32 %v2295_v30, %v4348_v20  ;;  %v2311_v22 = vmul.f32 %v2295_v30, %v4353_v39 }
 0xaf6   :  { %v2312_v14 = vmul.f32 %v2295_v30, %v4358_v29  ;;  %v2313_v18 = vmul.f32 %v2295_v30, %v4363_v31  ;;  %v2314_v34 = vmul.f32 %v2295_v30, %v4368_v53  ;;  %v2315_v42 = vmul.f32 %v2295_v30, %v4373_v10 }
 0xaf7   :  { %v2316_v47 = vmul.f32 %v2295_v30, %v4378_v23  ;;  %v2317_v55 = vmul.f32 %v2295_v30, %v4383_v28  ;;  %v2318_v4 = vmul.f32 %v2295_v30, %v4388_v41  ;;  %v2319_v13 = vmul.f32 %v2295_v30, %v4393_v36 }
 0xaf8   :  { %v2320_v20 = vmul.f32 %v2295_v30, %v4398_v60  ;;  %v2321_v39 = vmul.f32 %v2295_v30, %v4403_v21  ;;  %v2322_v29 = vmul.f32 %v2295_v30, %v4408_v37  ;;  %v2323_v31 = vmul.f32 %v2295_v30, %v4413_v9  ;;  %v5470_v37 = vld [vmem:[#allocation26_spill] sm:$0xff]  ;;  %v5471_v9 = vld [vmem:[#allocation27_spill] sm:$0xff] }
 0xaf9   :  { %v2324_v53 = vmul.f32 %v2295_v30, %v4418_v35  ;;  %v2325_v10 = vmul.f32 %v2295_v30, %v4423_v46  ;;  %v2326_v23 = vmul.f32 %v2295_v30, %v4428_v15  ;;  %v2327_v28 = vmul.f32 %v2295_v30, %v4433_v27  ;;  %v5472_v35 = vld [vmem:[#allocation28_spill] sm:$0xff]  ;;  %v5473_v46 = vld [vmem:[#allocation29_spill] sm:$0xff] }
 0xafa   :  { %v2328_v41 = vmul.f32 %v2295_v30, %v4438_v54  ;;  %v2329_v36 = vmul.f32 %v2295_v30, %v4443_v61  ;;  %v2330_v60 = vmul.f32 %v2295_v30, %v4448_v52  ;;  %v2331_v21 = vmul.f32 %v2295_v30, %v4453_v12 }
 0xafb   :  { %v2332_v11 = vmul.f32 %v2295_v30, %v5470_v37  ;;  %v2333_v0 = vmul.f32 %v2295_v30, %v5471_v9  ;;  %v2334_v50 = vmul.f32 %v2295_v30, %v5472_v35  ;;  %v2335_v24 = vmul.f32 %v2295_v30, %v5473_v46  ;;  %v5481_v37 = vld [vmem:[#allocation37_spill] sm:$0xff] }
 0xafc   :  { %v2336_v15 = vmul.f32 %v2295_v30, %v5474_v16  ;;  %v2291_v27 = vsel %vm1446_vm0, %v2281_v57, %v2289_v51  ;;  %v2337_v54 = vmul.f32 %v2295_v30, %v5475_v33  ;;  %v2338_v61 = vmul.f32 %v2295_v30, %v5476_v17 }
 0xafd   :  { %v2339_v52 = vmul.f32 %v2295_v30, %v5477_v8  ;;  %v2347_v12 = vrot.slane %v2291_v27, %v3945_v25  ;;  %v2340_v48 = vmul.f32 %v2295_v30, %v5478_v56  ;;  %v2341_v49 = vmul.f32 %v2295_v30, %v5479_v40 }
 0xafe   :  { %v2342_v63 = vmul.f32 %v2295_v30, %v5480_v38  ;;  %v2343_v9 = vmul.f32 %v2295_v30, %v5481_v37 }
 0xaff   :  { %v4576_v35 = vadd.f32 %v2347_v12, %v2296_v5  ;;  %v4578_v46 = vadd.f32 %v2347_v12, %v2297_v26  ;;  %v4580_v57 = vadd.f32 %v2347_v12, %v2298_v19  ;;  %v4582_v51 = vadd.f32 %v2347_v12, %v2299_v2 }
 0xb00   :  { %v4584_v16 = vadd.f32 %v2347_v12, %v2300_v1  ;;  %v4586_v33 = vadd.f32 %v2347_v12, %v2301_v45  ;;  %v4588_v27 = vadd.f32 %v2347_v12, %v2302_v44  ;;  %v4590_v17 = vadd.f32 %v2347_v12, %v2303_v32 }
 0xb01   :  { %v4592_v8 = vadd.f32 %v2347_v12, %v2304_v58  ;;  %v4594_v56 = vadd.f32 %v2347_v12, %v2305_v6  ;;  %v4596_v30 = vadd.f32 %v2347_v12, %v2306_v59  ;;  %v4598_v5 = vadd.f32 %v2347_v12, %v2307_v3 }
 0xb02   :  { %v4600_v26 = vadd.f32 %v2347_v12, %v2308_v62  ;;  %v4602_v19 = vadd.f32 %v2347_v12, %v2309_v7  ;;  %v4604_v2 = vadd.f32 %v2347_v12, %v2310_v43  ;;  %v4606_v1 = vadd.f32 %v2347_v12, %v2311_v22 }
 0xb03   :  { %v4608_v45 = vadd.f32 %v2347_v12, %v2312_v14  ;;  %v4610_v44 = vadd.f32 %v2347_v12, %v2313_v18  ;;  %v4612_v32 = vadd.f32 %v2347_v12, %v2314_v34  ;;  %v4614_v58 = vadd.f32 %v2347_v12, %v2315_v42 }
 0xb04   :  { %v4616_v6 = vadd.f32 %v2347_v12, %v2316_v47  ;;  %v4618_v59 = vadd.f32 %v2347_v12, %v2317_v55  ;;  %v4620_v3 = vadd.f32 %v2347_v12, %v2318_v4  ;;  %v4622_v62 = vadd.f32 %v2347_v12, %v2319_v13 }
 0xb05   :  { %v4624_v7 = vadd.f32 %v2347_v12, %v2320_v20  ;;  %v4626_v43 = vadd.f32 %v2347_v12, %v2321_v39  ;;  %v4628_v22 = vadd.f32 %v2347_v12, %v2322_v29  ;;  %v4630_v14 = vadd.f32 %v2347_v12, %v2323_v31 }
 0xb06   :  { %v4632_v18 = vadd.f32 %v2347_v12, %v2324_v53  ;;  %v4634_v34 = vadd.f32 %v2347_v12, %v2325_v10  ;;  %v4636_v42 = vadd.f32 %v2347_v12, %v2326_v23  ;;  %v4638_v47 = vadd.f32 %v2347_v12, %v2327_v28 }
 0xb07   :  { %v4640_v55 = vadd.f32 %v2347_v12, %v2328_v41  ;;  %v4642_v4 = vadd.f32 %v2347_v12, %v2329_v36  ;;  %v4644_v13 = vadd.f32 %v2347_v12, %v2330_v60  ;;  %v4646_v20 = vadd.f32 %v2347_v12, %v2331_v21 }
 0xb08   :  { %v4648_v39 = vadd.f32 %v2347_v12, %v2332_v11  ;;  %v4650_v29 = vadd.f32 %v2347_v12, %v2333_v0  ;;  %v4652_v31 = vadd.f32 %v2347_v12, %v2334_v50  ;;  %v4654_v53 = vadd.f32 %v2347_v12, %v2335_v24 }
 0xb09   :  { %v4656_v10 = vadd.f32 %v2347_v12, %v2336_v15  ;;  %v4658_v23 = vadd.f32 %v2347_v12, %v2337_v54  ;;  %v4660_v28 = vadd.f32 %v2347_v12, %v2338_v61  ;;  %v4662_v41 = vadd.f32 %v2347_v12, %v2339_v52 }
 0xb0a   :  { %v4664_v36 = vadd.f32 %v2347_v12, %v2340_v48  ;;  %v4666_v60 = vadd.f32 %v2347_v12, %v2341_v49  ;;  %v4668_v21 = vadd.f32 %v2347_v12, %v2342_v63  ;;  %v4670_v11 = vadd.f32 %v2347_v12, %v2343_v9 }
 0xb0b   :  { %v2396_v0 = vmax.f32 %v4576_v35, 0.0  ;;  %v2397_v50 = vmax.f32 %v4578_v46, 0.0  ;;  %v2398_v24 = vmax.f32 %v4580_v57, 0.0  ;;  %v2399_v15 = vmax.f32 %v4582_v51, 0.0 }
 0xb0c   :  { %v2400_v54 = vmax.f32 %v4584_v16, 0.0  ;;  %v2401_v61 = vmax.f32 %v4586_v33, 0.0  ;;  %v2402_v52 = vmax.f32 %v4588_v27, 0.0  ;;  %v2403_v48 = vmax.f32 %v4590_v17, 0.0 }
 0xb0d   :  { %v2404_v40 = vmax.f32 %v4592_v8, 0.0  ;;  %v2405_v12 = vmax.f32 %v4594_v56, 0.0  ;;  %v2406_v49 = vmax.f32 %v4596_v30, 0.0  ;;  %v2407_v38 = vmax.f32 %v4598_v5, 0.0 }
 0xb0e   :  { %v2408_v63 = vmax.f32 %v4600_v26, 0.0  ;;  %v2409_v37 = vmax.f32 %v4602_v19, 0.0  ;;  %v2410_v9 = vmax.f32 %v4604_v2, 0.0  ;;  %v2411_v35 = vmax.f32 %v4606_v1, 0.0 }
 0xb0f   :  { %v2412_v46 = vmax.f32 %v4608_v45, 0.0  ;;  %v2413_v57 = vmax.f32 %v4610_v44, 0.0  ;;  %v2414_v51 = vmax.f32 %v4612_v32, 0.0  ;;  %v2415_v16 = vmax.f32 %v4614_v58, 0.0 }
 0xb10   :  { %v2416_v33 = vmax.f32 %v4616_v6, 0.0  ;;  %v2417_v27 = vmax.f32 %v4618_v59, 0.0  ;;  %v2418_v17 = vmax.f32 %v4620_v3, 0.0  ;;  %v2419_v8 = vmax.f32 %v4622_v62, 0.0 }
 0xb11   :  { %v2420_v56 = vmax.f32 %v4624_v7, 0.0  ;;  %v2421_v30 = vmax.f32 %v4626_v43, 0.0  ;;  %v2422_v5 = vmax.f32 %v4628_v22, 0.0  ;;  %v2423_v26 = vmax.f32 %v4630_v14, 0.0 }
 0xb12   :  { %v2424_v19 = vmax.f32 %v4632_v18, 0.0  ;;  %v2425_v2 = vmax.f32 %v4634_v34, 0.0  ;;  %v2426_v1 = vmax.f32 %v4636_v42, 0.0  ;;  %v2427_v45 = vmax.f32 %v4638_v47, 0.0 }
 0xb13   :  { %v2428_v44 = vmax.f32 %v4640_v55, 0.0  ;;  %v2429_v32 = vmax.f32 %v4642_v4, 0.0  ;;  %v2430_v58 = vmax.f32 %v4644_v13, 0.0  ;;  %v2431_v6 = vmax.f32 %v4646_v20, 0.0 }
 0xb14   :  { %v2432_v59 = vmax.f32 %v4648_v39, 0.0  ;;  %v2433_v3 = vmax.f32 %v4650_v29, 0.0  ;;  %v2434_v62 = vmax.f32 %v4652_v31, 0.0  ;;  %v2435_v7 = vmax.f32 %v4654_v53, 0.0 }
 0xb15   :  { %v2436_v43 = vmax.f32 %v4656_v10, 0.0  ;;  %v2437_v22 = vmax.f32 %v4658_v23, 0.0  ;;  %v2438_v14 = vmax.f32 %v4660_v28, 0.0  ;;  %v2439_v18 = vmax.f32 %v4662_v41, 0.0 }
 0xb16   :  { %v2440_v34 = vmax.f32 %v4664_v36, 0.0  ;;  %v2441_v42 = vmax.f32 %v4666_v60, 0.0  ;;  %v2442_v47 = vmax.f32 %v4668_v21, 0.0  ;;  %v2443_v55 = vmax.f32 %v4670_v11, 0.0 }
 0xb17   :  { %v4720_v4 = vpack.c.bf16 %v2398_v24, %v2396_v0  ;;  %v2445_v13 = vpack.c.bf16 %v2399_v15, %v2397_v50  ;;  %v4722_v20 = vpack.c.bf16 %v2402_v52, %v2400_v54  ;;  %v4724_v39 = vpack.c.bf16 %v2403_v48, %v2401_v61 }
 0xb18   :  { %v4726_v29 = vpack.c.bf16 %v2406_v49, %v2404_v40  ;;  %v4728_v31 = vpack.c.bf16 %v2407_v38, %v2405_v12  ;;  %v4730_v53 = vpack.c.bf16 %v2410_v9, %v2408_v63  ;;  %v4732_v10 = vpack.c.bf16 %v2411_v35, %v2409_v37 }
 0xb19   :  { %v4734_v23 = vpack.c.bf16 %v2414_v51, %v2412_v46  ;;  %v4736_v28 = vpack.c.bf16 %v2415_v16, %v2413_v57  ;;  %v4738_v41 = vpack.c.bf16 %v2418_v17, %v2416_v33  ;;  %v4740_v36 = vpack.c.bf16 %v2419_v8, %v2417_v27 }
 0xb1a   :  { %v4742_v60 = vpack.c.bf16 %v2422_v5, %v2420_v56  ;;  %v4744_v21 = vpack.c.bf16 %v2423_v26, %v2421_v30  ;;  %v4746_v11 = vpack.c.bf16 %v2426_v1, %v2424_v19  ;;  %v4748_v0 = vpack.c.bf16 %v2427_v45, %v2425_v2 }
 0xb1b   :  { %v4750_v50 = vpack.c.bf16 %v2430_v58, %v2428_v44  ;;  %v4752_v24 = vpack.c.bf16 %v2431_v6, %v2429_v32  ;;  %v4754_v15 = vpack.c.bf16 %v2434_v62, %v2432_v59  ;;  %v4756_v54 = vpack.c.bf16 %v2435_v7, %v2433_v3 }
 0xb1c   :  { %v4758_v61 = vpack.c.bf16 %v2438_v14, %v2436_v43  ;;  %v4760_v52 = vpack.c.bf16 %v2439_v18, %v2437_v22  ;;  %v4762_v48 = vpack.c.bf16 %v2442_v47, %v2440_v34  ;;  %v4764_v40 = vpack.c.bf16 %v2443_v55, %v2441_v42 }
 0xb1d   :  { %3638 = dma.done.wait [#allocation5 + $0x2], 4096 }
 0xb1e   :  { %3639 = vsyncadd [#allocation5 + $0x2], 4294963200  ;;  %2534 = vmatprep.mubr.bf16.mxu1 %v2445_v13  ;;  %v2471_v12 = vld [vmem:[#allocation4 + $0x8] sm:$0xff]  ;;  %v2470_v49 = vld [vmem:[#allocation4] sm:$0xff]  ;;  %vm2834_vm2 = vcmask 1040384  }
 0xb1f   :  { %v2473_v38 = vld [vmem:[#allocation4 + $0x18] sm:$0xff]  ;;  %2502 = vmatprep.subr.bf16.mxu1 %v2471_v12  ;;  %v2472_v63 = vld [vmem:[#allocation4 + $0x10] sm:$0xff]  ;;  %v2475_v37 = vld [vmem:[#allocation4 + $0x28] sm:$0xff] }
 0xb20   :  { %2503 = vmatpush1.bf16.msra.mxu1 %v2470_v49  ;;  %v2474_v9 = vld [vmem:[#allocation4 + $0x20] sm:$0xff]  ;;  %v2477_v35 = vld [vmem:[#allocation4 + $0x38] sm:$0xff]  ;;  %v2476_v46 = vld [vmem:[#allocation4 + $0x30] sm:$0xff] }
 0xb21   :  { %2504 = vmatprep.subr.bf16.mxu1 %v2473_v38  ;;  %v2479_v57 = vld [vmem:[#allocation4 + $0x48] sm:$0xff]  ;;  %v2478_v51 = vld [vmem:[#allocation4 + $0x40] sm:$0xff]  ;;  %v2481_v16 = vld [vmem:[#allocation4 + $0x58] sm:$0xff] }
 0xb22   :  { %v2480_v33 = vld [vmem:[#allocation4 + $0x50] sm:$0xff]  ;;  %v2483_v27 = vld [vmem:[#allocation4 + $0x68] sm:$0xff]  ;;  %v2482_v17 = vld [vmem:[#allocation4 + $0x60] sm:$0xff] }
 0xb23   :  { %v2485_v8 = vld [vmem:[#allocation4 + $0x78] sm:$0xff]  ;;  %v2484_v56 = vld [vmem:[#allocation4 + $0x70] sm:$0xff]  ;;  %v2487_v30 = vld [vmem:[#allocation4 + $0x88] sm:$0xff] }
 0xb24   :  { %2505 = vmatpush1.bf16.msra.mxu1 %v2472_v63  ;;  %v2486_v5 = vld [vmem:[#allocation4 + $0x80] sm:$0xff]  ;;  %v2489_v26 = vld [vmem:[#allocation4 + $0x98] sm:$0xff]  ;;  %v2488_v19 = vld [vmem:[#allocation4 + $0x90] sm:$0xff] }
 0xb25   :  { %2506 = vmatprep.subr.bf16.mxu1 %v2475_v37  ;;  %v2491_v2 = vld [vmem:[#allocation4 + $0xa8] sm:$0xff]  ;;  %v2490_v1 = vld [vmem:[#allocation4 + $0xa0] sm:$0xff]  ;;  %v2493_v45 = vld [vmem:[#allocation4 + $0xb8] sm:$0xff] }
 0xb26   :  { %v2492_v44 = vld [vmem:[#allocation4 + $0xb0] sm:$0xff]  ;;  %v2495_v32 = vld [vmem:[#allocation4 + $0xc8] sm:$0xff]  ;;  %v2494_v58 = vld [vmem:[#allocation4 + $0xc0] sm:$0xff] }
 0xb27   :  { %v2497_v6 = vld [vmem:[#allocation4 + $0xd8] sm:$0xff]  ;;  %v2496_v59 = vld [vmem:[#allocation4 + $0xd0] sm:$0xff]  ;;  %v2499_v3 = vld [vmem:[#allocation4 + $0xe8] sm:$0xff] }
 0xb28   :  { %2507 = vmatpush1.bf16.msra.mxu1 %v2474_v9  ;;  %v2498_v62 = vld [vmem:[#allocation4 + $0xe0] sm:$0xff]  ;;  %v2501_v7 = vld [vmem:[#allocation4 + $0xf8] sm:$0xff]  ;;  %v2500_v43 = vld [vmem:[#allocation4 + $0xf0] sm:$0xff] }
 0xb29   :  { %2508 = vmatprep.subr.bf16.mxu1 %v2477_v35 }
 0xb2c   :  { %2509 = vmatpush1.bf16.msra.mxu1 %v2476_v46 }
 0xb2d   :  { %2510 = vmatprep.subr.bf16.mxu1 %v2479_v57 }
 0xb30   :  { %2511 = vmatpush1.bf16.msra.mxu1 %v2478_v51 }
 0xb31   :  { %2512 = vmatprep.subr.bf16.mxu1 %v2481_v16 }
 0xb34   :  { %2513 = vmatpush1.bf16.msra.mxu1 %v2480_v33 }
 0xb35   :  { %2514 = vmatprep.subr.bf16.mxu1 %v2483_v27 }
 0xb38   :  { %2515 = vmatpush1.bf16.msra.mxu1 %v2482_v17 }
 0xb39   :  { %2516 = vmatprep.subr.bf16.mxu1 %v2485_v8 }
 0xb3c   :  { %2517 = vmatpush1.bf16.msra.mxu1 %v2484_v56 }
 0xb3d   :  { %2518 = vmatprep.subr.bf16.mxu1 %v2487_v30 }
 0xb40   :  { %2519 = vmatpush1.bf16.msra.mxu1 %v2486_v5 }
 0xb41   :  { %2520 = vmatprep.subr.bf16.mxu1 %v2489_v26 }
 0xb44   :  { %2521 = vmatpush1.bf16.msra.mxu1 %v2488_v19 }
 0xb45   :  { %2522 = vmatprep.subr.bf16.mxu1 %v2491_v2 }
 0xb48   :  { %2523 = vmatpush1.bf16.msra.mxu1 %v2490_v1 }
 0xb49   :  { %2524 = vmatprep.subr.bf16.mxu1 %v2493_v45 }
 0xb4c   :  { %2525 = vmatpush1.bf16.msra.mxu1 %v2492_v44 }
 0xb4d   :  { %2526 = vmatprep.subr.bf16.mxu1 %v2495_v32 }
 0xb50   :  { %2527 = vmatpush1.bf16.msra.mxu1 %v2494_v58 }
 0xb51   :  { %2528 = vmatprep.subr.bf16.mxu1 %v2497_v6 }
 0xb54   :  { %2529 = vmatpush1.bf16.msra.mxu1 %v2496_v59 }
 0xb55   :  { %2530 = vmatprep.subr.bf16.mxu1 %v2499_v3 }
 0xb58   :  { %2531 = vmatpush1.bf16.msra.mxu1 %v2498_v62 }
 0xb59   :  { %2532 = vmatprep.subr.bf16.mxu1 %v2501_v7 }
 0xb5c   :  { %2533 = vmatpush1.bf16.msra.mxu1 %v2500_v43 }
 0xb5f   :  { %2535 = vmatmul.mubr.bf16.vlgmr.msra.gmra.mrb[56].mxu1 %v4720_v4 }
 0xb60   :  { %2544 = vmatprep.mubr.bf16.mxu1 %v4724_v39 }
 0xb67   :  { %2545 = vmatmul.mubr.bf16.gmra.mrb[60].mxu1 %v4722_v20 }
 0xb68   :  { %2554 = vmatprep.mubr.bf16.mxu1 %v4728_v31 }
 0xb6f   :  { %2555 = vmatmul.mubr.bf16.gmra.mrb[64].mxu1 %v4726_v29 }
 0xb70   :  { %2564 = vmatprep.mubr.bf16.mxu1 %v4732_v10 }
 0xb77   :  { %2565 = vmatmul.mubr.bf16.gmra.mrb[68].mxu1 %v4730_v53 }
 0xb78   :  { %2574 = vmatprep.mubr.bf16.mxu1 %v4736_v28 }
 0xb7f   :  { %2575 = vmatmul.mubr.bf16.gmra.mrb[72].mxu1 %v4734_v23 }
 0xb80   :  { %2584 = vmatprep.mubr.bf16.mxu1 %v4740_v36 }
 0xb87   :  { %2585 = vmatmul.mubr.bf16.gmra.mrb[76].mxu1 %v4738_v41 }
 0xb88   :  { %2594 = vmatprep.mubr.bf16.mxu1 %v4744_v21 }
 0xb8f   :  { %2595 = vmatmul.mubr.bf16.gmra.mrb[80].mxu1 %v4742_v60 }
 0xb90   :  { %2604 = vmatprep.mubr.bf16.mxu1 %v4748_v0 }
 0xb97   :  { %2605 = vmatmul.mubr.bf16.gmra.mrb[84].mxu1 %v4746_v11 }
 0xb98   :  { %2614 = vmatprep.mubr.bf16.mxu1 %v4752_v24 }
 0xb9f   :  { %2615 = vmatmul.mubr.bf16.gmra.mrb[88].mxu1 %v4750_v50 }
 0xba0   :  { %2624 = vmatprep.mubr.bf16.mxu1 %v4756_v54 }
 0xba7   :  { %2625 = vmatmul.mubr.bf16.gmra.mrb[92].mxu1 %v4754_v15 }
 0xba8   :  { %2634 = vmatprep.mubr.bf16.mxu1 %v4760_v52 }
 0xbaf   :  { %2635 = vmatmul.mubr.bf16.gmra.mrb[96].mxu1 %v4758_v61 }
 0xbb0   :  { %2644 = vmatprep.mubr.bf16.mxu1 %v4764_v40 }
 0xbb7   :  { %2645 = vmatmul.mubr.bf16.gmra.mrb[100].mxu1 %v4762_v48 }
 0xc32   :  { %v4789_v22 = vpop.f32.mrb[56].mxu1 }
 0xc33   :  { %v4791_v14 = vpop.f32.mrb[57].mxu1  ;;  %v2713_v34 = vmul.f32 %v4789_v22, %v4789_v22 }
 0xc34   :  { %v4793_v18 = vpop.f32.mrb[58].mxu1  ;;  %v2714_v4 = vmul.f32 %v4791_v14, %v4791_v14 }
 0xc35   :  { %v2655_v42 = vadd.f32 %v4793_v18, %v4789_v22  ;;  %v2715_v47 = vmul.f32 %v4793_v18, %v4793_v18  ;;  %v4801_v55 = vpop.f32.mrb[59].mxu1 }
 0xc36   :  { %v2684_v13 = vadd.f32 %v4801_v55, %v4791_v14  ;;  %v2716_v20 = vmul.f32 %v4801_v55, %v4801_v55 }
 0xc37   :  { %v2761_v39 = vadd.f32 %v2715_v47, %v2713_v34 }
 0xc38   :  { %v2790_v29 = vadd.f32 %v2716_v20, %v2714_v4 }
 0xc3a   :  { %v4809_v31 = vpop.f32.mrb[60].mxu1 }
 0xc3b   :  { %v2656_v53 = vadd.f32 %v2655_v42, %v4809_v31  ;;  %v2717_v10 = vmul.f32 %v4809_v31, %v4809_v31  ;;  %v4814_v23 = vpop.f32.mrb[61].mxu1 }
 0xc3c   :  { %v2685_v28 = vadd.f32 %v2684_v13, %v4814_v23  ;;  %v2718_v41 = vmul.f32 %v4814_v23, %v4814_v23  ;;  %v4819_v36 = vpop.f32.mrb[62].mxu1 }
 0xc3d   :  { %v2762_v60 = vadd.f32 %v2761_v39, %v2717_v10  ;;  %v2657_v21 = vadd.f32 %v2656_v53, %v4819_v36  ;;  %v2719_v11 = vmul.f32 %v4819_v36, %v4819_v36  ;;  %v4824_v0 = vpop.f32.mrb[63].mxu1 }
 0xc3e   :  { %v2791_v50 = vadd.f32 %v2790_v29, %v2718_v41  ;;  %v2686_v24 = vadd.f32 %v2685_v28, %v4824_v0  ;;  %v2720_v15 = vmul.f32 %v4824_v0, %v4824_v0 }
 0xc3f   :  { %v2763_v54 = vadd.f32 %v2762_v60, %v2719_v11 }
 0xc40   :  { %v2792_v61 = vadd.f32 %v2791_v50, %v2720_v15 }
 0xc42   :  { %v4829_v52 = vpop.f32.mrb[64].mxu1 }
 0xc43   :  { %v2658_v48 = vadd.f32 %v2657_v21, %v4829_v52  ;;  %v2721_v40 = vmul.f32 %v4829_v52, %v4829_v52  ;;  %v4834_v12 = vpop.f32.mrb[65].mxu1 }
 0xc44   :  { %v2687_v49 = vadd.f32 %v2686_v24, %v4834_v12  ;;  %v2722_v38 = vmul.f32 %v4834_v12, %v4834_v12  ;;  %v4839_v63 = vpop.f32.mrb[66].mxu1 }
 0xc45   :  { %v2764_v37 = vadd.f32 %v2763_v54, %v2721_v40  ;;  %v2659_v9 = vadd.f32 %v2658_v48, %v4839_v63  ;;  %v2723_v35 = vmul.f32 %v4839_v63, %v4839_v63  ;;  %v4844_v46 = vpop.f32.mrb[67].mxu1 }
 0xc46   :  { %v2793_v57 = vadd.f32 %v2792_v61, %v2722_v38  ;;  %v2688_v51 = vadd.f32 %v2687_v49, %v4844_v46  ;;  %v2724_v16 = vmul.f32 %v4844_v46, %v4844_v46 }
 0xc47   :  { %v2765_v33 = vadd.f32 %v2764_v37, %v2723_v35 }
 0xc48   :  { %v2794_v27 = vadd.f32 %v2793_v57, %v2724_v16 }
 0xc4a   :  { %v4849_v17 = vpop.f32.mrb[68].mxu1 }
 0xc4b   :  { %v2660_v8 = vadd.f32 %v2659_v9, %v4849_v17  ;;  %v2725_v56 = vmul.f32 %v4849_v17, %v4849_v17  ;;  %v4854_v30 = vpop.f32.mrb[69].mxu1 }
 0xc4c   :  { %v2689_v5 = vadd.f32 %v2688_v51, %v4854_v30  ;;  %v2726_v26 = vmul.f32 %v4854_v30, %v4854_v30  ;;  %v4859_v19 = vpop.f32.mrb[70].mxu1 }
 0xc4d   :  { %v2766_v2 = vadd.f32 %v2765_v33, %v2725_v56  ;;  %v2661_v1 = vadd.f32 %v2660_v8, %v4859_v19  ;;  %v2727_v45 = vmul.f32 %v4859_v19, %v4859_v19  ;;  %v4864_v44 = vpop.f32.mrb[71].mxu1 }
 0xc4e   :  { %v2795_v32 = vadd.f32 %v2794_v27, %v2726_v26  ;;  %v2690_v58 = vadd.f32 %v2689_v5, %v4864_v44  ;;  %v2728_v6 = vmul.f32 %v4864_v44, %v4864_v44 }
 0xc4f   :  { %v2767_v59 = vadd.f32 %v2766_v2, %v2727_v45 }
 0xc50   :  { %v2796_v3 = vadd.f32 %v2795_v32, %v2728_v6 }
 0xc52   :  { %v4869_v62 = vpop.f32.mrb[72].mxu1 }
 0xc53   :  { %v2662_v7 = vadd.f32 %v2661_v1, %v4869_v62  ;;  %v2729_v43 = vmul.f32 %v4869_v62, %v4869_v62  ;;  %v4874_v34 = vpop.f32.mrb[73].mxu1 }
 0xc54   :  { %v2691_v42 = vadd.f32 %v2690_v58, %v4874_v34  ;;  %v2730_v47 = vmul.f32 %v4874_v34, %v4874_v34  ;;  %v4879_v4 = vpop.f32.mrb[74].mxu1 }
 0xc55   :  { %v2768_v13 = vadd.f32 %v2767_v59, %v2729_v43  ;;  %v2663_v20 = vadd.f32 %v2662_v7, %v4879_v4  ;;  %v2731_v39 = vmul.f32 %v4879_v4, %v4879_v4  ;;  %v4884_v29 = vpop.f32.mrb[75].mxu1 }
 0xc56   :  { %v2797_v53 = vadd.f32 %v2796_v3, %v2730_v47  ;;  %v2692_v10 = vadd.f32 %v2691_v42, %v4884_v29  ;;  %v2732_v28 = vmul.f32 %v4884_v29, %v4884_v29 }
 0xc57   :  { %v2769_v41 = vadd.f32 %v2768_v13, %v2731_v39 }
 0xc58   :  { %v2798_v60 = vadd.f32 %v2797_v53, %v2732_v28 }
 0xc5a   :  { %v4889_v21 = vpop.f32.mrb[76].mxu1 }
 0xc5b   :  { %v2664_v11 = vadd.f32 %v2663_v20, %v4889_v21  ;;  %v2733_v50 = vmul.f32 %v4889_v21, %v4889_v21  ;;  %v4894_v24 = vpop.f32.mrb[77].mxu1 }
 0xc5c   :  { %v2693_v15 = vadd.f32 %v2692_v10, %v4894_v24  ;;  %v2734_v54 = vmul.f32 %v4894_v24, %v4894_v24  ;;  %v4899_v61 = vpop.f32.mrb[78].mxu1 }
 0xc5d   :  { %v2770_v48 = vadd.f32 %v2769_v41, %v2733_v50  ;;  %v2665_v40 = vadd.f32 %v2664_v11, %v4899_v61  ;;  %v2735_v49 = vmul.f32 %v4899_v61, %v4899_v61  ;;  %v4904_v38 = vpop.f32.mrb[79].mxu1 }
 0xc5e   :  { %v2799_v37 = vadd.f32 %v2798_v60, %v2734_v54  ;;  %v2694_v9 = vadd.f32 %v2693_v15, %v4904_v38  ;;  %v2736_v35 = vmul.f32 %v4904_v38, %v4904_v38 }
 0xc5f   :  { %v2771_v57 = vadd.f32 %v2770_v48, %v2735_v49 }
 0xc60   :  { %v2800_v51 = vadd.f32 %v2799_v37, %v2736_v35 }
 0xc62   :  { %v4909_v16 = vpop.f32.mrb[80].mxu1 }
 0xc63   :  { %v2666_v33 = vadd.f32 %v2665_v40, %v4909_v16  ;;  %v2737_v27 = vmul.f32 %v4909_v16, %v4909_v16  ;;  %v4914_v8 = vpop.f32.mrb[81].mxu1 }
 0xc64   :  { %v2695_v56 = vadd.f32 %v2694_v9, %v4914_v8  ;;  %v2738_v5 = vmul.f32 %v4914_v8, %v4914_v8  ;;  %v4919_v26 = vpop.f32.mrb[82].mxu1 }
 0xc65   :  { %v2772_v2 = vadd.f32 %v2771_v57, %v2737_v27  ;;  %v2667_v1 = vadd.f32 %v2666_v33, %v4919_v26  ;;  %v2739_v45 = vmul.f32 %v4919_v26, %v4919_v26  ;;  %v4924_v32 = vpop.f32.mrb[83].mxu1 }
 0xc66   :  { %v2801_v58 = vadd.f32 %v2800_v51, %v2738_v5  ;;  %v2696_v6 = vadd.f32 %v2695_v56, %v4924_v32  ;;  %v2740_v59 = vmul.f32 %v4924_v32, %v4924_v32 }
 0xc67   :  { %v2773_v3 = vadd.f32 %v2772_v2, %v2739_v45 }
 0xc68   :  { %v2802_v7 = vadd.f32 %v2801_v58, %v2740_v59 }
 0xc6a   :  { %v4929_v43 = vpop.f32.mrb[84].mxu1 }
 0xc6b   :  { %v2668_v42 = vadd.f32 %v2667_v1, %v4929_v43  ;;  %v2741_v47 = vmul.f32 %v4929_v43, %v4929_v43  ;;  %v4934_v13 = vpop.f32.mrb[85].mxu1 }
 0xc6c   :  { %v2697_v20 = vadd.f32 %v2696_v6, %v4934_v13  ;;  %v2742_v39 = vmul.f32 %v4934_v13, %v4934_v13  ;;  %v4939_v53 = vpop.f32.mrb[86].mxu1 }
 0xc6d   :  { %v2774_v10 = vadd.f32 %v2773_v3, %v2741_v47  ;;  %v2669_v28 = vadd.f32 %v2668_v42, %v4939_v53  ;;  %v2743_v41 = vmul.f32 %v4939_v53, %v4939_v53  ;;  %v4944_v60 = vpop.f32.mrb[87].mxu1 }
 0xc6e   :  { %v2803_v11 = vadd.f32 %v2802_v7, %v2742_v39  ;;  %v2698_v50 = vadd.f32 %v2697_v20, %v4944_v60  ;;  %v2744_v15 = vmul.f32 %v4944_v60, %v4944_v60 }
 0xc6f   :  { %v2775_v54 = vadd.f32 %v2774_v10, %v2743_v41 }
 0xc70   :  { %v2804_v48 = vadd.f32 %v2803_v11, %v2744_v15 }
 0xc72   :  { %v4949_v40 = vpop.f32.mrb[88].mxu1 }
 0xc73   :  { %5482 = vst [vmem:[#allocation26_spill] sm:$0xff] %v4949_v40  ;;  %v2670_v49 = vadd.f32 %v2669_v28, %v4949_v40  ;;  %v2745_v37 = vmul.f32 %v4949_v40, %v4949_v40  ;;  %v4954_v9 = vpop.f32.mrb[89].mxu1 }
 0xc74   :  { %5483 = vst [vmem:[#allocation27_spill] sm:$0xff] %v4954_v9  ;;  %v2699_v35 = vadd.f32 %v2698_v50, %v4954_v9  ;;  %v2746_v57 = vmul.f32 %v4954_v9, %v4954_v9  ;;  %v4959_v51 = vpop.f32.mrb[90].mxu1 }
 0xc75   :  { %5484 = vst [vmem:[#allocation28_spill] sm:$0xff] %v4959_v51  ;;  %v2776_v33 = vadd.f32 %v2775_v54, %v2745_v37  ;;  %v2671_v27 = vadd.f32 %v2670_v49, %v4959_v51  ;;  %v2747_v56 = vmul.f32 %v4959_v51, %v4959_v51  ;;  %v4964_v5 = vpop.f32.mrb[91].mxu1 }
 0xc76   :  { %5485 = vst [vmem:[#allocation29_spill] sm:$0xff] %v4964_v5  ;;  %v2805_v2 = vadd.f32 %v2804_v48, %v2746_v57  ;;  %v2700_v1 = vadd.f32 %v2699_v35, %v4964_v5  ;;  %v2748_v45 = vmul.f32 %v4964_v5, %v4964_v5 }
 0xc77   :  { %v2777_v58 = vadd.f32 %v2776_v33, %v2747_v56 }
 0xc78   :  { %v2806_v6 = vadd.f32 %v2805_v2, %v2748_v45 }
 0xc7a   :  { %v4969_v59 = vpop.f32.mrb[92].mxu1 }
 0xc7b   :  { %5486 = vst [vmem:[#allocation30_spill] sm:$0xff] %v4969_v59  ;;  %v2672_v3 = vadd.f32 %v2671_v27, %v4969_v59  ;;  %v2749_v7 = vmul.f32 %v4969_v59, %v4969_v59  ;;  %v4974_v42 = vpop.f32.mrb[93].mxu1 }
 0xc7c   :  { %5487 = vst [vmem:[#allocation31_spill] sm:$0xff] %v4974_v42  ;;  %v2701_v47 = vadd.f32 %v2700_v1, %v4974_v42  ;;  %v2750_v20 = vmul.f32 %v4974_v42, %v4974_v42  ;;  %v4979_v39 = vpop.f32.mrb[94].mxu1 }
 0xc7d   :  { %5488 = vst [vmem:[#allocation32_spill] sm:$0xff] %v4979_v39  ;;  %v2778_v10 = vadd.f32 %v2777_v58, %v2749_v7  ;;  %v2673_v28 = vadd.f32 %v2672_v3, %v4979_v39  ;;  %v2751_v41 = vmul.f32 %v4979_v39, %v4979_v39  ;;  %v4984_v11 = vpop.f32.mrb[95].mxu1 }
 0xc7e   :  { %5489 = vst [vmem:[#allocation33_spill] sm:$0xff] %v4984_v11  ;;  %v2807_v50 = vadd.f32 %v2806_v6, %v2750_v20  ;;  %v2702_v15 = vadd.f32 %v2701_v47, %v4984_v11  ;;  %v2752_v54 = vmul.f32 %v4984_v11, %v4984_v11 }
 0xc7f   :  { %v2779_v48 = vadd.f32 %v2778_v10, %v2751_v41 }
 0xc80   :  { %v2808_v49 = vadd.f32 %v2807_v50, %v2752_v54 }
 0xc82   :  { %v4989_v37 = vpop.f32.mrb[96].mxu1 }
 0xc83   :  { %5490 = vst [vmem:[#allocation34_spill] sm:$0xff] %v4989_v37  ;;  %v2674_v35 = vadd.f32 %v2673_v28, %v4989_v37  ;;  %v2753_v57 = vmul.f32 %v4989_v37, %v4989_v37  ;;  %v4994_v33 = vpop.f32.mrb[97].mxu1 }
 0xc84   :  { %5491 = vst [vmem:[#allocation35_spill] sm:$0xff] %v4994_v33  ;;  %v2703_v27 = vadd.f32 %v2702_v15, %v4994_v33  ;;  %v2754_v56 = vmul.f32 %v4994_v33, %v4994_v33  ;;  %v4999_v2 = vpop.f32.mrb[98].mxu1 }
 0xc85   :  { %5492 = vst [vmem:[#allocation36_spill] sm:$0xff] %v4999_v2  ;;  %v2780_v1 = vadd.f32 %v2779_v48, %v2753_v57  ;;  %v2675_v45 = vadd.f32 %v2674_v35, %v4999_v2  ;;  %v2755_v58 = vmul.f32 %v4999_v2, %v4999_v2  ;;  %v5004_v6 = vpop.f32.mrb[99].mxu1 }
 0xc86   :  { %5493 = vst [vmem:[#allocation37_spill] sm:$0xff] %v5004_v6  ;;  %v2809_v3 = vadd.f32 %v2808_v49, %v2754_v56  ;;  %v2704_v7 = vadd.f32 %v2703_v27, %v5004_v6  ;;  %v2756_v47 = vmul.f32 %v5004_v6, %v5004_v6 }
 0xc87   :  { %v2781_v20 = vadd.f32 %v2780_v1, %v2755_v58 }
 0xc88   :  { %v2810_v10 = vadd.f32 %v2809_v3, %v2756_v47 }
 0xc8a   :  { %v5009_v28 = vpop.f32.mrb[100].mxu1 }
 0xc8b   :  { %5494 = vst [vmem:[#allocation38_spill] sm:$0xff] %v5009_v28  ;;  %v2676_v41 = vadd.f32 %v2675_v45, %v5009_v28  ;;  %v2757_v50 = vmul.f32 %v5009_v28, %v5009_v28  ;;  %v5014_v15 = vpop.f32.mrb[101].mxu1 }
 0xc8c   :  { %5495 = vst [vmem:[#allocation39_spill] sm:$0xff] %v5014_v15  ;;  %v2705_v54 = vadd.f32 %v2704_v7, %v5014_v15  ;;  %v2758_v48 = vmul.f32 %v5014_v15, %v5014_v15  ;;  %v5019_v49 = vpop.f32.mrb[102].mxu1 }
 0xc8d   :  { %5496 = vst [vmem:[#allocation40_spill] sm:$0xff] %v5019_v49  ;;  %v2782_v35 = vadd.f32 %v2781_v20, %v2757_v50  ;;  %v2677_v57 = vadd.f32 %v2676_v41, %v5019_v49  ;;  %v2759_v27 = vmul.f32 %v5019_v49, %v5019_v49  ;;  %v5024_v56 = vpop.f32.mrb[103].mxu1  ;;  %v2820_v41 = vld [vmem:[#allocation11 + $0x10] ss:$8 sm:$0x3] }
 0xc8e   :  { %5497 = vst [vmem:[#allocation41_spill] sm:$0xff] %v5024_v56  ;;  %v2811_v1 = vadd.f32 %v2810_v10, %v2758_v48  ;;  %v2706_v45 = vadd.f32 %v2705_v54, %v5024_v56  ;;  %v2760_v58 = vmul.f32 %v5024_v56, %v5024_v56  ;;  %v2862_v49 = vld [vmem:[#allocation11 + $0x11] ss:$8 sm:$0x3]  ;;  %v5030_v56 = vrot.slane %v2820_v41, %v3945_v25 }
 0xc8f   :  { %v2678_v3 = vrot.slane %v2677_v57, 4  ;;  %v2783_v7 = vadd.f32 %v2782_v35, %v2759_v27  ;;  %v2903_v10 = vld [vmem:[#allocation11 + $0x12] ss:$8 sm:$0x3]  ;;  %v5033_v35 = vrot.slane %v2862_v49, %v3945_v25  ;;  %v5498_v27 = vld [vmem:[#allocation25_spill] sm:$0xff] }
 0xc90   :  { %v2707_v47 = vrot.slane %v2706_v45, 4  ;;  %v2812_v15 = vadd.f32 %v2811_v1, %v2760_v58  ;;  %v5036_v1 = vrot.slane %v2820_v41, %v5498_v27 }
 0xc91   :  { %v2679_v28 = vadd.f32 %v2678_v3, %v2677_v57  ;;  %v2784_v6 = vrot.slane %v2783_v7, 4 }
 0xc92   :  { %v2708_v20 = vadd.f32 %v2707_v47, %v2706_v45  ;;  %v2813_v50 = vrot.slane %v2812_v15, 4 }
 0xc93   :  { %v2680_v2 = vrot.slane %v2679_v28, 2  ;;  %v2785_v33 = vadd.f32 %v2784_v6, %v2783_v7  ;;  %v5039_v6 = vrot.slane %v2903_v10, %v3945_v25 }
 0xc94   :  { %v2709_v37 = vrot.slane %v2708_v20, 2  ;;  %v2814_v11 = vadd.f32 %v2813_v50, %v2812_v15 }
 0xc95   :  { %v2681_v48 = vadd.f32 %v2680_v2, %v2679_v28  ;;  %v2786_v54 = vrot.slane %v2785_v33, 2  ;;  %v5042_v2 = vrot.slane %v2862_v49, %v5498_v27 }
 0xc96   :  { %v2710_v39 = vadd.f32 %v2709_v37, %v2708_v20  ;;  %v2815_v42 = vrot.slane %v2814_v11, 2  ;;  %v5045_v37 = vrot.slane %v2903_v10, %v5498_v27 }
 0xc97   :  { %v2682_v57 = vrot.slane %v2681_v48, 1  ;;  %v2787_v45 = vadd.f32 %v2786_v54, %v2785_v33 }
 0xc98   :  { %v2711_v15 = vrot.slane %v2710_v39, 1  ;;  %v2816_v58 = vadd.f32 %v2815_v42, %v2814_v11 }
 0xc99   :  { %v2683_v28 = vadd.f32 %v2682_v57, %v2681_v48  ;;  %v2788_v3 = vrot.slane %v2787_v45, 1 }
 0xc9a   :  { %v2712_v7 = vadd.f32 %v2711_v15, %v2710_v39  ;;  %v2817_v47 = vrot.slane %v2816_v58, 1 }
 0xc9b   :  { %v2832_v20 = vmul.f32 %v5030_v56, %v2683_v28  ;;  %v2789_v50 = vadd.f32 %v2788_v3, %v2787_v45  ;;  %v2874_v33 = vmul.f32 %v5033_v35, %v2683_v28  ;;  %v2915_v41 = vmul.f32 %v5039_v6, %v2683_v28 }
 0xc9c   :  { %v2833_v42 = vmul.f32 %v5036_v1, %v2712_v7  ;;  %v2818_v11 = vadd.f32 %v2817_v47, %v2816_v58  ;;  %v2875_v49 = vmul.f32 %v5042_v2, %v2712_v7  ;;  %v2916_v10 = vmul.f32 %v5045_v37, %v2712_v7 }
 0xc9d   :  { %v2835_v48 = vsel %vm2834_vm2, %v2832_v20, 0.0  ;;  %v2841_v39 = vmul.f32 %v5030_v56, %v2789_v50  ;;  %v2876_v54 = vsel %vm2834_vm2, %v2874_v33, 0.0  ;;  %v2882_v57 = vmul.f32 %v5033_v35, %v2789_v50 }
 0xc9e   :  { %v2836_v45 = vsel %vm2834_vm2, %v2833_v42, 0.0  ;;  %v2842_v15 = vmul.f32 %v5036_v1, %v2818_v11  ;;  %v2877_v28 = vsel %vm2834_vm2, %v2875_v49, 0.0  ;;  %v2883_v58 = vmul.f32 %v5042_v2, %v2818_v11 }
 0xc9f   :  { %v2837_v3 = vadd.f32 %v2836_v45, %v2835_v48  ;;  %v2843_v47 = vsel %vm2834_vm2, %v2841_v39, 0.0  ;;  %v2878_v7 = vadd.f32 %v2877_v28, %v2876_v54  ;;  %v2884_v20 = vsel %vm2834_vm2, %v2882_v57, 0.0 }
 0xca0   :  { %v2844_v59 = vsel %vm2834_vm2, %v2842_v15, 0.0  ;;  %v2885_v33 = vsel %vm2834_vm2, %v2883_v58, 0.0  ;;  %v2917_v5 = vsel %vm2834_vm2, %v2915_v41, 0.0  ;;  %v2918_v42 = vsel %vm2834_vm2, %v2916_v10, 0.0 }
 0xca1   :  { %2838 = vadd.xlane.f32.xlu0 %v2837_v3  ;;  %v2845_v51 = vadd.f32 %v2844_v59, %v2843_v47  ;;  %v2886_v9 = vadd.f32 %v2885_v33, %v2884_v20  ;;  %v2919_v49 = vadd.f32 %v2918_v42, %v2917_v5  ;;  %v2923_v40 = vmul.f32 %v5039_v6, %v2789_v50 }
 0xca2   :  { %v2924_v48 = vmul.f32 %v5045_v37, %v2818_v11 }
 0xca3   :  { %2846 = vadd.xlane.f32.xlu1 %v2845_v51  ;;  %v2925_v39 = vsel %vm2834_vm2, %v2923_v40, 0.0 }
 0xca4   :  { %v2926_v54 = vsel %vm2834_vm2, %v2924_v48, 0.0 }
 0xca5   :  { %2879 = vadd.xlane.f32.xlu0 %v2878_v7  ;;  %v2927_v57 = vadd.f32 %v2926_v54, %v2925_v39 }
 0xca7   :  { %2887 = vadd.xlane.f32.xlu1 %v2886_v9 }
 0xca9   :  { %2920 = vadd.xlane.f32.xlu0 %v2919_v49 }
 0xcab   :  { %2928 = vadd.xlane.f32.xlu1 %v2927_v57 }
 0xd2e   :  { %v2839_v41 = vpop.xlane.xlu0 %2838 }
 0xd2f   :  { %v2840_v10 = vmul.f32 0.000108506945, %v2839_v41 }
 0xd30   :  { %v2847_v45 = vpop.xlane.xlu1 %2846 }
 0xd31   :  { %v2848_v59 = vmul.f32 0.000108506945, %v2847_v45  ;;  %v2849_v15 = vmul.f32 %v2840_v10, %v2840_v10 }
 0xd32   :  { %v2880_v5 = vpop.xlane.xlu0 %2879 }
 0xd33   :  { %v2850_v28 = vsub.f32 %v2848_v59, %v2849_v15  ;;  %v2881_v50 = vmul.f32 0.000108506945, %v2880_v5 }
 0xd34   :  { %v2888_v58 = vpop.xlane.xlu1 %2887 }
 0xd35   :  { %v2889_v11 = vmul.f32 0.000108506945, %v2888_v58  ;;  %v2890_v51 = vmul.f32 %v2881_v50, %v2881_v50  ;;  %v2851_v40 = vadd.f32 1e-05, %v2850_v28 }
 0xd36   :  { %v2921_v3 = vpop.xlane.xlu0 %2920 }
 0xd37   :  { %v2922_v47 = vmul.f32 0.000108506945, %v2921_v3  ;;  %v2891_v20 = vsub.f32 %v2889_v11, %v2890_v51  ;;  %3534 = vrsqrt.f32 %v2851_v40 }
 0xd38   :  { %v2929_v7 = vpop.xlane.xlu1 %2928 }
 0xd39   :  { %v2930_v33 = vmul.f32 0.000108506945, %v2929_v7  ;;  %v2931_v9 = vmul.f32 %v2922_v47, %v2922_v47  ;;  %v2892_v42 = vadd.f32 1e-05, %v2891_v20  ;;  %v2894_v20 = vmul.f32 %v2881_v50, %v5033_v35 }
 0xd3a   :  { %v2895_v7 = vmul.f32 %v2881_v50, %v5042_v2 }
 0xd3b   :  { %v2932_v49 = vsub.f32 %v2930_v33, %v2931_v9  ;;  %3536 = vrsqrt.f32 %v2892_v42  ;;  %v5499_v33 = vld [vmem:[#allocation24_spill] sm:$0xff]  ;;  %v2853_v42 = vmul.f32 %v2840_v10, %v5030_v56 }
 0xd3d   :  { %v2933_v48 = vadd.f32 1e-05, %v2932_v49  ;;  %v2944_v49 = vld [vmem:[#allocation11 + $0x6] ss:$8 sm:$0x3] }
 0xd3f   :  { %3538 = vrsqrt.f32 %v2933_v48  ;;  %v2854_v48 = vmul.f32 %v2840_v10, %v5036_v1 }
 0xd41   :  { %v3535_v39 = vpop.eup %3534 }
 0xd42   :  { %v2857_v45 = vmul.f32 %v3535_v39, %v5030_v56  ;;  %v2858_v59 = vmul.f32 %v3535_v39, %v5036_v1  ;;  %v2935_v39 = vmul.f32 %v2922_v47, %v5039_v6 }
 0xd45   :  { %v3537_v54 = vpop.eup %3536 }
 0xd46   :  { %v2898_v57 = vmul.f32 %v3537_v54, %v5033_v35  ;;  %v2899_v41 = vmul.f32 %v3537_v54, %v5042_v2  ;;  %v2936_v54 = vmul.f32 %v2922_v47, %v5045_v37 }
 0xd48   :  { %v2900_v5 = vadd.f32 %v2898_v57, %v2857_v45  ;;  %v2901_v28 = vadd.f32 %v2899_v41, %v2858_v59  ;;  %v2896_v41 = vadd.f32 %v2894_v20, %v2853_v42  ;;  %v2897_v45 = vadd.f32 %v2895_v7, %v2854_v48  ;;  %v2965_v20 = vld [vmem:[#allocation11 + $0x7] ss:$8 sm:$0x3] }
 0xd49   :  { %v3539_v15 = vpop.eup %3538 }
 0xd4a   :  { %v2939_v58 = vmul.f32 %v3539_v15, %v5039_v6  ;;  %v2940_v11 = vmul.f32 %v3539_v15, %v5045_v37  ;;  %v2937_v15 = vadd.f32 %v2935_v39, %v2896_v41  ;;  %v2938_v35 = vadd.f32 %v2936_v54, %v2897_v45  ;;  %v5506_v41 = vld [vmem:[#allocation32_spill] sm:$0xff]  ;;  %v5507_v45 = vld [vmem:[#allocation33_spill] sm:$0xff] }
 0xd4c   :  { %v2941_v51 = vadd.f32 %v2939_v58, %v2900_v5  ;;  %v2942_v3 = vadd.f32 %v2940_v11, %v2901_v28 }
 0xd4e   :  { %v2947_v40 = vcombine.low %v2941_v51, %v2942_v3 }
 0xd50   :  { %v2954_v9 = vrot.slane %v2947_v40, %v5499_v33 }
 0xd52   :  { %v2961_v57 = vrot.slane %v2954_v9, %v5499_v33 }
 0xd54   :  { %v2963_v59 = vmul.f32 %v2961_v57, %v2944_v49  ;;  %v5505_v57 = vld [vmem:[#allocation31_spill] sm:$0xff] }
 0xd56   :  { %v2970_v2 = vrot.slane %v2963_v59, %v3945_v25  ;;  %v2974_v50 = vrot.slane %v2963_v59, %v5498_v27  ;;  %v5508_v59 = vld [vmem:[#allocation34_spill] sm:$0xff] }
 0xd58   :  { %v2977_v5 = vmul.f32 %v2970_v2, %v2937_v15  ;;  %v2978_v56 = vmul.f32 %v2974_v50, %v2938_v35  ;;  %v2998_v28 = vmul.f32 %v2970_v2, %v4789_v22  ;;  %v2999_v1 = vmul.f32 %v2974_v50, %v4791_v14  ;;  %v5509_v15 = vld [vmem:[#allocation35_spill] sm:$0xff]  ;;  %v5510_v35 = vld [vmem:[#allocation36_spill] sm:$0xff] }
 0xd59   :  { %v3000_v37 = vmul.f32 %v2970_v2, %v4793_v18  ;;  %v3001_v10 = vmul.f32 %v2974_v50, %v4801_v55  ;;  %v3002_v47 = vmul.f32 %v2970_v2, %v4809_v31  ;;  %v3003_v58 = vmul.f32 %v2974_v50, %v4814_v23 }
 0xd5a   :  { %v2981_v6 = vcombine.low %v2977_v5, %v2978_v56  ;;  %v3004_v11 = vmul.f32 %v2970_v2, %v4819_v36  ;;  %v3005_v51 = vmul.f32 %v2974_v50, %v4824_v0  ;;  %v3006_v3 = vmul.f32 %v2970_v2, %v4829_v52  ;;  %v5511_v56 = vld [vmem:[#allocation37_spill] sm:$0xff] }
 0xd5b   :  { %v3007_v22 = vmul.f32 %v2974_v50, %v4834_v12  ;;  %v3008_v14 = vmul.f32 %v2970_v2, %v4839_v63  ;;  %v3009_v18 = vmul.f32 %v2974_v50, %v4844_v46  ;;  %v3010_v55 = vmul.f32 %v2970_v2, %v4849_v17 }
 0xd5c   :  { %v2988_v40 = vrot.slane %v2981_v6, %v5499_v33  ;;  %v3011_v31 = vmul.f32 %v2974_v50, %v4854_v30  ;;  %v3012_v23 = vmul.f32 %v2970_v2, %v4859_v19  ;;  %v3013_v36 = vmul.f32 %v2974_v50, %v4864_v44 }
 0xd5d   :  { %v3014_v52 = vmul.f32 %v2970_v2, %v4869_v62  ;;  %v3015_v7 = vmul.f32 %v2974_v50, %v4874_v34  ;;  %v3016_v12 = vmul.f32 %v2970_v2, %v4879_v4  ;;  %v3017_v63 = vmul.f32 %v2974_v50, %v4884_v29 }
 0xd5e   :  { %v2995_v0 = vrot.slane %v2988_v40, %v5499_v33  ;;  %v3018_v46 = vmul.f32 %v2970_v2, %v4889_v21  ;;  %v3019_v17 = vmul.f32 %v2974_v50, %v4894_v24  ;;  %v3020_v30 = vmul.f32 %v2970_v2, %v4899_v61  ;;  %v5500_v61 = vld [vmem:[#allocation26_spill] sm:$0xff] }
 0xd5f   :  { %v3021_v19 = vmul.f32 %v2974_v50, %v4904_v38  ;;  %v3022_v44 = vmul.f32 %v2970_v2, %v4909_v16  ;;  %v3023_v33 = vmul.f32 %v2974_v50, %v4914_v8  ;;  %v3024_v62 = vmul.f32 %v2970_v2, %v4919_v26  ;;  %v5501_v38 = vld [vmem:[#allocation27_spill] sm:$0xff]  ;;  %v5502_v16 = vld [vmem:[#allocation28_spill] sm:$0xff]  ;;  %v5503_v8 = vld [vmem:[#allocation29_spill] sm:$0xff] }
 0xd60   :  { %v2997_v9 = vsub.f32 %v2965_v20, %v2995_v0  ;;  %v3025_v34 = vmul.f32 %v2974_v50, %v4924_v32  ;;  %v3026_v4 = vmul.f32 %v2970_v2, %v4929_v43  ;;  %v3027_v29 = vmul.f32 %v2974_v50, %v4934_v13  ;;  %v5504_v26 = vld [vmem:[#allocation30_spill] sm:$0xff] }
 0xd61   :  { %v3028_v21 = vmul.f32 %v2970_v2, %v4939_v53  ;;  %v3029_v24 = vmul.f32 %v2974_v50, %v4944_v60  ;;  %v3030_v42 = vmul.f32 %v2970_v2, %v5500_v61  ;;  %v3031_v49 = vmul.f32 %v2974_v50, %v5501_v38  ;;  %v5512_v0 = vld [vmem:[#allocation38_spill] sm:$0xff]  ;;  %v5513_v38 = vld [vmem:[#allocation39_spill] sm:$0xff] }
 0xd62   :  { %v3032_v48 = vmul.f32 %v2970_v2, %v5502_v16  ;;  %v3033_v39 = vmul.f32 %v2974_v50, %v5503_v8  ;;  %v3034_v54 = vmul.f32 %v2970_v2, %v5504_v26  ;;  %v3035_v32 = vmul.f32 %v2974_v50, %v5505_v57  ;;  %v5514_v8 = vld [vmem:[#allocation40_spill] sm:$0xff]  ;;  %v5515_v57 = vld [vmem:[#allocation41_spill] sm:$0xff] }
 0xd63   :  { %v3036_v43 = vmul.f32 %v2970_v2, %v5506_v41  ;;  %v3037_v13 = vmul.f32 %v2974_v50, %v5507_v45  ;;  %v3038_v53 = vmul.f32 %v2970_v2, %v5508_v59  ;;  %v3039_v60 = vmul.f32 %v2974_v50, %v5509_v15 }
 0xd64   :  { %v3040_v5 = vmul.f32 %v2970_v2, %v5510_v35  ;;  %v3041_v6 = vmul.f32 %v2974_v50, %v5511_v56  ;;  %v3050_v40 = vrot.slane %v2997_v9, %v3945_v25  ;;  %v3054_v20 = vrot.slane %v2997_v9, %v5498_v27 }
 0xd65   :  { %v3042_v61 = vmul.f32 %v2970_v2, %v5512_v0  ;;  %v3043_v16 = vmul.f32 %v2974_v50, %v5513_v38  ;;  %v3044_v26 = vmul.f32 %v2970_v2, %v5514_v8  ;;  %v3045_v41 = vmul.f32 %v2974_v50, %v5515_v57 }
 0xd66   :  { %v3057_v45 = vadd.f32 %v3050_v40, %v2998_v28  ;;  %v3058_v59 = vadd.f32 %v3054_v20, %v2999_v1  ;;  %v3059_v15 = vadd.f32 %v3050_v40, %v3000_v37  ;;  %v3060_v35 = vadd.f32 %v3054_v20, %v3001_v10 }
 0xd67   :  { %v5139_v56 = vadd.f32 %v3050_v40, %v3002_v47  ;;  %v5141_v25 = vadd.f32 %v3054_v20, %v3003_v58  ;;  %v5143_v9 = vadd.f32 %v3050_v40, %v3004_v11  ;;  %v5145_v27 = vadd.f32 %v3054_v20, %v3005_v51 }
 0xd68   :  { %v5147_v0 = vadd.f32 %v3050_v40, %v3006_v3  ;;  %v5149_v38 = vadd.f32 %v3054_v20, %v3007_v22  ;;  %v5151_v2 = vadd.f32 %v3050_v40, %v3008_v14  ;;  %v5153_v8 = vadd.f32 %v3054_v20, %v3009_v18 }
 0xd69   :  { %v5155_v50 = vadd.f32 %v3050_v40, %v3010_v55  ;;  %v5157_v28 = vadd.f32 %v3054_v20, %v3011_v31  ;;  %v5159_v1 = vadd.f32 %v3050_v40, %v3012_v23  ;;  %v5161_v37 = vadd.f32 %v3054_v20, %v3013_v36 }
 0xd6a   :  { %v5163_v10 = vadd.f32 %v3050_v40, %v3014_v52  ;;  %v5165_v47 = vadd.f32 %v3054_v20, %v3015_v7  ;;  %v5167_v58 = vadd.f32 %v3050_v40, %v3016_v12  ;;  %v5169_v11 = vadd.f32 %v3054_v20, %v3017_v63 }
 0xd6b   :  { %v5171_v51 = vadd.f32 %v3050_v40, %v3018_v46  ;;  %v5173_v3 = vadd.f32 %v3054_v20, %v3019_v17  ;;  %v5175_v22 = vadd.f32 %v3050_v40, %v3020_v30  ;;  %v5177_v14 = vadd.f32 %v3054_v20, %v3021_v19 }
 0xd6c   :  { %v5179_v18 = vadd.f32 %v3050_v40, %v3022_v44  ;;  %v5181_v55 = vadd.f32 %v3054_v20, %v3023_v33  ;;  %v5183_v31 = vadd.f32 %v3050_v40, %v3024_v62  ;;  %v5185_v23 = vadd.f32 %v3054_v20, %v3025_v34 }
 0xd6d   :  { %v5187_v36 = vadd.f32 %v3050_v40, %v3026_v4  ;;  %v5189_v52 = vadd.f32 %v3054_v20, %v3027_v29  ;;  %v5191_v7 = vadd.f32 %v3050_v40, %v3028_v21  ;;  %v5193_v12 = vadd.f32 %v3054_v20, %v3029_v24 }
 0xd6e   :  { %v5195_v63 = vadd.f32 %v3050_v40, %v3030_v42  ;;  %v5197_v46 = vadd.f32 %v3054_v20, %v3031_v49  ;;  %v5199_v17 = vadd.f32 %v3050_v40, %v3032_v48  ;;  %v5201_v30 = vadd.f32 %v3054_v20, %v3033_v39 }
 0xd6f   :  { %v5203_v19 = vadd.f32 %v3050_v40, %v3034_v54  ;;  %v5205_v44 = vadd.f32 %v3054_v20, %v3035_v32  ;;  %v5207_v33 = vadd.f32 %v3050_v40, %v3036_v43  ;;  %v5209_v62 = vadd.f32 %v3054_v20, %v3037_v13 }
 0xd70   :  { %v5211_v34 = vadd.f32 %v3050_v40, %v3038_v53  ;;  %v5213_v4 = vadd.f32 %v3054_v20, %v3039_v60  ;;  %v5215_v29 = vadd.f32 %v3050_v40, %v3040_v5  ;;  %v5217_v21 = vadd.f32 %v3054_v20, %v3041_v6 }
 0xd71   :  { %v5219_v24 = vadd.f32 %v3050_v40, %v3042_v61  ;;  %v5221_v42 = vadd.f32 %v3054_v20, %v3043_v16  ;;  %v5223_v49 = vadd.f32 %v3050_v40, %v3044_v26  ;;  %v5225_v48 = vadd.f32 %v3054_v20, %v3045_v41 }
 0xd72   :  { %v3105_v39 = vmax.f32 %v3057_v45, 0.0  ;;  %v3106_v54 = vmax.f32 %v3058_v59, 0.0  ;;  %v3107_v32 = vmax.f32 %v3059_v15, 0.0  ;;  %v3108_v43 = vmax.f32 %v3060_v35, 0.0 }
 0xd73   :  { %v3109_v13 = vmax.f32 %v5139_v56, 0.0  ;;  %v3110_v53 = vmax.f32 %v5141_v25, 0.0  ;;  %v3111_v60 = vmax.f32 %v5143_v9, 0.0  ;;  %v3112_v5 = vmax.f32 %v5145_v27, 0.0 }
 0xd74   :  { %v3113_v6 = vmax.f32 %v5147_v0, 0.0  ;;  %v3114_v61 = vmax.f32 %v5149_v38, 0.0  ;;  %v3115_v40 = vmax.f32 %v5151_v2, 0.0  ;;  %v3116_v20 = vmax.f32 %v5153_v8, 0.0  ;;  %3153 = vst [vmem:[%s5423_s8] sm:$0xff] %v3105_v39  ;;  %3154 = vst [vmem:[%s5423_s8 + $0x8] sm:$0xff] %v3106_v54 }
 0xd75   :  { %3155 = vst [vmem:[%s5423_s8 + $0x10] sm:$0xff] %v3107_v32  ;;  %3156 = vst [vmem:[%s5423_s8 + $0x18] sm:$0xff] %v3108_v43  ;;  %v3117_v16 = vmax.f32 %v5155_v50, 0.0  ;;  %v3118_v26 = vmax.f32 %v5157_v28, 0.0  ;;  %v3119_v57 = vmax.f32 %v5159_v1, 0.0  ;;  %v3120_v41 = vmax.f32 %v5161_v37, 0.0 }
 0xd76   :  { %3157 = vst [vmem:[%s5423_s8 + $0x20] sm:$0xff] %v3109_v13  ;;  %3158 = vst [vmem:[%s5423_s8 + $0x28] sm:$0xff] %v3110_v53  ;;  %v3121_v45 = vmax.f32 %v5163_v10, 0.0  ;;  %v3122_v59 = vmax.f32 %v5165_v47, 0.0  ;;  %v3123_v15 = vmax.f32 %v5167_v58, 0.0  ;;  %v3124_v35 = vmax.f32 %v5169_v11, 0.0 }
 0xd77   :  { %3159 = vst [vmem:[%s5423_s8 + $0x30] sm:$0xff] %v3111_v60  ;;  %3160 = vst [vmem:[%s5423_s8 + $0x38] sm:$0xff] %v3112_v5  ;;  %v3125_v56 = vmax.f32 %v5171_v51, 0.0  ;;  %v3126_v25 = vmax.f32 %v5173_v3, 0.0  ;;  %v3127_v9 = vmax.f32 %v5175_v22, 0.0  ;;  %v3128_v27 = vmax.f32 %v5177_v14, 0.0 }
 0xd78   :  { %3161 = vst [vmem:[%s5423_s8 + $0x40] sm:$0xff] %v3113_v6  ;;  %3162 = vst [vmem:[%s5423_s8 + $0x48] sm:$0xff] %v3114_v61  ;;  %v3129_v0 = vmax.f32 %v5179_v18, 0.0  ;;  %v3130_v38 = vmax.f32 %v5181_v55, 0.0  ;;  %v3131_v2 = vmax.f32 %v5183_v31, 0.0  ;;  %v3132_v8 = vmax.f32 %v5185_v23, 0.0 }
 0xd79   :  { %3163 = vst [vmem:[%s5423_s8 + $0x50] sm:$0xff] %v3115_v40  ;;  %3164 = vst [vmem:[%s5423_s8 + $0x58] sm:$0xff] %v3116_v20  ;;  %v3133_v50 = vmax.f32 %v5187_v36, 0.0  ;;  %v3134_v28 = vmax.f32 %v5189_v52, 0.0  ;;  %v3135_v1 = vmax.f32 %v5191_v7, 0.0  ;;  %v3136_v37 = vmax.f32 %v5193_v12, 0.0 }
 0xd7a   :  { %3165 = vst [vmem:[%s5423_s8 + $0x60] sm:$0xff] %v3117_v16  ;;  %3166 = vst [vmem:[%s5423_s8 + $0x68] sm:$0xff] %v3118_v26  ;;  %v3137_v10 = vmax.f32 %v5195_v63, 0.0  ;;  %v3138_v47 = vmax.f32 %v5197_v46, 0.0  ;;  %v3139_v58 = vmax.f32 %v5199_v17, 0.0  ;;  %v3140_v11 = vmax.f32 %v5201_v30, 0.0 }
 0xd7b   :  { %3167 = vst [vmem:[%s5423_s8 + $0x70] sm:$0xff] %v3119_v57  ;;  %3168 = vst [vmem:[%s5423_s8 + $0x78] sm:$0xff] %v3120_v41  ;;  %v3141_v51 = vmax.f32 %v5203_v19, 0.0  ;;  %v3142_v3 = vmax.f32 %v5205_v44, 0.0  ;;  %v3143_v22 = vmax.f32 %v5207_v33, 0.0  ;;  %v3144_v14 = vmax.f32 %v5209_v62, 0.0 }
 0xd7c   :  { %3169 = vst [vmem:[%s5423_s8 + $0x80] sm:$0xff] %v3121_v45  ;;  %3170 = vst [vmem:[%s5423_s8 + $0x88] sm:$0xff] %v3122_v59  ;;  %v3145_v18 = vmax.f32 %v5211_v34, 0.0  ;;  %v3146_v55 = vmax.f32 %v5213_v4, 0.0  ;;  %v3147_v31 = vmax.f32 %v5215_v29, 0.0  ;;  %v3148_v23 = vmax.f32 %v5217_v21, 0.0 }
 0xd7d   :  { %3171 = vst [vmem:[%s5423_s8 + $0x90] sm:$0xff] %v3123_v15  ;;  %3172 = vst [vmem:[%s5423_s8 + $0x98] sm:$0xff] %v3124_v35  ;;  %v3149_v36 = vmax.f32 %v5219_v24, 0.0  ;;  %v3150_v52 = vmax.f32 %v5221_v42, 0.0  ;;  %v3151_v7 = vmax.f32 %v5223_v49, 0.0  ;;  %v3152_v12 = vmax.f32 %v5225_v48, 0.0 }
 0xd7e   :  { %3173 = vst [vmem:[%s5423_s8 + $0xa0] sm:$0xff] %v3125_v56  ;;  %3174 = vst [vmem:[%s5423_s8 + $0xa8] sm:$0xff] %v3126_v25 }
 0xd7f   :  { %3175 = vst [vmem:[%s5423_s8 + $0xb0] sm:$0xff] %v3127_v9  ;;  %3176 = vst [vmem:[%s5423_s8 + $0xb8] sm:$0xff] %v3128_v27 }
 0xd80   :  { %3177 = vst [vmem:[%s5423_s8 + $0xc0] sm:$0xff] %v3129_v0  ;;  %3178 = vst [vmem:[%s5423_s8 + $0xc8] sm:$0xff] %v3130_v38 }
 0xd81   :  { %3179 = vst [vmem:[%s5423_s8 + $0xd0] sm:$0xff] %v3131_v2  ;;  %3180 = vst [vmem:[%s5423_s8 + $0xd8] sm:$0xff] %v3132_v8 }
 0xd82   :  { %3181 = vst [vmem:[%s5423_s8 + $0xe0] sm:$0xff] %v3133_v50  ;;  %3182 = vst [vmem:[%s5423_s8 + $0xe8] sm:$0xff] %v3134_v28 }
 0xd83   :  { %3183 = vst [vmem:[%s5423_s8 + $0xf0] sm:$0xff] %v3135_v1  ;;  %3184 = vst [vmem:[%s5423_s8 + $0xf8] sm:$0xff] %v3136_v37 }
 0xd84   :  { %3185 = vst [vmem:[%s5423_s8 + $0x100] sm:$0xff] %v3137_v10  ;;  %3186 = vst [vmem:[%s5423_s8 + $0x108] sm:$0xff] %v3138_v47 }
 0xd85   :  { %3187 = vst [vmem:[%s5423_s8 + $0x110] sm:$0xff] %v3139_v58  ;;  %3188 = vst [vmem:[%s5423_s8 + $0x118] sm:$0xff] %v3140_v11 }
 0xd86   :  { %3189 = vst [vmem:[%s5423_s8 + $0x120] sm:$0xff] %v3141_v51  ;;  %3190 = vst [vmem:[%s5423_s8 + $0x128] sm:$0xff] %v3142_v3 }
 0xd87   :  { %3191 = vst [vmem:[%s5423_s8 + $0x130] sm:$0xff] %v3143_v22  ;;  %3192 = vst [vmem:[%s5423_s8 + $0x138] sm:$0xff] %v3144_v14 }
 0xd88   :  { %3193 = vst [vmem:[%s5423_s8 + $0x140] sm:$0xff] %v3145_v18  ;;  %3194 = vst [vmem:[%s5423_s8 + $0x148] sm:$0xff] %v3146_v55 }
 0xd89   :  { %3195 = vst [vmem:[%s5423_s8 + $0x150] sm:$0xff] %v3147_v31  ;;  %3196 = vst [vmem:[%s5423_s8 + $0x158] sm:$0xff] %v3148_v23 }
 0xd8a   :  { %3197 = vst [vmem:[%s5423_s8 + $0x160] sm:$0xff] %v3149_v36  ;;  %3198 = vst [vmem:[%s5423_s8 + $0x168] sm:$0xff] %v3150_v52 }
 0xd8b   :  { %3199 = vst [vmem:[%s5423_s8 + $0x170] sm:$0xff] %v3151_v7  ;;  %3200 = vst [vmem:[%s5423_s8 + $0x178] sm:$0xff] %v3152_v12 }
 0xd8c   :  { %3205 = vsyncpa [#allocation7], 1 }
 0xd8d   :  { %3206 = vsyncpa [#allocation9], 1 }
 0xd8e   :  { %3207 = vsyncpa [#allocation12], 1 }
 0xd8f   :  { %3208 = vsyncmov [#allocation5] }
 0xd92   :  { %s3209_s11 = vpop.sfrf %3208 }
 0xd93   :  { %p3354_p4 = scmp.ne.s32.totalorder %s3209_s11, 0 }
 0xd95   :  { %3213 = shalt.err (%p3354_p4)  }
 0xd96   :  { %3215 = vsyncmov [#allocation5 + $0x1] }
 0xd99   :  { %s3216_s14 = vpop.sfrf %3215 }
 0xd9a   :  { %p3355_p5 = scmp.ne.s32.totalorder %s3216_s14, 0 }
 0xd9c   :  { %3220 = shalt.err (%p3355_p5)  }
 0xd9d   :  { %3222 = vsyncmov [#allocation5 + $0x2] }
 0xda0   :  { %s3223_s17 = vpop.sfrf %3222 }
 0xda1   :  { %p3356_p6 = scmp.ne.s32.totalorder %s3223_s17, 0 }
 0xda3   :  { %3227 = shalt.err (%p3356_p6)  }

</bundles_post_ra>
